<compile_context>
chip_gen: v7x
topology: tpu7x:2x2x1
jax: 0.10.0
libtpu: 0.0.40
codegen_flags: <defaults>
</compile_context>

<pallas_src>
import jax
import jax.numpy as jnp
from jax.experimental import pallas as pl
from jax.experimental.pallas import tpu as pltpu


def _make_kernel(ks, pad, tb, H, W):
    """Builds the Pallas kernel body specialized to static (ks, pad, tb, H, W)."""
    kk = ks * ks

    def kernel(w_ref, x_ref, o_ref, sum_ref, max_ref):
        # w_ref : SMEM (2*ks*ks,) f32 conv taps; avg taps already scaled by 1/C.
        # x_ref : VMEM (tb, cc, H, W) input chunk (input dtype, never up-cast).
        # o_ref : VMEM (tb, H, W) sigmoid attention map.
        # sum_ref/max_ref : VMEM (tb, H, W) f32 running channel-sum / channel-max.
        c = pl.program_id(1)
        nc = pl.num_programs(1)

        # ---- channel-chunk reduction (the HBM-bandwidth-bound part) ----------
        x = x_ref[...]                                      # (tb, cc, H, W)
        chunk_sum = jnp.sum(x, axis=1, dtype=jnp.float32)   # f32 accumulate
        chunk_max = jnp.max(x, axis=1)                      # input dtype

        @pl.when(c == 0)
        def _init():
            sum_ref[...] = jnp.zeros_like(sum_ref)
            max_ref[...] = jnp.full_like(max_ref, -jnp.inf)

        sum_ref[...] = sum_ref[...] + chunk_sum
        max_ref[...] = jnp.maximum(max_ref[...], chunk_max.astype(jnp.float32))

        # ---- conv + sigmoid epilogue: once per batch tile, last chunk only ----
        @pl.when(c == nc - 1)
        def _finalize():
            avg = sum_ref[...]          # 1/C folded into the avg-channel taps
            mx = max_ref[...]

            def pad_hw(m):              # zero-pad H (sublane) and W (lane) edges
                if pad == 0:
                    return m
                zh = jnp.zeros((tb, pad, W), jnp.float32)
                m = jnp.concatenate([zh, m, zh], axis=1)
                zw = jnp.zeros((tb, H + 2 * pad, pad), jnp.float32)
                return jnp.concatenate([zw, m, zw], axis=2)

            avg_p = pad_hw(avg)
            max_p = pad_hw(mx)

            # Direct ks x ks cross-correlation: static-offset windows of the
            # padded maps, scaled by SMEM scalar taps, accumulated on the VPU.
            acc = jnp.zeros((tb, H, W), jnp.float32)
            for kh in range(ks):                            # static -> unrolled
                for kw in range(ks):
                    wa = w_ref[kh * ks + kw]                # avg-channel tap (/C)
                    wm = w_ref[kk + kh * ks + kw]           # max-channel tap
                    acc = (acc
                           + wa * avg_p[:, kh:kh + H, kw:kw + W]
                           + wm * max_p[:, kh:kh + H, kw:kw + W])

            o_ref[...] = jax.nn.sigmoid(acc).astype(o_ref.dtype)

    return kernel


def spatial_attention(x, conv_w, *, tb=1, cc=None, chunk_bytes=2 << 20):
    """x: (B, C, H, W); conv_w: (1, 2, ks, ks) (PyTorch layout, channel 0 = avg,
    channel 1 = max).  Returns the sigmoid attention map with shape (B, 1, H, W)."""
    B, C, H, W = x.shape
    ks = conv_w.shape[-1]
    if conv_w.shape != (1, 2, ks, ks):
        raise ValueError("conv_w must have shape (1, 2, ks, ks)")
    pad = (ks - 1) // 2
    if B % tb:
        raise ValueError("tb must divide the batch size")

    itemsize = jnp.dtype(x.dtype).itemsize

    # Channels per chunk: target ~1-4 MiB x-tiles (measured >=85% of HBM roofline
    # there) while keeping the chunk count >= 1 and dividing C evenly.
    if cc is None:
        cc = max(1, min(C, chunk_bytes // max(1, tb * H * W * itemsize)))
        while C % cc:
            cc -= 1
    if C % cc:
        raise ValueError("cc must divide the channel count")
    nb, nc = B // tb, C // cc

    # Host-side prep: fold the 1/C mean scale into the avg-channel taps and
    # flatten the taps for SMEM ([0:ks*ks] = avg taps, [ks*ks:] = max taps).
    K = jnp.asarray(conv_w, jnp.float32)[0]                 # (2, ks, ks)
    K = K.at[0].multiply(1.0 / C)
    w_flat = K.reshape(-1)                                  # (2*ks*ks,)

    # VMEM budget derived from the actual tile bytes (x triple-buffer headroom,
    # out double buffer, scratch, taps, +1 MiB slack), capped for v7x's 64 MiB.
    x_blk = tb * cc * H * W * itemsize
    out_blk = tb * H * W * itemsize
    vmem_need = 3 * x_blk + 2 * out_blk + 2 * tb * H * W * 4 + 4 * w_flat.size + (1 << 20)
    vmem_limit = int(min(max(vmem_need, 16 << 20), 64 << 20))

    cost = pl.CostEstimate(
        flops=2 * B * C * H * W                 # channel sum + max
        + 4 * ks * ks * B * H * W,              # conv taps (2 channels, mul+add)
        transcendentals=B * H * W,              # sigmoid
        bytes_accessed=(B * C * H * W + B * H * W) * itemsize + 4 * w_flat.size)

    kernel = _make_kernel(ks, pad, tb, H, W)

    out = pl.pallas_call(
        kernel,
        out_shape=jax.ShapeDtypeStruct((B, H, W), x.dtype),
        grid_spec=pltpu.PrefetchScalarGridSpec(
            num_scalar_prefetch=0,
            grid=(nb, nc),                       # (batch tiles, channel chunks)
            in_specs=[
                pl.BlockSpec(memory_space=pltpu.MemorySpace.SMEM),       # conv taps
                pl.BlockSpec((tb, cc, H, W), lambda b, c: (b, c, 0, 0)),  # x chunk
            ],
            out_specs=pl.BlockSpec((tb, H, W), lambda b, c: (b, 0, 0)),
            scratch_shapes=[
                pltpu.VMEM((tb, H, W), jnp.float32),   # running channel sum
                pltpu.VMEM((tb, H, W), jnp.float32),   # running channel max
            ],
        ),
        compiler_params=pltpu.CompilerParams(
            # batch -> both v7x TensorCores; channel chunks give each core
            # several steps so the x DMAs pipeline even when B/tb is small.
            dimension_semantics=("parallel", "arbitrary"),
            vmem_limit_bytes=vmem_limit),
        cost_estimate=cost,
    )(w_flat, x)

    return out.reshape(B, 1, H, W)


def spatial_attention_ref(x, conv_w):
    """Pure-JAX reference mirroring the PyTorch forward exactly."""
    avg = jnp.mean(x, axis=1, keepdims=True)
    mx = jnp.max(x, axis=1, keepdims=True)
    cat = jnp.concatenate([avg, mx], axis=1)                # (B, 2, H, W)
    pad = (conv_w.shape[-1] - 1) // 2
    y = jax.lax.conv_general_dilated(
        cat, conv_w, window_strides=(1, 1),
        padding=((pad, pad), (pad, pad)),
        dimension_numbers=("NCHW", "OIHW", "NCHW"),
        precision=jax.lax.Precision.HIGHEST)
    return jax.nn.sigmoid(y)


if __name__ == "__main__":
    # SpatialAttention default: kernel_size=7, padding=3, bias=False.
    B, C, H, W = 2, 16, 16, 16
    ks = 7

    key = jax.random.PRNGKey(0)
    k_x, k_w = jax.random.split(key)
    x = jax.random.normal(k_x, (B, C, H, W), dtype=jnp.float32)
    conv_w = jax.random.normal(k_w, (1, 2, ks, ks), dtype=jnp.float32) * 0.2

    # cc=4 -> grid=(2, 4): 2 parallel batch tiles x 4 channel chunks, exercising
    # the chunked reduction / scratch-accumulator path.
    y = spatial_attention(x, conv_w, tb=1, cc=4)
    jax.block_until_ready(y)

    y_ref = spatial_attention_ref(x, conv_w)
    assert y.shape == (B, 1, H, W)
    err = float(jnp.max(jnp.abs(y - y_ref)))
    assert jnp.allclose(y, y_ref, atol=1e-3, rtol=1e-3), f"max abs err = {err}"

    print("KERNEL_OK")
</pallas_src>

<mosaic_0001>
module attributes {stable_mosaic.version = 11 : i64} {
  func.func @kernel(%arg0: i32, %arg1: i32, %arg2: memref<98xf32, #tpu.memory_space<smem>>, %arg3: memref<1x4x16x16xf32, #tpu.memory_space<vmem>>, %arg4: memref<1x16x16xf32, #tpu.memory_space<vmem>>, %arg5: memref<1x16x16xf32, #tpu.memory_space<vmem>>, %arg6: memref<1x16x16xf32, #tpu.memory_space<vmem>>) attributes {dimension_semantics = [#tpu.dimension_semantics<parallel>, #tpu.dimension_semantics<arbitrary>], iteration_bounds = array<i64: 2, 4>, scalar_prefetch = 0 : i64, scratch_operands = 2 : i64, tpu.core_type = #tpu.core_type<tc>, window_params = [{transform_indices = @transform_0, window_bounds = array<i64: 98>}, {transform_indices = @transform_1, window_bounds = array<i64: 1, 4, 16, 16>}, {transform_indices = @transform_2, window_bounds = array<i64: 1, 16, 16>}]} {
    %c0 = arith.constant 0 : index
    %c0_0 = arith.constant 0 : index
    %c0_1 = arith.constant 0 : index
    %c0_2 = arith.constant 0 : index
    %0 = vector.load %arg3[%c0, %c0_0, %c0_1, %c0_2] : memref<1x4x16x16xf32, #tpu.memory_space<vmem>>, vector<1x4x16x16xf32>
    %cst = arith.constant dense<0.000000e+00> : vector<1x16x16xf32>
    %1 = vector.multi_reduction <add>, %0, %cst [1] : vector<1x4x16x16xf32> to vector<1x16x16xf32>
    %cst_3 = arith.constant dense<0xFF800000> : vector<1x16x16xf32>
    %2 = vector.multi_reduction <maximumf>, %0, %cst_3 [1] : vector<1x4x16x16xf32> to vector<1x16x16xf32>
    %c0_i32 = arith.constant 0 : i32
    %3 = arith.cmpi eq, %arg1, %c0_i32 : i32
    %4 = arith.extui %3 : i1 to i32
    %c0_i32_4 = arith.constant 0 : i32
    %5 = arith.cmpi ne, %4, %c0_i32_4 : i32
    scf.if %5 {
      %cst_18 = arith.constant 0.000000e+00 : f32
      %15 = vector.broadcast %cst_18 : f32 to vector<1x16x16xf32>
      %c0_19 = arith.constant 0 : index
      %c0_20 = arith.constant 0 : index
      %c0_21 = arith.constant 0 : index
      %16 = vector.load %arg5[%c0_19, %c0_20, %c0_21] : memref<1x16x16xf32, #tpu.memory_space<vmem>>, vector<1x16x16xf32>
      tpu.vector_store %arg5[%c0_19, %c0_20, %c0_21], %15 {strides = array<i32>} : memref<1x16x16xf32, #tpu.memory_space<vmem>>, vector<1x16x16xf32>,
      %cst_22 = arith.constant 0xFF800000 : f32
      %17 = vector.broadcast %cst_22 : f32 to vector<1x16x16xf32>
      %c0_23 = arith.constant 0 : index
      %c0_24 = arith.constant 0 : index
      %c0_25 = arith.constant 0 : index
      %18 = vector.load %arg6[%c0_23, %c0_24, %c0_25] : memref<1x16x16xf32, #tpu.memory_space<vmem>>, vector<1x16x16xf32>
      tpu.vector_store %arg6[%c0_23, %c0_24, %c0_25], %17 {strides = array<i32>} : memref<1x16x16xf32, #tpu.memory_space<vmem>>, vector<1x16x16xf32>,
    } else {
    }
    %c0_5 = arith.constant 0 : index
    %c0_6 = arith.constant 0 : index
    %c0_7 = arith.constant 0 : index
    %6 = vector.load %arg5[%c0_5, %c0_6, %c0_7] : memref<1x16x16xf32, #tpu.memory_space<vmem>>, vector<1x16x16xf32>
    %7 = arith.addf %6, %1 : vector<1x16x16xf32>
    %c0_8 = arith.constant 0 : index
    %c0_9 = arith.constant 0 : index
    %c0_10 = arith.constant 0 : index
    %8 = vector.load %arg5[%c0_8, %c0_9, %c0_10] : memref<1x16x16xf32, #tpu.memory_space<vmem>>, vector<1x16x16xf32>
    tpu.vector_store %arg5[%c0_8, %c0_9, %c0_10], %7 {strides = array<i32>} : memref<1x16x16xf32, #tpu.memory_space<vmem>>, vector<1x16x16xf32>,
    %c0_11 = arith.constant 0 : index
    %c0_12 = arith.constant 0 : index
    %c0_13 = arith.constant 0 : index
    %9 = vector.load %arg6[%c0_11, %c0_12, %c0_13] : memref<1x16x16xf32, #tpu.memory_space<vmem>>, vector<1x16x16xf32>
    %10 = arith.maximumf %9, %2 : vector<1x16x16xf32>
    %c0_14 = arith.constant 0 : index
    %c0_15 = arith.constant 0 : index
    %c0_16 = arith.constant 0 : index
    %11 = vector.load %arg6[%c0_14, %c0_15, %c0_16] : memref<1x16x16xf32, #tpu.memory_space<vmem>>, vector<1x16x16xf32>
    tpu.vector_store %arg6[%c0_14, %c0_15, %c0_16], %10 {strides = array<i32>} : memref<1x16x16xf32, #tpu.memory_space<vmem>>, vector<1x16x16xf32>,
    %c3_i32 = arith.constant 3 : i32
    %12 = arith.cmpi eq, %arg1, %c3_i32 : i32
    %13 = arith.extui %12 : i1 to i32
    %c0_i32_17 = arith.constant 0 : i32
    %14 = arith.cmpi ne, %13, %c0_i32_17 : i32
    scf.if %14 {
      %c0_18 = arith.constant 0 : index
      %c0_19 = arith.constant 0 : index
      %c0_20 = arith.constant 0 : index
      %15 = vector.load %arg5[%c0_18, %c0_19, %c0_20] : memref<1x16x16xf32, #tpu.memory_space<vmem>>, vector<1x16x16xf32>
      %c0_21 = arith.constant 0 : index
      %c0_22 = arith.constant 0 : index
      %c0_23 = arith.constant 0 : index
      %16 = vector.load %arg6[%c0_21, %c0_22, %c0_23] : memref<1x16x16xf32, #tpu.memory_space<vmem>>, vector<1x16x16xf32>
      %cst_24 = arith.constant 0.000000e+00 : f32
      %17 = vector.broadcast %cst_24 : f32 to vector<1x3x16xf32>
      %18 = tpu.concatenate %17, %15, %17 in 1 : vector<1x3x16xf32>, vector<1x16x16xf32>, vector<1x3x16xf32> -> vector<1x22x16xf32>
      %cst_25 = arith.constant 0.000000e+00 : f32
      %19 = vector.broadcast %cst_25 : f32 to vector<1x22x3xf32>
      %20 = tpu.concatenate %19, %18, %19 in 2 : vector<1x22x3xf32>, vector<1x22x16xf32>, vector<1x22x3xf32> -> vector<1x22x22xf32>
      %cst_26 = arith.constant 0.000000e+00 : f32
      %21 = vector.broadcast %cst_26 : f32 to vector<1x3x16xf32>
      %22 = tpu.concatenate %21, %16, %21 in 1 : vector<1x3x16xf32>, vector<1x16x16xf32>, vector<1x3x16xf32> -> vector<1x22x16xf32>
      %cst_27 = arith.constant 0.000000e+00 : f32
      %23 = vector.broadcast %cst_27 : f32 to vector<1x22x3xf32>
      %24 = tpu.concatenate %23, %22, %23 in 2 : vector<1x22x3xf32>, vector<1x22x16xf32>, vector<1x22x3xf32> -> vector<1x22x22xf32>
      %cst_28 = arith.constant 0.000000e+00 : f32
      %25 = vector.broadcast %cst_28 : f32 to vector<1x16x16xf32>
      %c0_29 = arith.constant 0 : index
      %26 = memref.load %arg2[%c0_29] : memref<98xf32, #tpu.memory_space<smem>>
      %c49 = arith.constant 49 : index
      %27 = memref.load %arg2[%c49] : memref<98xf32, #tpu.memory_space<smem>>
      %28 = vector.extract_strided_slice %20 {offsets = [0, 0, 0], sizes = [1, 16, 16], strides = [1, 1, 1]} : vector<1x22x22xf32> to vector<1x16x16xf32>
      %29 = vector.broadcast %26 : f32 to vector<1x16x16xf32>
      %30 = arith.mulf %29, %28 : vector<1x16x16xf32>
      %31 = arith.addf %25, %30 : vector<1x16x16xf32>
      %32 = vector.extract_strided_slice %24 {offsets = [0, 0, 0], sizes = [1, 16, 16], strides = [1, 1, 1]} : vector<1x22x22xf32> to vector<1x16x16xf32>
      %33 = vector.broadcast %27 : f32 to vector<1x16x16xf32>
      %34 = arith.mulf %33, %32 : vector<1x16x16xf32>
      %35 = arith.addf %31, %34 : vector<1x16x16xf32>
      %c1 = arith.constant 1 : index
      %36 = memref.load %arg2[%c1] : memref<98xf32, #tpu.memory_space<smem>>
      %c50 = arith.constant 50 : index
      %37 = memref.load %arg2[%c50] : memref<98xf32, #tpu.memory_space<smem>>
      %38 = vector.extract_strided_slice %20 {offsets = [0, 0, 1], sizes = [1, 16, 16], strides = [1, 1, 1]} : vector<1x22x22xf32> to vector<1x16x16xf32>
      %39 = vector.broadcast %36 : f32 to vector<1x16x16xf32>
      %40 = arith.mulf %39, %38 : vector<1x16x16xf32>
      %41 = arith.addf %35, %40 : vector<1x16x16xf32>
      %42 = vector.extract_strided_slice %24 {offsets = [0, 0, 1], sizes = [1, 16, 16], strides = [1, 1, 1]} : vector<1x22x22xf32> to vector<1x16x16xf32>
      %43 = vector.broadcast %37 : f32 to vector<1x16x16xf32>
      %44 = arith.mulf %43, %42 : vector<1x16x16xf32>
      %45 = arith.addf %41, %44 : vector<1x16x16xf32>
      %c2 = arith.constant 2 : index
      %46 = memref.load %arg2[%c2] : memref<98xf32, #tpu.memory_space<smem>>
      %c51 = arith.constant 51 : index
      %47 = memref.load %arg2[%c51] : memref<98xf32, #tpu.memory_space<smem>>
      %48 = vector.extract_strided_slice %20 {offsets = [0, 0, 2], sizes = [1, 16, 16], strides = [1, 1, 1]} : vector<1x22x22xf32> to vector<1x16x16xf32>
      %49 = vector.broadcast %46 : f32 to vector<1x16x16xf32>
      %50 = arith.mulf %49, %48 : vector<1x16x16xf32>
      %51 = arith.addf %45, %50 : vector<1x16x16xf32>
      %52 = vector.extract_strided_slice %24 {offsets = [0, 0, 2], sizes = [1, 16, 16], strides = [1, 1, 1]} : vector<1x22x22xf32> to vector<1x16x16xf32>
      %53 = vector.broadcast %47 : f32 to vector<1x16x16xf32>
      %54 = arith.mulf %53, %52 : vector<1x16x16xf32>
      %55 = arith.addf %51, %54 : vector<1x16x16xf32>
      %c3 = arith.constant 3 : index
      %56 = memref.load %arg2[%c3] : memref<98xf32, #tpu.memory_space<smem>>
      %c52 = arith.constant 52 : index
      %57 = memref.load %arg2[%c52] : memref<98xf32, #tpu.memory_space<smem>>
      %58 = vector.extract_strided_slice %20 {offsets = [0, 0, 3], sizes = [1, 16, 16], strides = [1, 1, 1]} : vector<1x22x22xf32> to vector<1x16x16xf32>
      %59 = vector.broadcast %56 : f32 to vector<1x16x16xf32>
      %60 = arith.mulf %59, %58 : vector<1x16x16xf32>
      %61 = arith.addf %55, %60 : vector<1x16x16xf32>
      %62 = vector.extract_strided_slice %24 {offsets = [0, 0, 3], sizes = [1, 16, 16], strides = [1, 1, 1]} : vector<1x22x22xf32> to vector<1x16x16xf32>
      %63 = vector.broadcast %57 : f32 to vector<1x16x16xf32>
      %64 = arith.mulf %63, %62 : vector<1x16x16xf32>
      %65 = arith.addf %61, %64 : vector<1x16x16xf32>
      %c4 = arith.constant 4 : index
      %66 = memref.load %arg2[%c4] : memref<98xf32, #tpu.memory_space<smem>>
      %c53 = arith.constant 53 : index
      %67 = memref.load %arg2[%c53] : memref<98xf32, #tpu.memory_space<smem>>
      %68 = vector.extract_strided_slice %20 {offsets = [0, 0, 4], sizes = [1, 16, 16], strides = [1, 1, 1]} : vector<1x22x22xf32> to vector<1x16x16xf32>
      %69 = vector.broadcast %66 : f32 to vector<1x16x16xf32>
      %70 = arith.mulf %69, %68 : vector<1x16x16xf32>
      %71 = arith.addf %65, %70 : vector<1x16x16xf32>
      %72 = vector.extract_strided_slice %24 {offsets = [0, 0, 4], sizes = [1, 16, 16], strides = [1, 1, 1]} : vector<1x22x22xf32> to vector<1x16x16xf32>
      %73 = vector.broadcast %67 : f32 to vector<1x16x16xf32>
      %74 = arith.mulf %73, %72 : vector<1x16x16xf32>
      %75 = arith.addf %71, %74 : vector<1x16x16xf32>
      %c5 = arith.constant 5 : index
      %76 = memref.load %arg2[%c5] : memref<98xf32, #tpu.memory_space<smem>>
      %c54 = arith.constant 54 : index
      %77 = memref.load %arg2[%c54] : memref<98xf32, #tpu.memory_space<smem>>
      %78 = vector.extract_strided_slice %20 {offsets = [0, 0, 5], sizes = [1, 16, 16], strides = [1, 1, 1]} : vector<1x22x22xf32> to vector<1x16x16xf32>
      %79 = vector.broadcast %76 : f32 to vector<1x16x16xf32>
      %80 = arith.mulf %79, %78 : vector<1x16x16xf32>
      %81 = arith.addf %75, %80 : vector<1x16x16xf32>
      %82 = vector.extract_strided_slice %24 {offsets = [0, 0, 5], sizes = [1, 16, 16], strides = [1, 1, 1]} : vector<1x22x22xf32> to vector<1x16x16xf32>
      %83 = vector.broadcast %77 : f32 to vector<1x16x16xf32>
      %84 = arith.mulf %83, %82 : vector<1x16x16xf32>
      %85 = arith.addf %81, %84 : vector<1x16x16xf32>
      %c6 = arith.constant 6 : index
      %86 = memref.load %arg2[%c6] : memref<98xf32, #tpu.memory_space<smem>>
      %c55 = arith.constant 55 : index
      %87 = memref.load %arg2[%c55] : memref<98xf32, #tpu.memory_space<smem>>
      %88 = vector.extract_strided_slice %20 {offsets = [0, 0, 6], sizes = [1, 16, 16], strides = [1, 1, 1]} : vector<1x22x22xf32> to vector<1x16x16xf32>
      %89 = vector.broadcast %86 : f32 to vector<1x16x16xf32>
      %90 = arith.mulf %89, %88 : vector<1x16x16xf32>
      %91 = arith.addf %85, %90 : vector<1x16x16xf32>
      %92 = vector.extract_strided_slice %24 {offsets = [0, 0, 6], sizes = [1, 16, 16], strides = [1, 1, 1]} : vector<1x22x22xf32> to vector<1x16x16xf32>
      %93 = vector.broadcast %87 : f32 to vector<1x16x16xf32>
      %94 = arith.mulf %93, %92 : vector<1x16x16xf32>
      %95 = arith.addf %91, %94 : vector<1x16x16xf32>
      %c7 = arith.constant 7 : index
      %96 = memref.load %arg2[%c7] : memref<98xf32, #tpu.memory_space<smem>>
      %c56 = arith.constant 56 : index
      %97 = memref.load %arg2[%c56] : memref<98xf32, #tpu.memory_space<smem>>
      %98 = vector.extract_strided_slice %20 {offsets = [0, 1, 0], sizes = [1, 16, 16], strides = [1, 1, 1]} : vector<1x22x22xf32> to vector<1x16x16xf32>
      %99 = vector.broadcast %96 : f32 to vector<1x16x16xf32>
      %100 = arith.mulf %99, %98 : vector<1x16x16xf32>
      %101 = arith.addf %95, %100 : vector<1x16x16xf32>
      %102 = vector.extract_strided_slice %24 {offsets = [0, 1, 0], sizes = [1, 16, 16], strides = [1, 1, 1]} : vector<1x22x22xf32> to vector<1x16x16xf32>
      %103 = vector.broadcast %97 : f32 to vector<1x16x16xf32>
      %104 = arith.mulf %103, %102 : vector<1x16x16xf32>
      %105 = arith.addf %101, %104 : vector<1x16x16xf32>
      %c8 = arith.constant 8 : index
      %106 = memref.load %arg2[%c8] : memref<98xf32, #tpu.memory_space<smem>>
      %c57 = arith.constant 57 : index
      %107 = memref.load %arg2[%c57] : memref<98xf32, #tpu.memory_space<smem>>
      %108 = vector.extract_strided_slice %20 {offsets = [0, 1, 1], sizes = [1, 16, 16], strides = [1, 1, 1]} : vector<1x22x22xf32> to vector<1x16x16xf32>
      %109 = vector.broadcast %106 : f32 to vector<1x16x16xf32>
      %110 = arith.mulf %109, %108 : vector<1x16x16xf32>
      %111 = arith.addf %105, %110 : vector<1x16x16xf32>
      %112 = vector.extract_strided_slice %24 {offsets = [0, 1, 1], sizes = [1, 16, 16], strides = [1, 1, 1]} : vector<1x22x22xf32> to vector<1x16x16xf32>
      %113 = vector.broadcast %107 : f32 to vector<1x16x16xf32>
      %114 = arith.mulf %113, %112 : vector<1x16x16xf32>
      %115 = arith.addf %111, %114 : vector<1x16x16xf32>
      %c9 = arith.constant 9 : index
      %116 = memref.load %arg2[%c9] : memref<98xf32, #tpu.memory_space<smem>>
      %c58 = arith.constant 58 : index
      %117 = memref.load %arg2[%c58] : memref<98xf32, #tpu.memory_space<smem>>
      %118 = vector.extract_strided_slice %20 {offsets = [0, 1, 2], sizes = [1, 16, 16], strides = [1, 1, 1]} : vector<1x22x22xf32> to vector<1x16x16xf32>
      %119 = vector.broadcast %116 : f32 to vector<1x16x16xf32>
      %120 = arith.mulf %119, %118 : vector<1x16x16xf32>
      %121 = arith.addf %115, %120 : vector<1x16x16xf32>
      %122 = vector.extract_strided_slice %24 {offsets = [0, 1, 2], sizes = [1, 16, 16], strides = [1, 1, 1]} : vector<1x22x22xf32> to vector<1x16x16xf32>
      %123 = vector.broadcast %117 : f32 to vector<1x16x16xf32>
      %124 = arith.mulf %123, %122 : vector<1x16x16xf32>
      %125 = arith.addf %121, %124 : vector<1x16x16xf32>
      %c10 = arith.constant 10 : index
      %126 = memref.load %arg2[%c10] : memref<98xf32, #tpu.memory_space<smem>>
      %c59 = arith.constant 59 : index
      %127 = memref.load %arg2[%c59] : memref<98xf32, #tpu.memory_space<smem>>
      %128 = vector.extract_strided_slice %20 {offsets = [0, 1, 3], sizes = [1, 16, 16], strides = [1, 1, 1]} : vector<1x22x22xf32> to vector<1x16x16xf32>
      %129 = vector.broadcast %126 : f32 to vector<1x16x16xf32>
      %130 = arith.mulf %129, %128 : vector<1x16x16xf32>
      %131 = arith.addf %125, %130 : vector<1x16x16xf32>
      %132 = vector.extract_strided_slice %24 {offsets = [0, 1, 3], sizes = [1, 16, 16], strides = [1, 1, 1]} : vector<1x22x22xf32> to vector<1x16x16xf32>
      %133 = vector.broadcast %127 : f32 to vector<1x16x16xf32>
      %134 = arith.mulf %133, %132 : vector<1x16x16xf32>
      %135 = arith.addf %131, %134 : vector<1x16x16xf32>
      %c11 = arith.constant 11 : index
      %136 = memref.load %arg2[%c11] : memref<98xf32, #tpu.memory_space<smem>>
      %c60 = arith.constant 60 : index
      %137 = memref.load %arg2[%c60] : memref<98xf32, #tpu.memory_space<smem>>
      %138 = vector.extract_strided_slice %20 {offsets = [0, 1, 4], sizes = [1, 16, 16], strides = [1, 1, 1]} : vector<1x22x22xf32> to vector<1x16x16xf32>
      %139 = vector.broadcast %136 : f32 to vector<1x16x16xf32>
      %140 = arith.mulf %139, %138 : vector<1x16x16xf32>
      %141 = arith.addf %135, %140 : vector<1x16x16xf32>
      %142 = vector.extract_strided_slice %24 {offsets = [0, 1, 4], sizes = [1, 16, 16], strides = [1, 1, 1]} : vector<1x22x22xf32> to vector<1x16x16xf32>
      %143 = vector.broadcast %137 : f32 to vector<1x16x16xf32>
      %144 = arith.mulf %143, %142 : vector<1x16x16xf32>
      %145 = arith.addf %141, %144 : vector<1x16x16xf32>
      %c12 = arith.constant 12 : index
      %146 = memref.load %arg2[%c12] : memref<98xf32, #tpu.memory_space<smem>>
      %c61 = arith.constant 61 : index
      %147 = memref.load %arg2[%c61] : memref<98xf32, #tpu.memory_space<smem>>
      %148 = vector.extract_strided_slice %20 {offsets = [0, 1, 5], sizes = [1, 16, 16], strides = [1, 1, 1]} : vector<1x22x22xf32> to vector<1x16x16xf32>
      %149 = vector.broadcast %146 : f32 to vector<1x16x16xf32>
      %150 = arith.mulf %149, %148 : vector<1x16x16xf32>
      %151 = arith.addf %145, %150 : vector<1x16x16xf32>
      %152 = vector.extract_strided_slice %24 {offsets = [0, 1, 5], sizes = [1, 16, 16], strides = [1, 1, 1]} : vector<1x22x22xf32> to vector<1x16x16xf32>
      %153 = vector.broadcast %147 : f32 to vector<1x16x16xf32>
      %154 = arith.mulf %153, %152 : vector<1x16x16xf32>
      %155 = arith.addf %151, %154 : vector<1x16x16xf32>
      %c13 = arith.constant 13 : index
      %156 = memref.load %arg2[%c13] : memref<98xf32, #tpu.memory_space<smem>>
      %c62 = arith.constant 62 : index
      %157 = memref.load %arg2[%c62] : memref<98xf32, #tpu.memory_space<smem>>
      %158 = vector.extract_strided_slice %20 {offsets = [0, 1, 6], sizes = [1, 16, 16], strides = [1, 1, 1]} : vector<1x22x22xf32> to vector<1x16x16xf32>
      %159 = vector.broadcast %156 : f32 to vector<1x16x16xf32>
      %160 = arith.mulf %159, %158 : vector<1x16x16xf32>
      %161 = arith.addf %155, %160 : vector<1x16x16xf32>
      %162 = vector.extract_strided_slice %24 {offsets = [0, 1, 6], sizes = [1, 16, 16], strides = [1, 1, 1]} : vector<1x22x22xf32> to vector<1x16x16xf32>
      %163 = vector.broadcast %157 : f32 to vector<1x16x16xf32>
      %164 = arith.mulf %163, %162 : vector<1x16x16xf32>
      %165 = arith.addf %161, %164 : vector<1x16x16xf32>
      %c14 = arith.constant 14 : index
      %166 = memref.load %arg2[%c14] : memref<98xf32, #tpu.memory_space<smem>>
      %c63 = arith.constant 63 : index
      %167 = memref.load %arg2[%c63] : memref<98xf32, #tpu.memory_space<smem>>
      %168 = vector.extract_strided_slice %20 {offsets = [0, 2, 0], sizes = [1, 16, 16], strides = [1, 1, 1]} : vector<1x22x22xf32> to vector<1x16x16xf32>
      %169 = vector.broadcast %166 : f32 to vector<1x16x16xf32>
      %170 = arith.mulf %169, %168 : vector<1x16x16xf32>
      %171 = arith.addf %165, %170 : vector<1x16x16xf32>
      %172 = vector.extract_strided_slice %24 {offsets = [0, 2, 0], sizes = [1, 16, 16], strides = [1, 1, 1]} : vector<1x22x22xf32> to vector<1x16x16xf32>
      %173 = vector.broadcast %167 : f32 to vector<1x16x16xf32>
      %174 = arith.mulf %173, %172 : vector<1x16x16xf32>
      %175 = arith.addf %171, %174 : vector<1x16x16xf32>
      %c15 = arith.constant 15 : index
      %176 = memref.load %arg2[%c15] : memref<98xf32, #tpu.memory_space<smem>>
      %c64 = arith.constant 64 : index
      %177 = memref.load %arg2[%c64] : memref<98xf32, #tpu.memory_space<smem>>
      %178 = vector.extract_strided_slice %20 {offsets = [0, 2, 1], sizes = [1, 16, 16], strides = [1, 1, 1]} : vector<1x22x22xf32> to vector<1x16x16xf32>
      %179 = vector.broadcast %176 : f32 to vector<1x16x16xf32>
      %180 = arith.mulf %179, %178 : vector<1x16x16xf32>
      %181 = arith.addf %175, %180 : vector<1x16x16xf32>
      %182 = vector.extract_strided_slice %24 {offsets = [0, 2, 1], sizes = [1, 16, 16], strides = [1, 1, 1]} : vector<1x22x22xf32> to vector<1x16x16xf32>
      %183 = vector.broadcast %177 : f32 to vector<1x16x16xf32>
      %184 = arith.mulf %183, %182 : vector<1x16x16xf32>
      %185 = arith.addf %181, %184 : vector<1x16x16xf32>
      %c16 = arith.constant 16 : index
      %186 = memref.load %arg2[%c16] : memref<98xf32, #tpu.memory_space<smem>>
      %c65 = arith.constant 65 : index
      %187 = memref.load %arg2[%c65] : memref<98xf32, #tpu.memory_space<smem>>
      %188 = vector.extract_strided_slice %20 {offsets = [0, 2, 2], sizes = [1, 16, 16], strides = [1, 1, 1]} : vector<1x22x22xf32> to vector<1x16x16xf32>
      %189 = vector.broadcast %186 : f32 to vector<1x16x16xf32>
      %190 = arith.mulf %189, %188 : vector<1x16x16xf32>
      %191 = arith.addf %185, %190 : vector<1x16x16xf32>
      %192 = vector.extract_strided_slice %24 {offsets = [0, 2, 2], sizes = [1, 16, 16], strides = [1, 1, 1]} : vector<1x22x22xf32> to vector<1x16x16xf32>
      %193 = vector.broadcast %187 : f32 to vector<1x16x16xf32>
      %194 = arith.mulf %193, %192 : vector<1x16x16xf32>
      %195 = arith.addf %191, %194 : vector<1x16x16xf32>
      %c17 = arith.constant 17 : index
      %196 = memref.load %arg2[%c17] : memref<98xf32, #tpu.memory_space<smem>>
      %c66 = arith.constant 66 : index
      %197 = memref.load %arg2[%c66] : memref<98xf32, #tpu.memory_space<smem>>
      %198 = vector.extract_strided_slice %20 {offsets = [0, 2, 3], sizes = [1, 16, 16], strides = [1, 1, 1]} : vector<1x22x22xf32> to vector<1x16x16xf32>
      %199 = vector.broadcast %196 : f32 to vector<1x16x16xf32>
      %200 = arith.mulf %199, %198 : vector<1x16x16xf32>
      %201 = arith.addf %195, %200 : vector<1x16x16xf32>
      %202 = vector.extract_strided_slice %24 {offsets = [0, 2, 3], sizes = [1, 16, 16], strides = [1, 1, 1]} : vector<1x22x22xf32> to vector<1x16x16xf32>
      %203 = vector.broadcast %197 : f32 to vector<1x16x16xf32>
      %204 = arith.mulf %203, %202 : vector<1x16x16xf32>
      %205 = arith.addf %201, %204 : vector<1x16x16xf32>
      %c18 = arith.constant 18 : index
      %206 = memref.load %arg2[%c18] : memref<98xf32, #tpu.memory_space<smem>>
      %c67 = arith.constant 67 : index
      %207 = memref.load %arg2[%c67] : memref<98xf32, #tpu.memory_space<smem>>
      %208 = vector.extract_strided_slice %20 {offsets = [0, 2, 4], sizes = [1, 16, 16], strides = [1, 1, 1]} : vector<1x22x22xf32> to vector<1x16x16xf32>
      %209 = vector.broadcast %206 : f32 to vector<1x16x16xf32>
      %210 = arith.mulf %209, %208 : vector<1x16x16xf32>
      %211 = arith.addf %205, %210 : vector<1x16x16xf32>
      %212 = vector.extract_strided_slice %24 {offsets = [0, 2, 4], sizes = [1, 16, 16], strides = [1, 1, 1]} : vector<1x22x22xf32> to vector<1x16x16xf32>
      %213 = vector.broadcast %207 : f32 to vector<1x16x16xf32>
      %214 = arith.mulf %213, %212 : vector<1x16x16xf32>
      %215 = arith.addf %211, %214 : vector<1x16x16xf32>
      %c19 = arith.constant 19 : index
      %216 = memref.load %arg2[%c19] : memref<98xf32, #tpu.memory_space<smem>>
      %c68 = arith.constant 68 : index
      %217 = memref.load %arg2[%c68] : memref<98xf32, #tpu.memory_space<smem>>
      %218 = vector.extract_strided_slice %20 {offsets = [0, 2, 5], sizes = [1, 16, 16], strides = [1, 1, 1]} : vector<1x22x22xf32> to vector<1x16x16xf32>
      %219 = vector.broadcast %216 : f32 to vector<1x16x16xf32>
      %220 = arith.mulf %219, %218 : vector<1x16x16xf32>
      %221 = arith.addf %215, %220 : vector<1x16x16xf32>
      %222 = vector.extract_strided_slice %24 {offsets = [0, 2, 5], sizes = [1, 16, 16], strides = [1, 1, 1]} : vector<1x22x22xf32> to vector<1x16x16xf32>
      %223 = vector.broadcast %217 : f32 to vector<1x16x16xf32>
      %224 = arith.mulf %223, %222 : vector<1x16x16xf32>
      %225 = arith.addf %221, %224 : vector<1x16x16xf32>
      %c20 = arith.constant 20 : index
      %226 = memref.load %arg2[%c20] : memref<98xf32, #tpu.memory_space<smem>>
      %c69 = arith.constant 69 : index
      %227 = memref.load %arg2[%c69] : memref<98xf32, #tpu.memory_space<smem>>
      %228 = vector.extract_strided_slice %20 {offsets = [0, 2, 6], sizes = [1, 16, 16], strides = [1, 1, 1]} : vector<1x22x22xf32> to vector<1x16x16xf32>
      %229 = vector.broadcast %226 : f32 to vector<1x16x16xf32>
      %230 = arith.mulf %229, %228 : vector<1x16x16xf32>
      %231 = arith.addf %225, %230 : vector<1x16x16xf32>
      %232 = vector.extract_strided_slice %24 {offsets = [0, 2, 6], sizes = [1, 16, 16], strides = [1, 1, 1]} : vector<1x22x22xf32> to vector<1x16x16xf32>
      %233 = vector.broadcast %227 : f32 to vector<1x16x16xf32>
      %234 = arith.mulf %233, %232 : vector<1x16x16xf32>
      %235 = arith.addf %231, %234 : vector<1x16x16xf32>
      %c21 = arith.constant 21 : index
      %236 = memref.load %arg2[%c21] : memref<98xf32, #tpu.memory_space<smem>>
      %c70 = arith.constant 70 : index
      %237 = memref.load %arg2[%c70] : memref<98xf32, #tpu.memory_space<smem>>
      %238 = vector.extract_strided_slice %20 {offsets = [0, 3, 0], sizes = [1, 16, 16], strides = [1, 1, 1]} : vector<1x22x22xf32> to vector<1x16x16xf32>
      %239 = vector.broadcast %236 : f32 to vector<1x16x16xf32>
      %240 = arith.mulf %239, %238 : vector<1x16x16xf32>
      %241 = arith.addf %235, %240 : vector<1x16x16xf32>
      %242 = vector.extract_strided_slice %24 {offsets = [0, 3, 0], sizes = [1, 16, 16], strides = [1, 1, 1]} : vector<1x22x22xf32> to vector<1x16x16xf32>
      %243 = vector.broadcast %237 : f32 to vector<1x16x16xf32>
      %244 = arith.mulf %243, %242 : vector<1x16x16xf32>
      %245 = arith.addf %241, %244 : vector<1x16x16xf32>
      %c22 = arith.constant 22 : index
      %246 = memref.load %arg2[%c22] : memref<98xf32, #tpu.memory_space<smem>>
      %c71 = arith.constant 71 : index
      %247 = memref.load %arg2[%c71] : memref<98xf32, #tpu.memory_space<smem>>
      %248 = vector.extract_strided_slice %20 {offsets = [0, 3, 1], sizes = [1, 16, 16], strides = [1, 1, 1]} : vector<1x22x22xf32> to vector<1x16x16xf32>
      %249 = vector.broadcast %246 : f32 to vector<1x16x16xf32>
      %250 = arith.mulf %249, %248 : vector<1x16x16xf32>
      %251 = arith.addf %245, %250 : vector<1x16x16xf32>
      %252 = vector.extract_strided_slice %24 {offsets = [0, 3, 1], sizes = [1, 16, 16], strides = [1, 1, 1]} : vector<1x22x22xf32> to vector<1x16x16xf32>
      %253 = vector.broadcast %247 : f32 to vector<1x16x16xf32>
      %254 = arith.mulf %253, %252 : vector<1x16x16xf32>
      %255 = arith.addf %251, %254 : vector<1x16x16xf32>
      %c23 = arith.constant 23 : index
      %256 = memref.load %arg2[%c23] : memref<98xf32, #tpu.memory_space<smem>>
      %c72 = arith.constant 72 : index
      %257 = memref.load %arg2[%c72] : memref<98xf32, #tpu.memory_space<smem>>
      %258 = vector.extract_strided_slice %20 {offsets = [0, 3, 2], sizes = [1, 16, 16], strides = [1, 1, 1]} : vector<1x22x22xf32> to vector<1x16x16xf32>
      %259 = vector.broadcast %256 : f32 to vector<1x16x16xf32>
      %260 = arith.mulf %259, %258 : vector<1x16x16xf32>
      %261 = arith.addf %255, %260 : vector<1x16x16xf32>
      %262 = vector.extract_strided_slice %24 {offsets = [0, 3, 2], sizes = [1, 16, 16], strides = [1, 1, 1]} : vector<1x22x22xf32> to vector<1x16x16xf32>
      %263 = vector.broadcast %257 : f32 to vector<1x16x16xf32>
      %264 = arith.mulf %263, %262 : vector<1x16x16xf32>
      %265 = arith.addf %261, %264 : vector<1x16x16xf32>
      %c24 = arith.constant 24 : index
      %266 = memref.load %arg2[%c24] : memref<98xf32, #tpu.memory_space<smem>>
      %c73 = arith.constant 73 : index
      %267 = memref.load %arg2[%c73] : memref<98xf32, #tpu.memory_space<smem>>
      %268 = vector.extract_strided_slice %20 {offsets = [0, 3, 3], sizes = [1, 16, 16], strides = [1, 1, 1]} : vector<1x22x22xf32> to vector<1x16x16xf32>
      %269 = vector.broadcast %266 : f32 to vector<1x16x16xf32>
      %270 = arith.mulf %269, %268 : vector<1x16x16xf32>
      %271 = arith.addf %265, %270 : vector<1x16x16xf32>
      %272 = vector.extract_strided_slice %24 {offsets = [0, 3, 3], sizes = [1, 16, 16], strides = [1, 1, 1]} : vector<1x22x22xf32> to vector<1x16x16xf32>
      %273 = vector.broadcast %267 : f32 to vector<1x16x16xf32>
      %274 = arith.mulf %273, %272 : vector<1x16x16xf32>
      %275 = arith.addf %271, %274 : vector<1x16x16xf32>
      %c25 = arith.constant 25 : index
      %276 = memref.load %arg2[%c25] : memref<98xf32, #tpu.memory_space<smem>>
      %c74 = arith.constant 74 : index
      %277 = memref.load %arg2[%c74] : memref<98xf32, #tpu.memory_space<smem>>
      %278 = vector.extract_strided_slice %20 {offsets = [0, 3, 4], sizes = [1, 16, 16], strides = [1, 1, 1]} : vector<1x22x22xf32> to vector<1x16x16xf32>
      %279 = vector.broadcast %276 : f32 to vector<1x16x16xf32>
      %280 = arith.mulf %279, %278 : vector<1x16x16xf32>
      %281 = arith.addf %275, %280 : vector<1x16x16xf32>
      %282 = vector.extract_strided_slice %24 {offsets = [0, 3, 4], sizes = [1, 16, 16], strides = [1, 1, 1]} : vector<1x22x22xf32> to vector<1x16x16xf32>
      %283 = vector.broadcast %277 : f32 to vector<1x16x16xf32>
      %284 = arith.mulf %283, %282 : vector<1x16x16xf32>
      %285 = arith.addf %281, %284 : vector<1x16x16xf32>
      %c26 = arith.constant 26 : index
      %286 = memref.load %arg2[%c26] : memref<98xf32, #tpu.memory_space<smem>>
      %c75 = arith.constant 75 : index
      %287 = memref.load %arg2[%c75] : memref<98xf32, #tpu.memory_space<smem>>
      %288 = vector.extract_strided_slice %20 {offsets = [0, 3, 5], sizes = [1, 16, 16], strides = [1, 1, 1]} : vector<1x22x22xf32> to vector<1x16x16xf32>
      %289 = vector.broadcast %286 : f32 to vector<1x16x16xf32>
      %290 = arith.mulf %289, %288 : vector<1x16x16xf32>
      %291 = arith.addf %285, %290 : vector<1x16x16xf32>
      %292 = vector.extract_strided_slice %24 {offsets = [0, 3, 5], sizes = [1, 16, 16], strides = [1, 1, 1]} : vector<1x22x22xf32> to vector<1x16x16xf32>
      %293 = vector.broadcast %287 : f32 to vector<1x16x16xf32>
      %294 = arith.mulf %293, %292 : vector<1x16x16xf32>
      %295 = arith.addf %291, %294 : vector<1x16x16xf32>
      %c27 = arith.constant 27 : index
      %296 = memref.load %arg2[%c27] : memref<98xf32, #tpu.memory_space<smem>>
      %c76 = arith.constant 76 : index
      %297 = memref.load %arg2[%c76] : memref<98xf32, #tpu.memory_space<smem>>
      %298 = vector.extract_strided_slice %20 {offsets = [0, 3, 6], sizes = [1, 16, 16], strides = [1, 1, 1]} : vector<1x22x22xf32> to vector<1x16x16xf32>
      %299 = vector.broadcast %296 : f32 to vector<1x16x16xf32>
      %300 = arith.mulf %299, %298 : vector<1x16x16xf32>
      %301 = arith.addf %295, %300 : vector<1x16x16xf32>
      %302 = vector.extract_strided_slice %24 {offsets = [0, 3, 6], sizes = [1, 16, 16], strides = [1, 1, 1]} : vector<1x22x22xf32> to vector<1x16x16xf32>
      %303 = vector.broadcast %297 : f32 to vector<1x16x16xf32>
      %304 = arith.mulf %303, %302 : vector<1x16x16xf32>
      %305 = arith.addf %301, %304 : vector<1x16x16xf32>
      %c28 = arith.constant 28 : index
      %306 = memref.load %arg2[%c28] : memref<98xf32, #tpu.memory_space<smem>>
      %c77 = arith.constant 77 : index
      %307 = memref.load %arg2[%c77] : memref<98xf32, #tpu.memory_space<smem>>
      %308 = vector.extract_strided_slice %20 {offsets = [0, 4, 0], sizes = [1, 16, 16], strides = [1, 1, 1]} : vector<1x22x22xf32> to vector<1x16x16xf32>
      %309 = vector.broadcast %306 : f32 to vector<1x16x16xf32>
      %310 = arith.mulf %309, %308 : vector<1x16x16xf32>
      %311 = arith.addf %305, %310 : vector<1x16x16xf32>
      %312 = vector.extract_strided_slice %24 {offsets = [0, 4, 0], sizes = [1, 16, 16], strides = [1, 1, 1]} : vector<1x22x22xf32> to vector<1x16x16xf32>
      %313 = vector.broadcast %307 : f32 to vector<1x16x16xf32>
      %314 = arith.mulf %313, %312 : vector<1x16x16xf32>
      %315 = arith.addf %311, %314 : vector<1x16x16xf32>
      %c29 = arith.constant 29 : index
      %316 = memref.load %arg2[%c29] : memref<98xf32, #tpu.memory_space<smem>>
      %c78 = arith.constant 78 : index
      %317 = memref.load %arg2[%c78] : memref<98xf32, #tpu.memory_space<smem>>
      %318 = vector.extract_strided_slice %20 {offsets = [0, 4, 1], sizes = [1, 16, 16], strides = [1, 1, 1]} : vector<1x22x22xf32> to vector<1x16x16xf32>
      %319 = vector.broadcast %316 : f32 to vector<1x16x16xf32>
      %320 = arith.mulf %319, %318 : vector<1x16x16xf32>
      %321 = arith.addf %315, %320 : vector<1x16x16xf32>
      %322 = vector.extract_strided_slice %24 {offsets = [0, 4, 1], sizes = [1, 16, 16], strides = [1, 1, 1]} : vector<1x22x22xf32> to vector<1x16x16xf32>
      %323 = vector.broadcast %317 : f32 to vector<1x16x16xf32>
      %324 = arith.mulf %323, %322 : vector<1x16x16xf32>
      %325 = arith.addf %321, %324 : vector<1x16x16xf32>
      %c30 = arith.constant 30 : index
      %326 = memref.load %arg2[%c30] : memref<98xf32, #tpu.memory_space<smem>>
      %c79 = arith.constant 79 : index
      %327 = memref.load %arg2[%c79] : memref<98xf32, #tpu.memory_space<smem>>
      %328 = vector.extract_strided_slice %20 {offsets = [0, 4, 2], sizes = [1, 16, 16], strides = [1, 1, 1]} : vector<1x22x22xf32> to vector<1x16x16xf32>
      %329 = vector.broadcast %326 : f32 to vector<1x16x16xf32>
      %330 = arith.mulf %329, %328 : vector<1x16x16xf32>
      %331 = arith.addf %325, %330 : vector<1x16x16xf32>
      %332 = vector.extract_strided_slice %24 {offsets = [0, 4, 2], sizes = [1, 16, 16], strides = [1, 1, 1]} : vector<1x22x22xf32> to vector<1x16x16xf32>
      %333 = vector.broadcast %327 : f32 to vector<1x16x16xf32>
      %334 = arith.mulf %333, %332 : vector<1x16x16xf32>
      %335 = arith.addf %331, %334 : vector<1x16x16xf32>
      %c31 = arith.constant 31 : index
      %336 = memref.load %arg2[%c31] : memref<98xf32, #tpu.memory_space<smem>>
      %c80 = arith.constant 80 : index
      %337 = memref.load %arg2[%c80] : memref<98xf32, #tpu.memory_space<smem>>
      %338 = vector.extract_strided_slice %20 {offsets = [0, 4, 3], sizes = [1, 16, 16], strides = [1, 1, 1]} : vector<1x22x22xf32> to vector<1x16x16xf32>
      %339 = vector.broadcast %336 : f32 to vector<1x16x16xf32>
      %340 = arith.mulf %339, %338 : vector<1x16x16xf32>
      %341 = arith.addf %335, %340 : vector<1x16x16xf32>
      %342 = vector.extract_strided_slice %24 {offsets = [0, 4, 3], sizes = [1, 16, 16], strides = [1, 1, 1]} : vector<1x22x22xf32> to vector<1x16x16xf32>
      %343 = vector.broadcast %337 : f32 to vector<1x16x16xf32>
      %344 = arith.mulf %343, %342 : vector<1x16x16xf32>
      %345 = arith.addf %341, %344 : vector<1x16x16xf32>
      %c32 = arith.constant 32 : index
      %346 = memref.load %arg2[%c32] : memref<98xf32, #tpu.memory_space<smem>>
      %c81 = arith.constant 81 : index
      %347 = memref.load %arg2[%c81] : memref<98xf32, #tpu.memory_space<smem>>
      %348 = vector.extract_strided_slice %20 {offsets = [0, 4, 4], sizes = [1, 16, 16], strides = [1, 1, 1]} : vector<1x22x22xf32> to vector<1x16x16xf32>
      %349 = vector.broadcast %346 : f32 to vector<1x16x16xf32>
      %350 = arith.mulf %349, %348 : vector<1x16x16xf32>
      %351 = arith.addf %345, %350 : vector<1x16x16xf32>
      %352 = vector.extract_strided_slice %24 {offsets = [0, 4, 4], sizes = [1, 16, 16], strides = [1, 1, 1]} : vector<1x22x22xf32> to vector<1x16x16xf32>
      %353 = vector.broadcast %347 : f32 to vector<1x16x16xf32>
      %354 = arith.mulf %353, %352 : vector<1x16x16xf32>
      %355 = arith.addf %351, %354 : vector<1x16x16xf32>
      %c33 = arith.constant 33 : index
      %356 = memref.load %arg2[%c33] : memref<98xf32, #tpu.memory_space<smem>>
      %c82 = arith.constant 82 : index
      %357 = memref.load %arg2[%c82] : memref<98xf32, #tpu.memory_space<smem>>
      %358 = vector.extract_strided_slice %20 {offsets = [0, 4, 5], sizes = [1, 16, 16], strides = [1, 1, 1]} : vector<1x22x22xf32> to vector<1x16x16xf32>
      %359 = vector.broadcast %356 : f32 to vector<1x16x16xf32>
      %360 = arith.mulf %359, %358 : vector<1x16x16xf32>
      %361 = arith.addf %355, %360 : vector<1x16x16xf32>
      %362 = vector.extract_strided_slice %24 {offsets = [0, 4, 5], sizes = [1, 16, 16], strides = [1, 1, 1]} : vector<1x22x22xf32> to vector<1x16x16xf32>
      %363 = vector.broadcast %357 : f32 to vector<1x16x16xf32>
      %364 = arith.mulf %363, %362 : vector<1x16x16xf32>
      %365 = arith.addf %361, %364 : vector<1x16x16xf32>
      %c34 = arith.constant 34 : index
      %366 = memref.load %arg2[%c34] : memref<98xf32, #tpu.memory_space<smem>>
      %c83 = arith.constant 83 : index
      %367 = memref.load %arg2[%c83] : memref<98xf32, #tpu.memory_space<smem>>
      %368 = vector.extract_strided_slice %20 {offsets = [0, 4, 6], sizes = [1, 16, 16], strides = [1, 1, 1]} : vector<1x22x22xf32> to vector<1x16x16xf32>
      %369 = vector.broadcast %366 : f32 to vector<1x16x16xf32>
      %370 = arith.mulf %369, %368 : vector<1x16x16xf32>
      %371 = arith.addf %365, %370 : vector<1x16x16xf32>
      %372 = vector.extract_strided_slice %24 {offsets = [0, 4, 6], sizes = [1, 16, 16], strides = [1, 1, 1]} : vector<1x22x22xf32> to vector<1x16x16xf32>
      %373 = vector.broadcast %367 : f32 to vector<1x16x16xf32>
      %374 = arith.mulf %373, %372 : vector<1x16x16xf32>
      %375 = arith.addf %371, %374 : vector<1x16x16xf32>
      %c35 = arith.constant 35 : index
      %376 = memref.load %arg2[%c35] : memref<98xf32, #tpu.memory_space<smem>>
      %c84 = arith.constant 84 : index
      %377 = memref.load %arg2[%c84] : memref<98xf32, #tpu.memory_space<smem>>
      %378 = vector.extract_strided_slice %20 {offsets = [0, 5, 0], sizes = [1, 16, 16], strides = [1, 1, 1]} : vector<1x22x22xf32> to vector<1x16x16xf32>
      %379 = vector.broadcast %376 : f32 to vector<1x16x16xf32>
      %380 = arith.mulf %379, %378 : vector<1x16x16xf32>
      %381 = arith.addf %375, %380 : vector<1x16x16xf32>
      %382 = vector.extract_strided_slice %24 {offsets = [0, 5, 0], sizes = [1, 16, 16], strides = [1, 1, 1]} : vector<1x22x22xf32> to vector<1x16x16xf32>
      %383 = vector.broadcast %377 : f32 to vector<1x16x16xf32>
      %384 = arith.mulf %383, %382 : vector<1x16x16xf32>
      %385 = arith.addf %381, %384 : vector<1x16x16xf32>
      %c36 = arith.constant 36 : index
      %386 = memref.load %arg2[%c36] : memref<98xf32, #tpu.memory_space<smem>>
      %c85 = arith.constant 85 : index
      %387 = memref.load %arg2[%c85] : memref<98xf32, #tpu.memory_space<smem>>
      %388 = vector.extract_strided_slice %20 {offsets = [0, 5, 1], sizes = [1, 16, 16], strides = [1, 1, 1]} : vector<1x22x22xf32> to vector<1x16x16xf32>
      %389 = vector.broadcast %386 : f32 to vector<1x16x16xf32>
      %390 = arith.mulf %389, %388 : vector<1x16x16xf32>
      %391 = arith.addf %385, %390 : vector<1x16x16xf32>
      %392 = vector.extract_strided_slice %24 {offsets = [0, 5, 1], sizes = [1, 16, 16], strides = [1, 1, 1]} : vector<1x22x22xf32> to vector<1x16x16xf32>
      %393 = vector.broadcast %387 : f32 to vector<1x16x16xf32>
      %394 = arith.mulf %393, %392 : vector<1x16x16xf32>
      %395 = arith.addf %391, %394 : vector<1x16x16xf32>
      %c37 = arith.constant 37 : index
      %396 = memref.load %arg2[%c37] : memref<98xf32, #tpu.memory_space<smem>>
      %c86 = arith.constant 86 : index
      %397 = memref.load %arg2[%c86] : memref<98xf32, #tpu.memory_space<smem>>
      %398 = vector.extract_strided_slice %20 {offsets = [0, 5, 2], sizes = [1, 16, 16], strides = [1, 1, 1]} : vector<1x22x22xf32> to vector<1x16x16xf32>
      %399 = vector.broadcast %396 : f32 to vector<1x16x16xf32>
      %400 = arith.mulf %399, %398 : vector<1x16x16xf32>
      %401 = arith.addf %395, %400 : vector<1x16x16xf32>
      %402 = vector.extract_strided_slice %24 {offsets = [0, 5, 2], sizes = [1, 16, 16], strides = [1, 1, 1]} : vector<1x22x22xf32> to vector<1x16x16xf32>
      %403 = vector.broadcast %397 : f32 to vector<1x16x16xf32>
      %404 = arith.mulf %403, %402 : vector<1x16x16xf32>
      %405 = arith.addf %401, %404 : vector<1x16x16xf32>
      %c38 = arith.constant 38 : index
      %406 = memref.load %arg2[%c38] : memref<98xf32, #tpu.memory_space<smem>>
      %c87 = arith.constant 87 : index
      %407 = memref.load %arg2[%c87] : memref<98xf32, #tpu.memory_space<smem>>
      %408 = vector.extract_strided_slice %20 {offsets = [0, 5, 3], sizes = [1, 16, 16], strides = [1, 1, 1]} : vector<1x22x22xf32> to vector<1x16x16xf32>
      %409 = vector.broadcast %406 : f32 to vector<1x16x16xf32>
      %410 = arith.mulf %409, %408 : vector<1x16x16xf32>
      %411 = arith.addf %405, %410 : vector<1x16x16xf32>
      %412 = vector.extract_strided_slice %24 {offsets = [0, 5, 3], sizes = [1, 16, 16], strides = [1, 1, 1]} : vector<1x22x22xf32> to vector<1x16x16xf32>
      %413 = vector.broadcast %407 : f32 to vector<1x16x16xf32>
      %414 = arith.mulf %413, %412 : vector<1x16x16xf32>
      %415 = arith.addf %411, %414 : vector<1x16x16xf32>
      %c39 = arith.constant 39 : index
      %416 = memref.load %arg2[%c39] : memref<98xf32, #tpu.memory_space<smem>>
      %c88 = arith.constant 88 : index
      %417 = memref.load %arg2[%c88] : memref<98xf32, #tpu.memory_space<smem>>
      %418 = vector.extract_strided_slice %20 {offsets = [0, 5, 4], sizes = [1, 16, 16], strides = [1, 1, 1]} : vector<1x22x22xf32> to vector<1x16x16xf32>
      %419 = vector.broadcast %416 : f32 to vector<1x16x16xf32>
      %420 = arith.mulf %419, %418 : vector<1x16x16xf32>
      %421 = arith.addf %415, %420 : vector<1x16x16xf32>
      %422 = vector.extract_strided_slice %24 {offsets = [0, 5, 4], sizes = [1, 16, 16], strides = [1, 1, 1]} : vector<1x22x22xf32> to vector<1x16x16xf32>
      %423 = vector.broadcast %417 : f32 to vector<1x16x16xf32>
      %424 = arith.mulf %423, %422 : vector<1x16x16xf32>
      %425 = arith.addf %421, %424 : vector<1x16x16xf32>
      %c40 = arith.constant 40 : index
      %426 = memref.load %arg2[%c40] : memref<98xf32, #tpu.memory_space<smem>>
      %c89 = arith.constant 89 : index
      %427 = memref.load %arg2[%c89] : memref<98xf32, #tpu.memory_space<smem>>
      %428 = vector.extract_strided_slice %20 {offsets = [0, 5, 5], sizes = [1, 16, 16], strides = [1, 1, 1]} : vector<1x22x22xf32> to vector<1x16x16xf32>
      %429 = vector.broadcast %426 : f32 to vector<1x16x16xf32>
      %430 = arith.mulf %429, %428 : vector<1x16x16xf32>
      %431 = arith.addf %425, %430 : vector<1x16x16xf32>
      %432 = vector.extract_strided_slice %24 {offsets = [0, 5, 5], sizes = [1, 16, 16], strides = [1, 1, 1]} : vector<1x22x22xf32> to vector<1x16x16xf32>
      %433 = vector.broadcast %427 : f32 to vector<1x16x16xf32>
      %434 = arith.mulf %433, %432 : vector<1x16x16xf32>
      %435 = arith.addf %431, %434 : vector<1x16x16xf32>
      %c41 = arith.constant 41 : index
      %436 = memref.load %arg2[%c41] : memref<98xf32, #tpu.memory_space<smem>>
      %c90 = arith.constant 90 : index
      %437 = memref.load %arg2[%c90] : memref<98xf32, #tpu.memory_space<smem>>
      %438 = vector.extract_strided_slice %20 {offsets = [0, 5, 6], sizes = [1, 16, 16], strides = [1, 1, 1]} : vector<1x22x22xf32> to vector<1x16x16xf32>
      %439 = vector.broadcast %436 : f32 to vector<1x16x16xf32>
      %440 = arith.mulf %439, %438 : vector<1x16x16xf32>
      %441 = arith.addf %435, %440 : vector<1x16x16xf32>
      %442 = vector.extract_strided_slice %24 {offsets = [0, 5, 6], sizes = [1, 16, 16], strides = [1, 1, 1]} : vector<1x22x22xf32> to vector<1x16x16xf32>
      %443 = vector.broadcast %437 : f32 to vector<1x16x16xf32>
      %444 = arith.mulf %443, %442 : vector<1x16x16xf32>
      %445 = arith.addf %441, %444 : vector<1x16x16xf32>
      %c42 = arith.constant 42 : index
      %446 = memref.load %arg2[%c42] : memref<98xf32, #tpu.memory_space<smem>>
      %c91 = arith.constant 91 : index
      %447 = memref.load %arg2[%c91] : memref<98xf32, #tpu.memory_space<smem>>
      %448 = vector.extract_strided_slice %20 {offsets = [0, 6, 0], sizes = [1, 16, 16], strides = [1, 1, 1]} : vector<1x22x22xf32> to vector<1x16x16xf32>
      %449 = vector.broadcast %446 : f32 to vector<1x16x16xf32>
      %450 = arith.mulf %449, %448 : vector<1x16x16xf32>
      %451 = arith.addf %445, %450 : vector<1x16x16xf32>
      %452 = vector.extract_strided_slice %24 {offsets = [0, 6, 0], sizes = [1, 16, 16], strides = [1, 1, 1]} : vector<1x22x22xf32> to vector<1x16x16xf32>
      %453 = vector.broadcast %447 : f32 to vector<1x16x16xf32>
      %454 = arith.mulf %453, %452 : vector<1x16x16xf32>
      %455 = arith.addf %451, %454 : vector<1x16x16xf32>
      %c43 = arith.constant 43 : index
      %456 = memref.load %arg2[%c43] : memref<98xf32, #tpu.memory_space<smem>>
      %c92 = arith.constant 92 : index
      %457 = memref.load %arg2[%c92] : memref<98xf32, #tpu.memory_space<smem>>
      %458 = vector.extract_strided_slice %20 {offsets = [0, 6, 1], sizes = [1, 16, 16], strides = [1, 1, 1]} : vector<1x22x22xf32> to vector<1x16x16xf32>
      %459 = vector.broadcast %456 : f32 to vector<1x16x16xf32>
      %460 = arith.mulf %459, %458 : vector<1x16x16xf32>
      %461 = arith.addf %455, %460 : vector<1x16x16xf32>
      %462 = vector.extract_strided_slice %24 {offsets = [0, 6, 1], sizes = [1, 16, 16], strides = [1, 1, 1]} : vector<1x22x22xf32> to vector<1x16x16xf32>
      %463 = vector.broadcast %457 : f32 to vector<1x16x16xf32>
      %464 = arith.mulf %463, %462 : vector<1x16x16xf32>
      %465 = arith.addf %461, %464 : vector<1x16x16xf32>
      %c44 = arith.constant 44 : index
      %466 = memref.load %arg2[%c44] : memref<98xf32, #tpu.memory_space<smem>>
      %c93 = arith.constant 93 : index
      %467 = memref.load %arg2[%c93] : memref<98xf32, #tpu.memory_space<smem>>
      %468 = vector.extract_strided_slice %20 {offsets = [0, 6, 2], sizes = [1, 16, 16], strides = [1, 1, 1]} : vector<1x22x22xf32> to vector<1x16x16xf32>
      %469 = vector.broadcast %466 : f32 to vector<1x16x16xf32>
      %470 = arith.mulf %469, %468 : vector<1x16x16xf32>
      %471 = arith.addf %465, %470 : vector<1x16x16xf32>
      %472 = vector.extract_strided_slice %24 {offsets = [0, 6, 2], sizes = [1, 16, 16], strides = [1, 1, 1]} : vector<1x22x22xf32> to vector<1x16x16xf32>
      %473 = vector.broadcast %467 : f32 to vector<1x16x16xf32>
      %474 = arith.mulf %473, %472 : vector<1x16x16xf32>
      %475 = arith.addf %471, %474 : vector<1x16x16xf32>
      %c45 = arith.constant 45 : index
      %476 = memref.load %arg2[%c45] : memref<98xf32, #tpu.memory_space<smem>>
      %c94 = arith.constant 94 : index
      %477 = memref.load %arg2[%c94] : memref<98xf32, #tpu.memory_space<smem>>
      %478 = vector.extract_strided_slice %20 {offsets = [0, 6, 3], sizes = [1, 16, 16], strides = [1, 1, 1]} : vector<1x22x22xf32> to vector<1x16x16xf32>
      %479 = vector.broadcast %476 : f32 to vector<1x16x16xf32>
      %480 = arith.mulf %479, %478 : vector<1x16x16xf32>
      %481 = arith.addf %475, %480 : vector<1x16x16xf32>
      %482 = vector.extract_strided_slice %24 {offsets = [0, 6, 3], sizes = [1, 16, 16], strides = [1, 1, 1]} : vector<1x22x22xf32> to vector<1x16x16xf32>
      %483 = vector.broadcast %477 : f32 to vector<1x16x16xf32>
      %484 = arith.mulf %483, %482 : vector<1x16x16xf32>
      %485 = arith.addf %481, %484 : vector<1x16x16xf32>
      %c46 = arith.constant 46 : index
      %486 = memref.load %arg2[%c46] : memref<98xf32, #tpu.memory_space<smem>>
      %c95 = arith.constant 95 : index
      %487 = memref.load %arg2[%c95] : memref<98xf32, #tpu.memory_space<smem>>
      %488 = vector.extract_strided_slice %20 {offsets = [0, 6, 4], sizes = [1, 16, 16], strides = [1, 1, 1]} : vector<1x22x22xf32> to vector<1x16x16xf32>
      %489 = vector.broadcast %486 : f32 to vector<1x16x16xf32>
      %490 = arith.mulf %489, %488 : vector<1x16x16xf32>
      %491 = arith.addf %485, %490 : vector<1x16x16xf32>
      %492 = vector.extract_strided_slice %24 {offsets = [0, 6, 4], sizes = [1, 16, 16], strides = [1, 1, 1]} : vector<1x22x22xf32> to vector<1x16x16xf32>
      %493 = vector.broadcast %487 : f32 to vector<1x16x16xf32>
      %494 = arith.mulf %493, %492 : vector<1x16x16xf32>
      %495 = arith.addf %491, %494 : vector<1x16x16xf32>
      %c47 = arith.constant 47 : index
      %496 = memref.load %arg2[%c47] : memref<98xf32, #tpu.memory_space<smem>>
      %c96 = arith.constant 96 : index
      %497 = memref.load %arg2[%c96] : memref<98xf32, #tpu.memory_space<smem>>
      %498 = vector.extract_strided_slice %20 {offsets = [0, 6, 5], sizes = [1, 16, 16], strides = [1, 1, 1]} : vector<1x22x22xf32> to vector<1x16x16xf32>
      %499 = vector.broadcast %496 : f32 to vector<1x16x16xf32>
      %500 = arith.mulf %499, %498 : vector<1x16x16xf32>
      %501 = arith.addf %495, %500 : vector<1x16x16xf32>
      %502 = vector.extract_strided_slice %24 {offsets = [0, 6, 5], sizes = [1, 16, 16], strides = [1, 1, 1]} : vector<1x22x22xf32> to vector<1x16x16xf32>
      %503 = vector.broadcast %497 : f32 to vector<1x16x16xf32>
      %504 = arith.mulf %503, %502 : vector<1x16x16xf32>
      %505 = arith.addf %501, %504 : vector<1x16x16xf32>
      %c48 = arith.constant 48 : index
      %506 = memref.load %arg2[%c48] : memref<98xf32, #tpu.memory_space<smem>>
      %c97 = arith.constant 97 : index
      %507 = memref.load %arg2[%c97] : memref<98xf32, #tpu.memory_space<smem>>
      %508 = vector.extract_strided_slice %20 {offsets = [0, 6, 6], sizes = [1, 16, 16], strides = [1, 1, 1]} : vector<1x22x22xf32> to vector<1x16x16xf32>
      %509 = vector.broadcast %506 : f32 to vector<1x16x16xf32>
      %510 = arith.mulf %509, %508 : vector<1x16x16xf32>
      %511 = arith.addf %505, %510 : vector<1x16x16xf32>
      %512 = vector.extract_strided_slice %24 {offsets = [0, 6, 6], sizes = [1, 16, 16], strides = [1, 1, 1]} : vector<1x22x22xf32> to vector<1x16x16xf32>
      %513 = vector.broadcast %507 : f32 to vector<1x16x16xf32>
      %514 = arith.mulf %513, %512 : vector<1x16x16xf32>
      %515 = arith.addf %511, %514 : vector<1x16x16xf32>
      %516 = arith.negf %515 : vector<1x16x16xf32>
      %517 = math.exp %516 : vector<1x16x16xf32>
      %cst_30 = arith.constant 1.000000e+00 : f32
      %518 = vector.broadcast %cst_30 : f32 to vector<1x16x16xf32>
      %519 = arith.addf %518, %517 : vector<1x16x16xf32>
      %520 = arith.divf %518, %519 : vector<1x16x16xf32>
      %c0_31 = arith.constant 0 : index
      %c0_32 = arith.constant 0 : index
      %c0_33 = arith.constant 0 : index
      %521 = vector.load %arg4[%c0_31, %c0_32, %c0_33] : memref<1x16x16xf32, #tpu.memory_space<vmem>>, vector<1x16x16xf32>
      tpu.vector_store %arg4[%c0_31, %c0_32, %c0_33], %520 {strides = array<i32>} : memref<1x16x16xf32, #tpu.memory_space<vmem>>, vector<1x16x16xf32>,
    } else {
    }
    return
  }
  func.func @transform_0(%arg0: i32, %arg1: i32) -> i32 {
    %c0_i32 = arith.constant 0 : i32
    %c0_i32_0 = arith.constant 0 : i32
    return %c0_i32 : i32
  }
  func.func @transform_1(%arg0: i32, %arg1: i32) -> (i32, i32, i32, i32) {
    %c0_i32 = arith.constant 0 : i32
    %c0_i32_0 = arith.constant 0 : i32
    %c0_i32_1 = arith.constant 0 : i32
    return %arg0, %arg1, %c0_i32, %c0_i32_0 : i32, i32, i32, i32
  }
  func.func @transform_2(%arg0: i32, %arg1: i32) -> (i32, i32, i32) {
    %c0_i32 = arith.constant 0 : i32
    %c0_i32_0 = arith.constant 0 : i32
    %c0_i32_1 = arith.constant 0 : i32
    return %arg0, %c0_i32, %c0_i32_0 : i32, i32, i32
  }
}

</mosaic_0001>

<bundles_post_ra>
// kernel: tpu_custom_call.1
= control target key start
LH: loop header
LB: loop body
LE: loop exit
PB: predicated region body
PF: predicated region fallthrough
CT: control target
= control target key end

     0   :  { %s4205_s0 = inlined_call_operand.hbm [shape: f32[98], index: 0, kind: input, shape index: {}]   ;;  %s4206_s1 = inlined_call_operand.hbm [shape: f32[2,16,16,16], index: 1, kind: input, shape index: {}]   ;;  %s4207_s2 = inlined_call_operand.hbm [shape: f32[2,16,16], index: 2, kind: output, shape index: {}]  }
   0x1   :  { %4221 = sst [smem:[#allocation19_spill]] %s4205_s0 }
   0x2   :  { %4222 = sst [smem:[#allocation20_spill]] %s4207_s2 }
   0x3   :  { %7 = vsyncpa [#allocation7], 0 }
   0x4   :  { %8 = vsyncpa [#allocation5], 0 }
   0x5   :  { %10 = vsyncpa [#allocation5 + $0x1], 0 }
   0x6   :  { %11 = vsyncpa [#allocation6], 0 }
   0x7   :  { %13 = vsyncpa [#allocation6 + $0x1], 0  ;;  %s2798_s9 = smov 0   ;;  %s2800_s10 = smov 0  }
   0x8   :  { %s2802_s11 = smov 0   ;;  %s2804_s12 = smov 0  }
   0x9   :  { %s2806_s13 = smov 0   ;;  %s2808_s14 = smov 0  }
   0xa   :  { %s2810_s15 = smov 0   ;;  %s2812_s16 = smov 0  }
   0xb   :  { %s2814_s17 = smov 0   ;;  %s2816_s18 = smov 0  }
   0xc   :  { %s2818_s19 = smov 0  }
   0xd LB: > { %4223 = sst [smem:[#allocation13_spill]] %s2725_s9  ;;  %s2340_s20 = sadd.s32 4294967295, %s2765_s19   ;;  %s2765_s19 = sphi %s2818_s19, %s4260_s19   ;;  %s2761_s18 = sphi %s2816_s18, %s4259_s18   ;;  %s2757_s17 = sphi %s2814_s17, %s4251_s17   ;;  %s2753_s16 = sphi %s2812_s16, %s4258_s16   ;;  %s2749_s15 = sphi %s2810_s15, %s4250_s15   ;;  %s2745_s14 = sphi %s2808_s14, %s4257_s14   ;;  %s2741_s13 = sphi %s2806_s13, %s4256_s13   ;;  %s2737_s12 = sphi %s2804_s12, %s4255_s12   ;;  %s2733_s11 = sphi %s2802_s11, %s4254_s11   ;;  %s2729_s10 = sphi %s2800_s10, %s4253_s10   ;;  %s2725_s9 = sphi %s2798_s9, %s4252_s9  }
   0xe   : > { %4224 = sst [smem:[#allocation14_spill]] %s2757_s17  ;;  %s2341_s21 = sadd.s32 4294967294, %s2765_s19  }
   0xf   : > { %4225 = sst [smem:[#allocation15_spill]] %s2765_s19  ;;  %p68_p0 = scmp.ne.s32.totalorder %s2745_s14, %s2741_s13 }
  0x10   : > { %p69_p1 = scmp.eq.s32.totalorder %s2765_s19, 0  ;;  %p74_p2 = scmp.ne.s32.totalorder %s2741_s13, %s2737_s12 }
  0x11   : > { %p2858_p3 = scmp.eq.s32.totalorder %s2340_s20, 0  ;;  %p97_p5 = scmp.ne.s32.totalorder %s2733_s11, %s2729_s10 }
  0x12   : > { %p2863_p4 = por %p69_p1, %p68_p0  ;;  %p98_p7 = scmp.eq.s32.totalorder %s2340_s20, 7 }
  0x13   : > { %s4226_s23 = scalar_select %p2858_p3, 1, 0 }
  0x14   : > { %p2871_p6 = por %p2858_p3, %p74_p2  ;;  %p103_p8 = scmp.ne.s32.totalorder %s2729_s10, %s2725_s9 }
  0x15   : > { %p104_p9 = scmp.eq.s32.totalorder %s2341_s21, 7  ;;  %p2877_p10 = por %p98_p7, %p97_p5 }
  0x16   : > { %s4228_s26 = scalar_select %p2871_p6, 1, 0 }
  0x17   : > { %s4229_s27 = scalar_select %p2877_p10, 1, 0 }
  0x18   : > { %p2342_p11 = scmp.ge.s32.totalorder %s2765_s19, 1  ;;  %p2882_p12 = por %p104_p9, %p103_p8 }
  0x19   : > { %4230 = sst [smem:[#allocation16_spill]] %s4229_s27  ;;  %p111_p13 = scmp.lt.s32.totalorder %s2765_s19, 9 }
  0x1a   : > { %s4231_s28 = scalar_select %p2882_p12, 1, 0 }
  0x1b   : > { %p2887_p0 = pnand %p2342_p11, %p111_p13  ;;  %p2483_p1 = scmp.lt.s32.totalorder %s2765_s19, 8 }
  0x1c   : > { %4232 = sst [smem:[#allocation17_spill]] %s4231_s28  ;;  %s28_s3 = sadd.s32 1, %s2757_s17 }
  0x1d   : > { %p2470_p2 = pneg %p2887_p0  ;;  %p2896_p6 = pnand %p2483_p1, %p2863_p4 }
  0x1e   : > { %p2903_p7 = scmp.ge.s32.totalorder %s28_s3, 4  ;;  %s4236_s0 = sld [smem:[#allocation19_spill]] }
  0x1f   : > { %p2471_p5 = pnand %p2470_p2, %p2858_p3 }
  0x21   : > { %p2598_p9 = pneg %p2471_p5 }
  0x24   : > { %s2596_s7 = scalar_lea.hbm %s4236_s0, 16 }
  0x25   : > { %p2597_p8 = scmp.ne.s32.totalorder %s4236_s0, %s2596_s7  ;;  %p2603_p13 = scmp.lt.u32.totalorder %s2596_s7, %s4236_s0 }
  0x27   : > { %p2599_p4 = pnand %p2598_p9, %p2597_p8 }
  0x29   : > { %p2600_p11 = pneg %p2599_p4 }
  0x2b   : > { %p2605_p1 = pnand %p2603_p13, %p2600_p11 }
  0x2d   : > { %2608 = shalt.err (!%p2605_p1)
}
  0x2e   : > { %s2767_s25 = smov [#allocation4]   ;;  %s4262_s3 = smov (%p2903_p7, %s28_s3), 0 }
  0x2f   : > { %2473 = dma.hbm_to_smem (!%p2471_p5), %s4236_s0, 16, %s2767_s25, [#allocation7]  }
  0x30   : > { %4237 = sst [smem:[#allocation18_spill]] %s4262_s3  ;;  %s31_s5 = sadd.s32 1, %s2761_s18 }
  0x31   : > { %s133_s6 = sand.u32 1, %s2745_s14   ;;  %s4264_s5 = smov (!%p2903_p7, %s31_s5), %s2761_s18 }
  0x32   : > { %s57_s22 = ssub.s32 %s2757_s17, %s4262_s3  ;;  %p33_p2 = scmp.ge.s32.totalorder %s4264_s5, 2 }
  0x33   : > { %s2345_s24 = sshll.u32 %s133_s6, 6  ;;  %s2460_s7 = sshll.u32 %s2757_s17, 3 }
  0x34   : > { %s4266_s5 = smov (%p33_p2, %s4264_s5), 0  ;;  %s2348_s8 = sshll.u32 %s2761_s18, 5 }
  0x35   : > { %s137_s12 = scalar_lea.vmem [#allocation8], %s2345_s24  ;;  %s56_s21 = ssub.s32 %s2761_s18, %s4266_s5 }
  0x36   : > { %s147_s20 = sshll.u32 %s137_s12, 4  ;;  %s144_s25 = sadd.s32 %s2460_s7, %s2348_s8  ;;  %s2951_s20 = int_to_ptr.vmem [resolvable:$true] %s147_s20 }
  0x37   : > { %s58_s4 = sor.u32 %s57_s22, %s56_s21  ;;  %p85_p5 = scmp.eq.s32.totalorder %s56_s21, 0 }
  0x38   : > { %p59_p8 = scmp.eq.s32.totalorder %s58_s4, 0  ;;  %s2349_s0 = sshll.u32 %s144_s25, 7 }
  0x39   : > { %s4238_s28 = sadd.s32 1, %s2733_s11  ;;  %s4239_s3 = sadd.s32 1, %s2745_s14 }
  0x3a   : > { %s2939_s9 = scalar_select %p85_p5, %s2733_s11, %s4238_s28  }
  0x3b   : > { %s2944_s19 = scalar_select %p59_p8, %s2745_s14, %s4239_s3  }
  0x3c   : > { %s2949_s27 = scalar_lea.hbm %s4206_s1, %s2349_s0  ;;  %s2953_s22 = scalar_lea.sflag [#allocation5], %s133_s6 }
  0x3d   : > { %s2609_s24 = scalar_lea.hbm %s2949_s27, 1024  ;;  %p2611_p9 = pneg %p2896_p6 }
  0x3e   : > { %p2610_p7 = scmp.ne.s32.totalorder %s2949_s27, %s2609_s24  ;;  %s2614_s0 = scalar_lea.hbm %s4206_s1, 8192 }
  0x3f   : > { %p2615_p13 = scmp.lt.u32.totalorder %s2949_s27, %s4206_s1  ;;  %p2616_p1 = scmp.lt.u32.totalorder %s2614_s0, %s2609_s24 }
  0x40   : > { %p2612_p4 = pnand %p2611_p9, %p2610_p7  ;;  %p2618_p5 = scmp.lt.u32.totalorder %s2609_s24, %s2949_s27 }
  0x41   : > { %p2617_p2 = por %p2616_p1, %p2615_p13 }
  0x42   : > { %p2613_p11 = pneg %p2612_p4 }
  0x43   : > { %p2619_p8 = por %p2618_p5, %p2617_p2 }
  0x45   : > { %p2620_p12 = pnand %p2619_p8, %p2613_p11 }
  0x47   : > { %2623 = shalt.err (!%p2620_p12)
}
  0x48   : > { %s2624_s6 = scalar_lea.vmem %s2951_s20, 1024  ;;  %s2768_s7 = smov [#allocation8]  }
  0x49   : > { %p2625_p7 = scmp.ne.s32.totalorder %s2951_s20, %s2624_s6  ;;  %s2629_s8 = sshll.u32 %s2768_s7, 4  ;;  %s2630_s8 = int_to_ptr.vmem [resolvable:$false] %s2629_s8 }
  0x4a   : > { %s2631_s12 = scalar_lea.vmem %s2630_s8, 2048  ;;  %p2632_p3 = scmp.lt.s32.totalorder %s2951_s20, %s2630_s8 }
  0x4b   : > { %p2627_p4 = pnand %p2625_p7, %p2611_p9  ;;  %p2633_p13 = scmp.lt.s32.totalorder %s2631_s12, %s2624_s6 }
  0x4d   : > { %p2628_p10 = pneg %p2627_p4  ;;  %p2634_p1 = por %p2633_p13, %p2632_p3 }
  0x4f   : > { %p2635_p2 = pnand %p2634_p1, %p2628_p10 }
  0x51   : > { %2638 = shalt.err (!%p2635_p2)
}
  0x52   : > { %s2769_s21 = smov 128   ;;  %s2770_s25 = smov 8  }
  0x53   : > { %2477 = dma.hbm_to_vmem [thread:$0]  (!%p2896_p6), %s2949_s27, 1024, %s2951_s20, %s2953_s22, %s2769_s21, %s2769_s21, %s2770_s25  }
  0x54   : > { %159 = sbr.rel (%p2887_p0) target bundleno = 754 (0x2f2), region = 28  ;;  %p4240_p12 = scmp.ne.s32.totalorder (!%p2887_p0), %s4226_s23, 0 }
  0x5b   : > { %2712 = dma.done.wait (%p4240_p12), [#allocation7], 16  }
  0x5c   : > { %2714 = vsyncadd (%p4240_p12), [#allocation7], 4294967280  ;;  %s165_s4 = sand.u32 1, %s2741_s13   ;;  %p4241_p3 = scmp.ne.s32.totalorder %s4228_s26, 0 }
  0x5d   : > { %s2352_s24 = sshll.u32 %s165_s4, 6  ;;  %s166_s28 = scalar_lea.sflag [#allocation5], %s165_s4 }
  0x5e   : > { %s169_s2 = scalar_lea.vmem [#allocation8], %s2352_s24 }
  0x5f   : > { %2716 = dma.done.wait (%p4241_p3), %s166_s28, 1024  }
  0x60   : > { %2718 = vsyncadd (%p4241_p3), %s166_s28, 4294966272 }
  0x61   : > { %174 = sfence }
  0x62   : > { %s188_s27 = sand.u32 1, %s2729_s10   ;;  %v192_v0 = vld [vmem:[%s169_s2] sm:$0xff]  ;;  %v193_v1 = vld [vmem:[%s169_s2 + $0x8] sm:$0xff]  ;;  %v194_v2 = vld [vmem:[%s169_s2 + $0x10] sm:$0xff]  ;;  %vm200_vm0 = vcmask 130048   ;;  %p2354_p6 = scmp.ne.s32.totalorder %s2749_s15, 0 }
  0x63   : > { %s2995_s23 = sshll.u32 %s188_s27, 4  ;;  %v195_v3 = vld [vmem:[%s169_s2 + $0x18] sm:$0xff]  ;;  %v196_v4 = vld [vmem:[%s169_s2 + $0x20] sm:$0xff]  ;;  %v197_v5 = vld [vmem:[%s169_s2 + $0x28] sm:$0xff]  ;;  %v201_v6 = vsel %vm200_vm0, %v192_v0, 0.0  ;;  %v202_v7 = vsel %vm200_vm0, %v194_v2, 0.0 }
  0x64   : > { %v198_v8 = vld [vmem:[%s169_s2 + $0x30] sm:$0xff]  ;;  %v199_v9 = vld [vmem:[%s169_s2 + $0x38] sm:$0xff]  ;;  %v203_v10 = vadd.f32 %v202_v7, %v201_v6  ;;  %v204_v11 = vsel %vm200_vm0, %v196_v4, 0.0  ;;  %v208_v12 = vsel %vm200_vm0, %v193_v1, 0.0  ;;  %v209_v13 = vsel %vm200_vm0, %v195_v3, 0.0  ;;  %s3014_s26 = scalar_lea.vmem [#allocation9], %s2995_s23 }
  0x65   : > { %v206_v14 = vsel %vm200_vm0, %v198_v8, 0.0  ;;  %v210_v15 = vadd.f32 %v209_v13, %v208_v12  ;;  %v211_v16 = vsel %vm200_vm0, %v197_v5, 0.0  ;;  %v213_v17 = vsel %vm200_vm0, %v199_v9, 0.0 }
  0x66   : > { %v205_v18 = vadd.f32 %v204_v11, %v203_v10  ;;  %v215_v19 = vsel %vm200_vm0, %v192_v0, -inf  ;;  %v216_v20 = vsel %vm200_vm0, %v194_v2, -inf  ;;  %v217_v21 = vsel %vm200_vm0, %v196_v4, -inf  ;;  %232 = sbr.rel (%p2354_p6) target bundleno = 109 (0x6d), region = 40 }
  0x67   : > { %v212_v22 = vadd.f32 %v211_v16, %v210_v15  ;;  %v218_v23 = vmax.f32 %v215_v19, %v217_v21  ;;  %v219_v24 = vsel %vm200_vm0, %v198_v8, -inf  ;;  %v222_v25 = vsel %vm200_vm0, %v193_v1, -inf }
  0x68   : > { %v207_v26 = vadd.f32 %v206_v14, %v205_v18  ;;  %v220_v27 = vmax.f32 %v216_v20, %v219_v24  ;;  %v223_v28 = vsel %vm200_vm0, %v195_v3, -inf  ;;  %v224_v29 = vsel %vm200_vm0, %v197_v5, -inf }
  0x69   : > { %v214_v30 = vadd.f32 %v213_v17, %v212_v22  ;;  %v225_v31 = vmax.f32 %v222_v25, %v224_v29  ;;  %v226_v32 = vsel %vm200_vm0, %v199_v9, -inf  ;;  %v2771_v36 = vmov (!%p2354_p6), 0.0  }
  0x6a   : > { %v221_v33 = vmax.f32 %v218_v23, %v220_v27  ;;  %v227_v34 = vmax.f32 %v223_v28, %v226_v32  ;;  %233 = vst.msk [vmem:[#allocation2] sm:$0xff] (!%p2354_p6), %vm200_vm0, %v2771_v36  ;;  %234 = vst.msk [vmem:[#allocation2 + $0x8] sm:$0xff] (!%p2354_p6), %vm200_vm0, %v2771_v36  ;;  %v2772_v37 = vmov (!%p2354_p6), -inf  }
  0x6b   : > { %235 = vst.msk [vmem:[#allocation3] sm:$0xff] (!%p2354_p6), %vm200_vm0, %v2772_v37  ;;  %236 = vst.msk [vmem:[#allocation3 + $0x8] sm:$0xff] (!%p2354_p6), %vm200_vm0, %v2772_v37 }
  0x6c   : > { %v228_v35 = vmax.f32 %v225_v31, %v227_v34 }
  0x6d PF: > { %p2355_p10 = scmp.ne.s32.totalorder %s2749_s15, 3 }
  0x6e   : > { %vm259_vm1 = vcmask (!%p2355_p10), 1042432   ;;  %s2773_s29 = smov (!%p2355_p10), 3   ;;  %s2357_s15 = sld [smem:[#allocation4 + $0x1]] (!%p2355_p10)  ;;  %vm278_vm2 = vcmask (!%p2355_p10), 23552   ;;  %vm282_vm3 = vcmask (!%p2355_p10), 154624   ;;  %vm501_vm4 = vcmask (!%p2355_p10), 1046528  }
  0x6f   : > { %252 = sbr.rel (%p2355_p10) target bundleno = 726 (0x2d6), region = 44  ;;  %s2358_s30 = sld [smem:[#allocation4 + $0x32]] (!%p2355_p10)  ;;  %vm788_vm5 = vcmask (!%p2355_p10), 1045504   ;;  %vm1075_vm6 = vcmask (!%p2355_p10), 1044480   ;;  %vm1362_vm7 = vcmask (!%p2355_p10), 1043456   ;;  %vm1935_vm8 = vcmask (!%p2355_p10), 1041408  }
  0x70   : > { %s3034_s20 = sld [smem:[#allocation4 + $0x2]] (!%p2355_p10)  ;;  %s2360_s22 = sld [smem:[#allocation4 + $0x33]] (!%p2355_p10) }
  0x71   : > { %v237_v38 = vld [vmem:[#allocation2] sm:$0xff]  ;;  %v238_v39 = vld [vmem:[#allocation2 + $0x8] sm:$0xff]  ;;  %s2774_s0 = smov (!%p2355_p10), 127   ;;  %s2361_s17 = sld [smem:[#allocation4 + $0x3]] (!%p2355_p10) }
  0x72   : > { %v243_v40 = vld [vmem:[#allocation3] sm:$0xff]  ;;  %v239_v41 = vadd.f32 %v237_v38, %v207_v26  ;;  %v240_v42 = vadd.f32 %v238_v39, %v214_v30  ;;  %v244_v44 = vld [vmem:[#allocation3 + $0x8] sm:$0xff]  ;;  %s2362_s3 = sld [smem:[#allocation4 + $0x34]] (!%p2355_p10)  ;;  %s2775_s6 = smov (!%p2355_p10), 126  }
  0x73   : > { %v245_v43 = vmax.f32 %v243_v40, %v221_v33  ;;  %v246_v45 = vmax.f32 %v244_v44, %v228_v35  ;;  %s2363_s7 = sld [smem:[#allocation4 + $0x4]] (!%p2355_p10)  ;;  %s2364_s8 = sld [smem:[#allocation4 + $0x35]] (!%p2355_p10) }
  0x74   : > { %241 = vst.msk [vmem:[#allocation2] sm:$0xff] %vm200_vm0, %v239_v41  ;;  %242 = vst.msk [vmem:[#allocation2 + $0x8] sm:$0xff] %vm200_vm0, %v240_v42  ;;  %v326_v62 = vstv (!%p2355_p10), %s2357_s15  ;;  %s2776_s12 = smov (!%p2355_p10), 125   ;;  %s2365_s21 = sld [smem:[#allocation4 + $0x5]] (!%p2355_p10) }
  0x75   : > { %247 = vst.msk [vmem:[#allocation3] sm:$0xff] %vm200_vm0, %v245_v43  ;;  %248 = vst.msk [vmem:[#allocation3 + $0x8] sm:$0xff] %vm200_vm0, %v246_v45  ;;  %v339_v4 = vstv (!%p2355_p10), %s2358_s30  ;;  %s2366_s25 = sld [smem:[#allocation4 + $0x36]] (!%p2355_p10)  ;;  %s2777_s4 = smov (!%p2355_p10), 124  }
  0x76   : > { %v354_v12 = vstv %s3034_s20  ;;  %v367_v17 = vstv %s2360_s22  ;;  %s3081_s24 = sld [smem:[#allocation4 + $0x6]]  ;;  %s2371_s28 = sld [smem:[#allocation4 + $0x8]] }
  0x77   : > { %v382_v20 = vstv %s2361_s17  ;;  %s3087_s2 = sld [smem:[#allocation4 + $0x37]]  ;;  %s2778_s23 = smov 123  }
  0x78   : > { %v395_v23 = vstv %s2362_s3  ;;  %s2373_s15 = sld [smem:[#allocation4 + $0x9]]  ;;  %s2374_s30 = sld [smem:[#allocation4 + $0x3a]] }
  0x79   : > { %v410_v26 = vstv %s2363_s7  ;;  %v423_v29 = vstv %s2364_s8  ;;  %s2779_s20 = smov 122   ;;  %s2375_s22 = sld [smem:[#allocation4 + $0xa]] }
  0x7a   : > { %v438_v32 = vstv %s2365_s21  ;;  %s2376_s17 = sld [smem:[#allocation4 + $0x3b]]  ;;  %s2378_s7 = sld [smem:[#allocation4 + $0x3c]] }
  0x7b   : > { %v254_v46 = vld [vmem:[#allocation2 + $0x8] sm:$0xff]  ;;  %v253_v47 = vld [vmem:[#allocation2] sm:$0xff]  ;;  %v451_v35 = vstv %s2366_s25  ;;  %s2377_s3 = sld [smem:[#allocation4 + $0xb]]  ;;  %s2379_s8 = sld [smem:[#allocation4 + $0xc]] }
  0x7c   : > { %v255_v48 = vld [vmem:[#allocation3] sm:$0xff]  ;;  %v261_v49 = vrot.slane %v254_v46, 5  ;;  %v260_v50 = vrot.slane %v253_v47, 5  ;;  %v256_v52 = vld [vmem:[#allocation3 + $0x8] sm:$0xff]  ;;  %v466_v38 = vstv %s3081_s24  ;;  %v529_v43 = vstv %s2371_s28  ;;  %s2380_s21 = sld [smem:[#allocation4 + $0x3d]]  ;;  %s2382_s24 = sld [smem:[#allocation4 + $0x3e]] }
  0x7d   : > { %v288_v51 = vrot.slane %v255_v48, 5  ;;  %v289_v57 = vrot.slane %v256_v52, 5  ;;  %v479_v45 = vstv %s3087_s2  ;;  %s2381_s25 = sld [smem:[#allocation4 + $0xd]]  ;;  %s2385_s28 = sld [smem:[#allocation4 + $0xf]] }
  0x7e   : > { %v266_v53 = vsel %vm259_vm1, %v261_v49, 0.0  ;;  %v265_v54 = vsel %vm259_vm1, 0.0, %v260_v50  ;;  %v262_v56 = vsel %vm259_vm1, %v260_v50, %v261_v49  ;;  %s2386_s2 = sld [smem:[#allocation4 + $0x40]] }
  0x7f   : > { %273 = vrot.lane.b32.xlu1 %v266_v53, %s2773_s29  ;;  %269 = vrot.lane.b32.xlu0 %v265_v54, %s2773_s29  ;;  %v293_v55 = vsel %vm259_vm1, 0.0, %v288_v51  ;;  %v294_v58 = vsel %vm259_vm1, %v289_v57, 0.0  ;;  %v290_v59 = vsel %vm259_vm1, %v288_v51, %v289_v57 }
  0x83   : > { %297 = vrot.lane.b32.xlu1 %v293_v55, %s2773_s29  ;;  %271 = vrot.lane.b32.xlu0 %v262_v56, %s2773_s29 }
  0x87   : > { %301 = vrot.lane.b32.xlu1 %v294_v58, %s2773_s29  ;;  %299 = vrot.lane.b32.xlu0 %v290_v59, %s2773_s29  ;;  %s2372_s29 = sld [smem:[#allocation4 + $0x39]]  ;;  %v571_v58 = vstv %s2373_s15 }
  0x88   : > { %s2388_s15 = sld [smem:[#allocation4 + $0x41]] }
  0x8d   : > { %v549_v47 = vstv %s2372_s29  ;;  %s2387_s29 = sld [smem:[#allocation4 + $0x10]] }
  0xf1   : > { %v3032_v60 = vpop.permute.xlu1 %273  ;;  %v270_v61 = vpop.permute.xlu0 %269 }
  0xf2   : > { %v279_v63 = vsel %vm278_vm2, 0.0, %v270_v61  ;;  %v281_v39 = vsel %vm278_vm2, 0.0, %v3032_v60 }
  0xf3   : > { %v3038_v0 = vsel %vm282_vm3, %v279_v63, 0.0  ;;  %v3101_v44 = vsel %vm282_vm3, %v281_v39, 0.0 }
  0xf4   : > { %v327_v1 = vmul.f32 %v326_v62, %v3038_v0  ;;  %v355_v15 = vmul.f32 %v354_v12, %v3038_v0  ;;  %v383_v21 = vmul.f32 %v382_v20, %v3038_v0  ;;  %v411_v27 = vmul.f32 %v410_v26, %v3038_v0 }
  0xf5   : > { %v298_v2 = vpop.permute.xlu1 %297  ;;  %v272_v3 = vpop.permute.xlu0 %271  ;;  %v439_v33 = vmul.f32 %v438_v32, %v3038_v0  ;;  %v467_v41 = vmul.f32 %v466_v38, %v3038_v0  ;;  %v530_v49 = vmul.f32 %v529_v43, %v3038_v0  ;;  %v532_v52 = vmul.f32 %v529_v43, %v3101_v44 }
  0xf6   : > { %v306_v5 = vsel %vm278_vm2, 0.0, %v298_v2  ;;  %v280_v6 = vsel %vm278_vm2, 0.0, %v272_v3  ;;  %331 = vrot.lane.b32.xlu0 %v327_v1, %s2774_s0 }
  0xf7   : > { %v3045_v7 = vsel %vm282_vm3, %v306_v5, 0.0  ;;  %v3048_v8 = vsel %vm282_vm3, %v280_v6, 0.0  ;;  %v536_v57 = vrot.slane %v530_v49, 1  ;;  %v539_v60 = vrot.slane %v532_v52, 1 }
  0xf8   : > { %v340_v9 = vmul.f32 %v339_v4, %v3045_v7  ;;  %v328_v10 = vmul.f32 %v326_v62, %v3048_v8  ;;  %v368_v18 = vmul.f32 %v367_v17, %v3045_v7  ;;  %v356_v19 = vmul.f32 %v354_v12, %v3048_v8 }
  0xf9   : > { %v300_v11 = vpop.permute.xlu0 %299  ;;  %v396_v24 = vmul.f32 %v395_v23, %v3045_v7  ;;  %v384_v25 = vmul.f32 %v382_v20, %v3048_v8  ;;  %v424_v30 = vmul.f32 %v423_v29, %v3045_v7  ;;  %v412_v31 = vmul.f32 %v410_v26, %v3048_v8  ;;  %v302_v40 = vpop.permute.xlu1 %301 }
  0xfa   : > { %v307_v13 = vsel %vm278_vm2, 0.0, %v300_v11  ;;  %344 = vrot.lane.b32.xlu0 %v340_v9, %s2774_s0  ;;  %333 = vrot.lane.b32.xlu1 %v328_v10, %s2774_s0  ;;  %v452_v36 = vmul.f32 %v451_v35, %v3045_v7  ;;  %v440_v37 = vmul.f32 %v438_v32, %v3048_v8  ;;  %v531_v46 = vmul.f32 %v529_v43, %v3048_v8 }
  0xfb   : > { %v3057_v14 = vsel %vm282_vm3, %v307_v13, 0.0  ;;  %v308_v48 = vsel %vm278_vm2, 0.0, %v302_v40  ;;  %v480_v50 = vmul.f32 %v479_v45, %v3045_v7  ;;  %v468_v51 = vmul.f32 %v466_v38, %v3048_v8 }
  0xfc   : > { %v341_v16 = vmul.f32 %v339_v4, %v3057_v14  ;;  %v369_v22 = vmul.f32 %v367_v17, %v3057_v14  ;;  %v397_v28 = vmul.f32 %v395_v23, %v3057_v14  ;;  %v425_v34 = vmul.f32 %v423_v29, %v3057_v14 }
  0xfd   : > { %v453_v42 = vmul.f32 %v451_v35, %v3057_v14  ;;  %v537_v53 = vrot.slane %v531_v46, 1  ;;  %v550_v54 = vmul.f32 %v549_v47, %v3045_v7  ;;  %v551_v55 = vmul.f32 %v549_v47, %v3057_v14 }
  0xfe   : > { %359 = vrot.lane.b32.xlu0 %v355_v15, %s2775_s6  ;;  %346 = vrot.lane.b32.xlu1 %v341_v16, %s2774_s0  ;;  %v3115_v56 = vsel %vm282_vm3, %v308_v48, 0.0  ;;  %v481_v59 = vmul.f32 %v479_v45, %v3057_v14  ;;  %v573_v61 = vmul.f32 %v571_v58, %v3048_v8  ;;  %v591_v62 = vstv %s2374_s30  ;;  %s2389_s30 = sld [smem:[#allocation4 + $0x11]] }
  0xff   : > { %v538_v63 = vsel %vm501_vm4, %v536_v57, %v537_v53  ;;  %v556_v1 = vrot.slane %v550_v54, 1  ;;  %v557_v2 = vrot.slane %v551_v55, 1  ;;  %v552_v3 = vmul.f32 %v549_v47, %v3115_v56 }
 0x100   : > { %v572_v4 = vmul.f32 %v571_v58, %v3038_v0  ;;  %v592_v5 = vmul.f32 %v591_v62, %v3045_v7  ;;  %v593_v6 = vmul.f32 %v591_v62, %v3057_v14  ;;  %v574_v9 = vmul.f32 %v571_v58, %v3101_v44 }
 0x101   : > { %v558_v10 = vsel %vm501_vm4, %v556_v1, %v557_v2  ;;  %v540_v11 = vsel %vm501_vm4, %v537_v53, %v539_v60  ;;  %v579_v12 = vrot.slane %v573_v61, 1  ;;  %v559_v13 = vrot.slane %v552_v3, 1 }
 0x102   : > { %372 = vrot.lane.b32.xlu0 %v368_v18, %s2775_s6  ;;  %361 = vrot.lane.b32.xlu1 %v356_v19, %s2775_s6  ;;  %v578_v15 = vrot.slane %v572_v4, 1  ;;  %v613_v16 = vstv %s2375_s22  ;;  %v598_v17 = vrot.slane %v592_v5, 1  ;;  %v599_v18 = vrot.slane %v593_v6, 1  ;;  %s2390_s22 = sld [smem:[#allocation4 + $0x42]] }
 0x103   : > { %v581_v19 = vrot.slane %v574_v9, 1  ;;  %v633_v20 = vstv %s2376_s17  ;;  %v615_v23 = vmul.f32 %v613_v16, %v3048_v8  ;;  %v616_v32 = vmul.f32 %v613_v16, %v3101_v44  ;;  %s2391_s17 = sld [smem:[#allocation4 + $0x12]] }
 0x104   : > { %v600_v26 = vsel %vm501_vm4, %v598_v17, %v599_v18  ;;  %v675_v38 = vstv %s2378_s7  ;;  %v697_v53 = vstv %s2379_s8  ;;  %v717_v58 = vstv %s2380_s21  ;;  %s2393_s7 = sld [smem:[#allocation4 + $0x13]]  ;;  %s2394_s8 = sld [smem:[#allocation4 + $0x44]] }
 0x105   : > { %v582_v29 = vsel %vm501_vm4, %v579_v12, %v581_v19  ;;  %v676_v47 = vmul.f32 %v675_v38, %v3045_v7  ;;  %v699_v57 = vmul.f32 %v697_v53, %v3048_v8  ;;  %v719_v3 = vmul.f32 %v717_v58, %v3057_v14  ;;  %s2395_s21 = sld [smem:[#allocation4 + $0x14]] }
 0x106   : > { %387 = vrot.lane.b32.xlu0 %v383_v21, %s2776_s12  ;;  %374 = vrot.lane.b32.xlu1 %v369_v22, %s2775_s6  ;;  %v580_v21 = vsel %vm501_vm4, %v578_v15, %v579_v12  ;;  %v560_v22 = vsel %vm501_vm4, %v557_v2, %v559_v13  ;;  %v718_v2 = vmul.f32 %v717_v58, %v3045_v7 }
 0x107   : > { %v682_v55 = vrot.slane %v676_v47, 1  ;;  %v705_v1 = vrot.slane %v699_v57, 1  ;;  %v700_v9 = vmul.f32 %v697_v53, %v3101_v44  ;;  %v725_v15 = vrot.slane %v719_v3, 1 }
 0x108   : > { %v724_v13 = vrot.slane %v718_v2, 1 }
 0x10a   : > { %400 = vrot.lane.b32.xlu0 %v396_v24, %s2776_s12  ;;  %389 = vrot.lane.b32.xlu1 %v384_v25, %s2776_s12  ;;  %v594_v24 = vmul.f32 %v591_v62, %v3115_v56  ;;  %v614_v25 = vmul.f32 %v613_v16, %v3038_v0  ;;  %v678_v62 = vmul.f32 %v675_v38, %v3115_v56  ;;  %v759_v16 = vstv %s2382_s24  ;;  %s2399_s24 = sld [smem:[#allocation4 + $0x16]] }
 0x10c   : > { %v685_v6 = vrot.slane %v678_v62, 1 }
 0x10e   : > { %415 = vrot.lane.b32.xlu0 %v411_v27, %s2777_s4  ;;  %402 = vrot.lane.b32.xlu1 %v397_v28, %s2776_s12  ;;  %v634_v27 = vmul.f32 %v633_v20, %v3045_v7  ;;  %v635_v28 = vmul.f32 %v633_v20, %v3057_v14 }
 0x110   : > { %v640_v35 = vrot.slane %v634_v27, 1 }
 0x112   : > { %428 = vrot.lane.b32.xlu0 %v424_v30, %s2777_s4  ;;  %417 = vrot.lane.b32.xlu1 %v412_v31, %s2777_s4  ;;  %v621_v30 = vrot.slane %v615_v23, 1  ;;  %v601_v31 = vrot.slane %v594_v24, 1  ;;  %v760_v23 = vmul.f32 %v759_v16, %v3045_v7  ;;  %v761_v24 = vmul.f32 %v759_v16, %v3057_v14 }
 0x114   : > { %v602_v40 = vsel %vm501_vm4, %v599_v18, %v601_v31  ;;  %v707_v18 = vrot.slane %v700_v9, 1  ;;  %v766_v31 = vrot.slane %v760_v23, 1 }
 0x116   : > { %443 = vrot.lane.b32.xlu0 %v439_v33, %s2778_s23  ;;  %430 = vrot.lane.b32.xlu1 %v425_v34, %s2777_s4  ;;  %v620_v33 = vrot.slane %v614_v25, 1  ;;  %v655_v34 = vstv %s2377_s3  ;;  %v708_v25 = vsel %vm501_vm4, %v705_v1, %v707_v18  ;;  %s2392_s3 = sld [smem:[#allocation4 + $0x43]] }
 0x117   : > { %v656_v43 = vmul.f32 %v655_v34, %v3038_v0 }
 0x118   : > { %v622_v39 = vsel %vm501_vm4, %v620_v33, %v621_v30 }
 0x119   : > { %v662_v52 = vrot.slane %v656_v43, 1 }
 0x11a   : > { %456 = vrot.lane.b32.xlu0 %v452_v36, %s2778_s23  ;;  %445 = vrot.lane.b32.xlu1 %v440_v37, %s2778_s23  ;;  %v641_v36 = vrot.slane %v635_v28, 1  ;;  %v657_v37 = vmul.f32 %v655_v34, %v3048_v8 }
 0x11c   : > { %v642_v45 = vsel %vm501_vm4, %v640_v35, %v641_v36  ;;  %v663_v46 = vrot.slane %v657_v37, 1 }
 0x11e   : > { %471 = vrot.lane.b32.xlu0 %v467_v41, %s2779_s20  ;;  %458 = vrot.lane.b32.xlu1 %v453_v42, %s2778_s23  ;;  %v623_v41 = vrot.slane %v616_v32, 1  ;;  %v636_v42 = vmul.f32 %v633_v20, %v3115_v56  ;;  %v664_v54 = vsel %vm501_vm4, %v662_v52, %v663_v46  ;;  %v720_v20 = vmul.f32 %v717_v58, %v3115_v56 }
 0x11f   : > { %v767_v32 = vrot.slane %v761_v24, 1 }
 0x120   : > { %v624_v48 = vsel %vm501_vm4, %v621_v30, %v623_v41  ;;  %v643_v49 = vrot.slane %v636_v42, 1  ;;  %v727_v27 = vrot.slane %v720_v20, 1  ;;  %v816_v30 = vstv %s2385_s28  ;;  %s2400_s28 = sld [smem:[#allocation4 + $0x47]] }
 0x121   : > { %v818_v33 = vmul.f32 %v816_v30, %v3048_v8  ;;  %v819_v47 = vmul.f32 %v816_v30, %v3101_v44 }
 0x122   : > { %484 = vrot.lane.b32.xlu0 %v480_v50, %s2779_s20  ;;  %473 = vrot.lane.b32.xlu1 %v468_v51, %s2779_s20  ;;  %v677_v50 = vmul.f32 %v675_v38, %v3057_v14  ;;  %v658_v51 = vmul.f32 %v655_v34, %v3101_v44  ;;  %v836_v34 = vstv %s2386_s2  ;;  %v762_v38 = vmul.f32 %v759_v16, %v3115_v56  ;;  %s2401_s2 = sld [smem:[#allocation4 + $0x17]] }
 0x123   : > { %v824_v41 = vrot.slane %v818_v33, 2  ;;  %v837_v42 = vmul.f32 %v836_v34, %v3045_v7  ;;  %v826_v57 = vrot.slane %v819_v47, 2  ;;  %v839_v58 = vmul.f32 %v836_v34, %v3115_v56 }
 0x124   : > { %v683_v60 = vrot.slane %v677_v50, 1  ;;  %v665_v61 = vrot.slane %v658_v51, 1 }
 0x125   : > { %v843_v51 = vrot.slane %v837_v42, 2  ;;  %v846_v2 = vrot.slane %v839_v58, 2 }
 0x126   : > { %541 = vrot.lane.b32.xlu0 %v538_v63, %s2774_s0  ;;  %486 = vrot.lane.b32.xlu1 %v481_v59, %s2779_s20  ;;  %v644_v59 = vsel %vm501_vm4, %v641_v36, %v643_v49  ;;  %v698_v63 = vmul.f32 %v697_v53, %v3038_v0  ;;  %v684_v4 = vsel %vm501_vm4, %v682_v55, %v683_v60  ;;  %v858_v49 = vstv %s2387_s29  ;;  %s2402_s29 = sld [smem:[#allocation4 + $0x48]] }
 0x127   : > { %v666_v5 = vsel %vm501_vm4, %v663_v46, %v665_v61  ;;  %v686_v17 = vsel %vm501_vm4, %v683_v60, %v685_v6  ;;  %v728_v36 = vsel %vm501_vm4, %v725_v15, %v727_v27  ;;  %v838_v46 = vmul.f32 %v836_v34, %v3057_v14 }
 0x128   : > { %v860_v52 = vmul.f32 %v858_v49, %v3048_v8  ;;  %v878_v53 = vstv %s2388_s15  ;;  %v861_v3 = vmul.f32 %v858_v49, %v3101_v44  ;;  %s3311_s15 = sld [smem:[#allocation4]] }
 0x129   : > { %v844_v55 = vrot.slane %v838_v46, 2  ;;  %v879_v61 = vmul.f32 %v878_v53, %v3045_v7  ;;  %v880_v62 = vmul.f32 %v878_v53, %v3057_v14  ;;  %v881_v16 = vmul.f32 %v878_v53, %v3115_v56 }
 0x12a   : > { %561 = vrot.lane.b32.xlu0 %v558_v10, %s2774_s0  ;;  %543 = vrot.lane.b32.xlu1 %v540_v11, %s2774_s0  ;;  %v704_v10 = vrot.slane %v698_v63, 1  ;;  %v739_v11 = vstv %s2381_s25  ;;  %v866_v60 = vrot.slane %v860_v52, 2  ;;  %v984_v46 = vstv %s2393_s7  ;;  %s2396_s25 = sld [smem:[#allocation4 + $0x45]]  ;;  %s3343_s7 = sld [smem:[#allocation4 + $0x4a]] }
 0x12b   : > { %v741_v19 = vmul.f32 %v739_v11, %v3048_v8  ;;  %v742_v28 = vmul.f32 %v739_v11, %v3101_v44  ;;  %v845_v63 = vsel %vm788_vm5, %v843_v51, %v844_v55  ;;  %v885_v9 = vrot.slane %v879_v61, 2 }
 0x12c   : > { %v706_v12 = vsel %vm501_vm4, %v704_v10, %v705_v1  ;;  %v827_v1 = vsel %vm788_vm5, %v824_v41, %v826_v57  ;;  %v888_v23 = vrot.slane %v881_v16, 2  ;;  %v1004_v52 = vstv %s2394_s8  ;;  %s3357_s8 = sld [smem:[#allocation4 + $0x1a]] }
 0x12d   : > { %v749_v37 = vrot.slane %v742_v28, 1  ;;  %v985_v58 = vmul.f32 %v984_v46, %v3038_v0 }
 0x12e   : > { %583 = vrot.lane.b32.xlu0 %v580_v21, %s2775_s6  ;;  %563 = vrot.lane.b32.xlu1 %v560_v22, %s2774_s0  ;;  %v740_v21 = vmul.f32 %v739_v11, %v3038_v0  ;;  %v726_v22 = vsel %vm501_vm4, %v724_v13, %v725_v15  ;;  %v920_v11 = vstv %s2390_s22  ;;  %v886_v13 = vrot.slane %v880_v62, 2  ;;  %s2403_s22 = sld [smem:[#allocation4 + $0x18]] }
 0x12f   : > { %v868_v15 = vrot.slane %v861_v3, 2  ;;  %v922_v20 = vmul.f32 %v920_v11, %v3057_v14  ;;  %v923_v34 = vmul.f32 %v920_v11, %v3115_v56  ;;  %v1006_v3 = vmul.f32 %v1004_v52, %v3057_v14 }
 0x131   : > { %v930_v42 = vrot.slane %v923_v34, 2  ;;  %v1012_v16 = vrot.slane %v1006_v3, 2  ;;  %v1165_v3 = vstv %s2402_s29  ;;  %s3419_s29 = sld [smem:[#allocation4 + $0x4c]] }
 0x132   : > { %603 = vrot.lane.b32.xlu0 %v600_v26, %s2775_s6  ;;  %585 = vrot.lane.b32.xlu1 %v582_v29, %s2775_s6  ;;  %v747_v26 = vrot.slane %v741_v19, 1  ;;  %v746_v29 = vrot.slane %v740_v21, 1  ;;  %v921_v19 = vmul.f32 %v920_v11, %v3045_v7  ;;  %v887_v21 = vsel %vm788_vm5, %v885_v9, %v886_v13 }
 0x134   : > { %v748_v35 = vsel %vm501_vm4, %v746_v29, %v747_v26  ;;  %v750_v43 = vsel %vm501_vm4, %v747_v26, %v749_v37  ;;  %v942_v26 = vstv %s2391_s17  ;;  %v927_v28 = vrot.slane %v921_v19, 2  ;;  %s2404_s17 = sld [smem:[#allocation4 + $0x49]] }
 0x135   : > { %v928_v29 = vrot.slane %v922_v20, 2  ;;  %v944_v33 = vmul.f32 %v942_v26, %v3048_v8  ;;  %v1007_v19 = vmul.f32 %v1004_v52, %v3115_v56 }
 0x136   : > { %625 = vrot.lane.b32.xlu0 %v622_v39, %s2776_s12  ;;  %605 = vrot.lane.b32.xlu1 %v602_v40, %s2775_s6  ;;  %v817_v39 = vmul.f32 %v816_v30, %v3038_v0  ;;  %v768_v40 = vsel %vm501_vm4, %v766_v31, %v767_v32  ;;  %v962_v30 = vstv %s2392_s3  ;;  %v889_v31 = vsel %vm788_vm5, %v886_v13, %v888_v23  ;;  %s3341_s3 = sld [smem:[#allocation4 + $0x19]] }
 0x137   : > { %v929_v37 = vsel %vm788_vm5, %v927_v28, %v928_v29  ;;  %v965_v51 = vmul.f32 %v962_v30, %v3115_v56 }
 0x139   : > { %v972_v62 = vrot.slane %v965_v51, 2 }
 0x13a   : > { %645 = vrot.lane.b32.xlu0 %v642_v45, %s2776_s12  ;;  %627 = vrot.lane.b32.xlu1 %v624_v48, %s2776_s12  ;;  %v769_v45 = vrot.slane %v762_v38, 1  ;;  %v823_v48 = vrot.slane %v817_v39, 2  ;;  %v963_v38 = vmul.f32 %v962_v30, %v3045_v7  ;;  %v964_v39 = vmul.f32 %v962_v30, %v3057_v14 }
 0x13c   : > { %v825_v50 = vsel %vm788_vm5, %v823_v48, %v824_v41  ;;  %v950_v41 = vrot.slane %v944_v33, 2 }
 0x13e   : > { %667 = vrot.lane.b32.xlu0 %v664_v54, %s2777_s4  ;;  %647 = vrot.lane.b32.xlu1 %v644_v59, %s2776_s12  ;;  %v770_v54 = vsel %vm501_vm4, %v767_v32, %v769_v45  ;;  %v859_v59 = vmul.f32 %v858_v49, %v3038_v0  ;;  %v969_v49 = vrot.slane %v963_v38, 2  ;;  %v1123_v38 = vstv %s2400_s28  ;;  %s3409_s28 = sld [smem:[#allocation4 + $0x1b]] }
 0x13f   : > { %v1124_v51 = vmul.f32 %v1123_v38, %v3045_v7 }
 0x142   : > { %687 = vrot.lane.b32.xlu0 %v684_v4, %s2777_s4  ;;  %669 = vrot.lane.b32.xlu1 %v666_v5, %s2777_s4  ;;  %v865_v4 = vrot.slane %v859_v59, 2  ;;  %v900_v5 = vstv %s2389_s30  ;;  %s3315_s30 = sld [smem:[#allocation4 + $0x31]] }
 0x143   : > { %v902_v10 = vmul.f32 %v900_v5, %v3048_v8  ;;  %v903_v24 = vmul.f32 %v900_v5, %v3101_v44 }
 0x144   : > { %v867_v6 = vsel %vm788_vm5, %v865_v4, %v866_v60  ;;  %v987_v4 = vmul.f32 %v984_v46, %v3101_v44 }
 0x145   : > { %v908_v18 = vrot.slane %v902_v10, 2  ;;  %v910_v32 = vrot.slane %v903_v24, 2 }
 0x146   : > { %709 = vrot.lane.b32.xlu0 %v706_v12, %s2778_s23  ;;  %689 = vrot.lane.b32.xlu1 %v686_v17, %s2777_s4  ;;  %v847_v12 = vsel %vm788_vm5, %v844_v55, %v846_v2  ;;  %v901_v17 = vmul.f32 %v900_v5, %v3038_v0  ;;  %v970_v55 = vrot.slane %v964_v39, 2  ;;  %v991_v5 = vrot.slane %v985_v58, 2 }
 0x147   : > { %v1145_v58 = vstv %s2401_s2  ;;  %s3411_s2 = sld [smem:[#allocation4 + $0x1d]] }
 0x14a   : > { %729 = vrot.lane.b32.xlu0 %v726_v22, %s2778_s23  ;;  %711 = vrot.lane.b32.xlu1 %v708_v25, %s2778_s23  ;;  %v869_v22 = vsel %vm788_vm5, %v866_v60, %v868_v15  ;;  %v907_v25 = vrot.slane %v901_v17, 2  ;;  %v1046_v15 = vstv %s2396_s25  ;;  %v994_v17 = vrot.slane %v987_v4, 2  ;;  %s3385_s25 = sld [smem:[#allocation4 + $0x7]] }
 0x14b   : > { %v1047_v23 = vmul.f32 %v1046_v15, %v3045_v7  ;;  %v1048_v24 = vmul.f32 %v1046_v15, %v3057_v14 }
 0x14c   : > { %v909_v27 = vsel %vm788_vm5, %v907_v25, %v908_v18 }
 0x14d   : > { %v1053_v34 = vrot.slane %v1047_v23, 2 }
 0x14e   : > { %751 = vrot.lane.b32.xlu0 %v748_v35, %s2779_s20  ;;  %731 = vrot.lane.b32.xlu1 %v728_v36, %s2778_s23  ;;  %v943_v35 = vmul.f32 %v942_v26, %v3038_v0 }
 0x150   : > { %v949_v45 = vrot.slane %v943_v35, 2  ;;  %v1054_v35 = vrot.slane %v1048_v24, 2  ;;  %v1148_v24 = vmul.f32 %v1145_v58, %v3101_v44 }
 0x152   : > { %771 = vrot.lane.b32.xlu0 %v768_v40, %s2779_s20  ;;  %753 = vrot.lane.b32.xlu1 %v750_v43, %s2779_s20  ;;  %v911_v40 = vsel %vm788_vm5, %v908_v18, %v910_v32  ;;  %v945_v43 = vmul.f32 %v942_v26, %v3101_v44  ;;  %v951_v53 = vsel %vm788_vm5, %v949_v45, %v950_v41 }
 0x154   : > { %v952_v57 = vrot.slane %v945_v43, 2 }
 0x156   : > { %828 = vrot.lane.b32.xlu0 %v825_v50, %s2774_s0  ;;  %773 = vrot.lane.b32.xlu1 %v770_v54, %s2779_s20  ;;  %v986_v50 = vmul.f32 %v984_v46, %v3048_v8  ;;  %v931_v54 = vsel %vm788_vm5, %v928_v29, %v930_v42  ;;  %v953_v2 = vsel %vm788_vm5, %v950_v41, %v952_v57  ;;  %v1014_v29 = vrot.slane %v1007_v19, 2 }
 0x157   : > { %v1049_v42 = vmul.f32 %v1046_v15, %v3115_v56 }
 0x158   : > { %v992_v61 = vrot.slane %v986_v50, 2 }
 0x15a   : > { %848 = vrot.lane.b32.xlu0 %v845_v63, %s2774_s0  ;;  %830 = vrot.lane.b32.xlu1 %v827_v1, %s2774_s0  ;;  %v1005_v63 = vmul.f32 %v1004_v52, %v3045_v7  ;;  %v971_v1 = vsel %vm788_vm5, %v969_v49, %v970_v55  ;;  %v993_v11 = vsel %vm788_vm5, %v991_v5, %v992_v61 }
 0x15b   : > { %v1055_v49 = vsel %vm788_vm5, %v1053_v34, %v1054_v35 }
 0x15c   : > { %v1011_v13 = vrot.slane %v1005_v63, 2  ;;  %v1130_v63 = vrot.slane %v1124_v51, 3 }
 0x15e   : > { %870 = vrot.lane.b32.xlu0 %v867_v6, %s2775_s6  ;;  %850 = vrot.lane.b32.xlu1 %v847_v12, %s2774_s0  ;;  %v1026_v6 = vstv %s2395_s21  ;;  %v973_v12 = vsel %vm788_vm5, %v970_v55, %v972_v62  ;;  %v1013_v26 = vsel %vm788_vm5, %v1011_v13, %v1012_v16  ;;  %s3371_s21 = sld [smem:[#allocation4 + $0x4b]] }
 0x15f   : > { %v1028_v18 = vmul.f32 %v1026_v6, %v3048_v8  ;;  %v1027_v20 = vmul.f32 %v1026_v6, %v3038_v0  ;;  %v1029_v25 = vmul.f32 %v1026_v6, %v3101_v44 }
 0x161   : > { %v1034_v28 = vrot.slane %v1028_v18, 2  ;;  %v1033_v30 = vrot.slane %v1027_v20, 2  ;;  %v1167_v18 = vmul.f32 %v1165_v3, %v3057_v14 }
 0x162   : > { %890 = vrot.lane.b32.xlu0 %v887_v21, %s2775_s6  ;;  %872 = vrot.lane.b32.xlu1 %v869_v22, %s2775_s6 }
 0x163   : > { %v1035_v39 = vsel %vm788_vm5, %v1033_v30, %v1034_v28  ;;  %v1173_v34 = vrot.slane %v1167_v18, 3 }
 0x166   : > { %912 = vrot.lane.b32.xlu0 %v909_v27, %s2776_s12  ;;  %892 = vrot.lane.b32.xlu1 %v889_v31, %s2775_s6  ;;  %v995_v27 = vsel %vm788_vm5, %v992_v61, %v994_v17  ;;  %v1103_v31 = vstv %s2399_s24  ;;  %v1166_v17 = vmul.f32 %v1165_v3, %v3045_v7  ;;  %s3387_s24 = sld [smem:[#allocation4 + $0x38]] }
 0x167   : > { %v1105_v41 = vmul.f32 %v1103_v31, %v3048_v8  ;;  %v1104_v43 = vmul.f32 %v1103_v31, %v3038_v0  ;;  %v1106_v55 = vmul.f32 %v1103_v31, %v3101_v44 }
 0x168   : > { %v3238_v36 = vpop.permute.xlu0 %331  ;;  %v1172_v31 = vrot.slane %v1166_v17, 3 }
 0x169   : > { %v1111_v52 = vrot.slane %v1105_v41, 3  ;;  %v1110_v57 = vrot.slane %v1104_v43, 3  ;;  %v1168_v41 = vmul.f32 %v1165_v3, %v3115_v56 }
 0x16a   : > { %932 = vrot.lane.b32.xlu0 %v929_v37, %s2776_s12  ;;  %914 = vrot.lane.b32.xlu1 %v911_v40, %s2776_s12  ;;  %v1036_v37 = vrot.slane %v1029_v25, 2  ;;  %v1015_v40 = vsel %vm788_vm5, %v1012_v16, %v1014_v29  ;;  %v314_v25 = vstv %s3311_s15  ;;  %s3437_s15 = sld [smem:[#allocation4 + $0x4e]] }
 0x16b   : > { %v1112_v4 = vsel %vm1075_vm6, %v1110_v57, %v1111_v52  ;;  %v1175_v57 = vrot.slane %v1168_v41, 3 }
 0x16c   : > { %v3247_v47 = vpop.permute.xlu1 %333  ;;  %v3249_v48 = vpop.permute.xlu0 %344  ;;  %v1037_v50 = vsel %vm788_vm5, %v1034_v28, %v1036_v37  ;;  %v1187_v28 = vstv %s2403_s22  ;;  %v1207_v37 = vstv %s2404_s17  ;;  %s3532_s22 = sld [smem:[#allocation4 + $0x4f]] }
 0x16d   : > { %s3557_s17 = sld [smem:[#allocation4 + $0x1f]] }
 0x16e   : > { %954 = vrot.lane.b32.xlu0 %v951_v53, %s2777_s4  ;;  %934 = vrot.lane.b32.xlu1 %v931_v54, %s2776_s12  ;;  %v1056_v53 = vrot.slane %v1049_v42, 2  ;;  %v1125_v54 = vmul.f32 %v1123_v38, %v3057_v14  ;;  %v1188_v42 = vmul.f32 %v1187_v28, %v3038_v0 }
 0x170   : > { %v3258_v59 = vpop.permute.xlu1 %346  ;;  %v3260_v60 = vpop.permute.xlu0 %359  ;;  %v1057_v5 = vsel %vm788_vm5, %v1054_v35, %v1056_v53  ;;  %v1131_v6 = vrot.slane %v1125_v54, 3  ;;  %v1189_v35 = vmul.f32 %v1187_v28, %v3048_v8  ;;  %v1208_v54 = vmul.f32 %v1207_v37, %v3045_v7 }
 0x172   : > { %974 = vrot.lane.b32.xlu0 %v971_v1, %s2777_s4  ;;  %956 = vrot.lane.b32.xlu1 %v953_v2, %s2777_s4  ;;  %v1147_v1 = vmul.f32 %v1145_v58, %v3048_v8  ;;  %v1126_v2 = vmul.f32 %v1123_v38, %v3115_v56  ;;  %v1132_v19 = vsel %vm1075_vm6, %v1130_v63, %v1131_v6  ;;  %v1195_v53 = vrot.slane %v1189_v35, 3 }
 0x173   : > { %v1190_v63 = vmul.f32 %v1187_v28, %v3101_v44  ;;  %v1214_v17 = vrot.slane %v1208_v54, 3  ;;  %v1271_v28 = vstv %s3357_s8  ;;  %s3575_s8 = sld [smem:[#allocation4 + $0x20]] }
 0x174   : > { %v3269_v9 = vpop.permute.xlu1 %361  ;;  %v3271_v10 = vpop.permute.xlu0 %372  ;;  %v1153_v16 = vrot.slane %v1147_v1, 3  ;;  %v1133_v23 = vrot.slane %v1126_v2, 3  ;;  %v1194_v1 = vrot.slane %v1188_v42, 3  ;;  %v1272_v54 = vmul.f32 %v1271_v28, %v3038_v0 }
 0x176   : > { %996 = vrot.lane.b32.xlu0 %v993_v11, %s2778_s23  ;;  %976 = vrot.lane.b32.xlu1 %v973_v12, %s2777_s4  ;;  %v1113_v11 = vrot.slane %v1106_v55, 3  ;;  %v1146_v12 = vmul.f32 %v1145_v58, %v3038_v0  ;;  %v1209_v58 = vmul.f32 %v1207_v37, %v3057_v14 }
 0x178   : > { %v3280_v21 = vpop.permute.xlu1 %374  ;;  %v3282_v22 = vpop.permute.xlu0 %387  ;;  %v1114_v20 = vsel %vm1075_vm6, %v1111_v52, %v1113_v11  ;;  %v1174_v52 = vsel %vm1075_vm6, %v1172_v31, %v1173_v34 }
 0x17a   : > { %1016 = vrot.lane.b32.xlu0 %v1013_v26, %s2778_s23  ;;  %998 = vrot.lane.b32.xlu1 %v995_v27, %s2778_s23  ;;  %v319_v26 = vstv %s3315_s30  ;;  %v1152_v27 = vrot.slane %v1146_v12, 3  ;;  %s3510_s30 = sld [smem:[#allocation4 + $0x1e]] }
 0x17b   : > { %v320_v43 = vmul.f32 %v319_v26, %v3045_v7  ;;  %v321_v3 = vmul.f32 %v319_v26, %v3057_v14 }
 0x17c   : > { %v3291_v32 = vpop.permute.xlu1 %389  ;;  %v3293_v33 = vpop.permute.xlu0 %400  ;;  %v1154_v38 = vsel %vm1075_vm6, %v1152_v27, %v1153_v16 }
 0x17e   : > { %1038 = vrot.lane.b32.xlu0 %v1035_v39, %s2779_s20  ;;  %1018 = vrot.lane.b32.xlu1 %v1015_v40, %s2778_s23  ;;  %v1134_v39 = vsel %vm1075_vm6, %v1131_v6, %v1133_v23  ;;  %v1155_v40 = vrot.slane %v1148_v24, 3  ;;  %v316_v6 = vmul.f32 %v314_v25, %v3048_v8  ;;  %v1197_v23 = vrot.slane %v1190_v63, 3 }
 0x17f   : > { %v1210_v24 = vmul.f32 %v1207_v37, %v3115_v56 }
 0x180   : > { %v3302_v45 = vpop.permute.xlu1 %402  ;;  %v3304_v46 = vpop.permute.xlu0 %415  ;;  %v1156_v55 = vsel %vm1075_vm6, %v1153_v16, %v1155_v40  ;;  %v1196_v16 = vsel %vm1075_vm6, %v1194_v1, %v1195_v53  ;;  %v323_v27 = vadd.f32 %v321_v3, %v316_v6  ;;  %v494_v6 = vstv %s3385_s25  ;;  %s3591_s25 = sld [smem:[#allocation4 + $0x21]] }
 0x181   : > { %v1217_v42 = vrot.slane %v1210_v24, 3 }
 0x182   : > { %1058 = vrot.lane.b32.xlu0 %v1055_v49, %s2779_s20  ;;  %1040 = vrot.lane.b32.xlu1 %v1037_v50, %s2779_s20  ;;  %v315_v49 = vmul.f32 %v314_v25, %v3038_v0 }
 0x184   : > { %v3317_v61 = vpop.permute.xlu1 %417  ;;  %v3319_v62 = vpop.permute.xlu0 %428  ;;  %v322_v2 = vadd.f32 %v320_v43, %v315_v49  ;;  %v1291_v49 = vstv %s3371_s21  ;;  %s3589_s21 = sld [smem:[#allocation4 + $0x3f]] }
 0x185   : > { %v1292_v24 = vmul.f32 %v1291_v49, %v3045_v7 }
 0x186   : > { %1115 = vrot.lane.b32.xlu0 %v1112_v4, %s2774_s0  ;;  %1060 = vrot.lane.b32.xlu1 %v1057_v5, %s2779_s20  ;;  %v1229_v4 = vstv %s3341_s3  ;;  %v1249_v5 = vstv %s3343_s7  ;;  %v337_v26 = vadd.f32 %v3238_v36, %v322_v2  ;;  %v1198_v36 = vsel %vm1075_vm6, %v1195_v53, %v1197_v23  ;;  %s3559_s3 = sld [smem:[#allocation4 + $0x50]]  ;;  %s3573_s7 = sld [smem:[#allocation4 + $0xe]] }
 0x187   : > { %v1231_v18 = vmul.f32 %v1229_v4, %v3048_v8  ;;  %v1230_v25 = vmul.f32 %v1229_v4, %v3038_v0  ;;  %v1250_v37 = vmul.f32 %v1249_v5, %v3045_v7  ;;  %v3417_v53 = vmul.f32 %v1271_v28, %v3048_v8 }
 0x188   : > { %v3328_v13 = vpop.permute.xlu1 %430  ;;  %v3330_v15 = vpop.permute.xlu0 %443  ;;  %v350_v40 = vadd.f32 %v3249_v48, %v337_v26 }
 0x189   : > { %v1237_v35 = vrot.slane %v1231_v18, 3  ;;  %v1236_v43 = vrot.slane %v1230_v25, 3  ;;  %v1256_v63 = vrot.slane %v1250_v37, 3  ;;  %v1279_v18 = vrot.slane %v3417_v53, 3 }
 0x18a   : > { %1135 = vrot.lane.b32.xlu0 %v1132_v19, %s2774_s0  ;;  %1117 = vrot.lane.b32.xlu1 %v1114_v20, %s2774_s0  ;;  %v1176_v19 = vsel %vm1075_vm6, %v1173_v34, %v1175_v57  ;;  %v1215_v20 = vrot.slane %v1209_v58, 3  ;;  %v365_v48 = vadd.f32 %v3260_v60, %v350_v40  ;;  %v1313_v37 = vstv %s3409_s28  ;;  %s3610_s28 = sld [smem:[#allocation4 + $0x52]] }
 0x18b   : > { %v1238_v58 = vsel %vm1075_vm6, %v1236_v43, %v1237_v35  ;;  %v1294_v43 = vmul.f32 %v1291_v49, %v3115_v56  ;;  %v3476_v53 = vmul.f32 %v494_v6, %v3048_v8 }
 0x18c   : > { %v3345_v29 = vpop.permute.xlu1 %445  ;;  %v3347_v30 = vpop.permute.xlu0 %456  ;;  %v1216_v41 = vsel %vm1075_vm6, %v1214_v17, %v1215_v20  ;;  %v378_v60 = vadd.f32 %v3271_v10, %v365_v48  ;;  %v1218_v3 = vsel %vm1075_vm6, %v1215_v20, %v1217_v42  ;;  %v1278_v10 = vrot.slane %v1272_v54, 3 }
 0x18d   : > { %v3468_v42 = vmul.f32 %v1313_v37, %v3048_v8  ;;  %v495_v54 = vmul.f32 %v494_v6, %v3038_v0 }
 0x18e   : > { %1157 = vrot.lane.b32.xlu0 %v1154_v38, %s2775_s6  ;;  %1137 = vrot.lane.b32.xlu1 %v1134_v39, %s2774_s0  ;;  %v3400_v38 = vmul.f32 %v1249_v5, %v3057_v14  ;;  %v1232_v39 = vmul.f32 %v1229_v4, %v3101_v44  ;;  %v1252_v4 = vmul.f32 %v1249_v5, %v3115_v56 }
 0x18f   : > { %v1280_v40 = vsel %vm1075_vm6, %v1278_v10, %v1279_v18  ;;  %v1316_v10 = vmul.f32 %v1313_v37, %v3101_v44 }
 0x190   : > { %v3360_v50 = vpop.permute.xlu1 %458  ;;  %v3362_v51 = vpop.permute.xlu0 %471  ;;  %v1257_v1 = vrot.slane %v3400_v38, 3  ;;  %v1259_v26 = vrot.slane %v1252_v4, 3  ;;  %v3457_v38 = vstv %s3411_s2  ;;  %v1321_v4 = vrot.slane %v3468_v42, 3  ;;  %s3612_s2 = sld [smem:[#allocation4 + $0x22]] }
 0x192   : > { %1177 = vrot.lane.b32.xlu0 %v1174_v52, %s2775_s6  ;;  %1159 = vrot.lane.b32.xlu1 %v1156_v55, %s2775_s6  ;;  %v338_v52 = vadd.f32 %v3247_v47, %v323_v27  ;;  %v1239_v47 = vrot.slane %v1232_v39, 3  ;;  %v1258_v20 = vsel %vm1075_vm6, %v1256_v63, %v1257_v1  ;;  %v1274_v27 = vmul.f32 %v1271_v28, %v3101_v44 }
 0x193   : > { %v1298_v28 = vrot.slane %v1292_v24, 3  ;;  %v3482_v63 = vstv %s3437_s15  ;;  %v497_v24 = vmul.f32 %v494_v6, %v3101_v44  ;;  %s3739_s15 = sld [smem:[#allocation4 + $0x24]] }
 0x194   : > { %v3377_v11 = vpop.permute.xlu1 %473  ;;  %v3379_v12 = vpop.permute.xlu0 %484  ;;  %v351_v2 = vadd.f32 %v3258_v59, %v338_v52  ;;  %v393_v59 = vadd.f32 %v3282_v22, %v378_v60  ;;  %v1240_v23 = vsel %vm1075_vm6, %v1237_v35, %v1239_v47  ;;  %v1281_v48 = vrot.slane %v1274_v27, 3 }
 0x196   : > { %1199 = vrot.lane.b32.xlu0 %v1196_v16, %s2776_s12  ;;  %1179 = vrot.lane.b32.xlu1 %v1176_v19, %s2775_s6  ;;  %v3433_v16 = vstv %s3387_s24  ;;  %v366_v17 = vadd.f32 %v3269_v9, %v351_v2  ;;  %v1293_v9 = vmul.f32 %v1291_v49, %v3057_v14  ;;  %v406_v22 = vadd.f32 %v3293_v33, %v393_v59  ;;  %s3596_s24 = sld [smem:[#allocation4 + $0x51]] }
 0x197   : > { %v512_v47 = vmul.f32 %v3433_v16, %v3045_v7  ;;  %v1282_v59 = vsel %vm1075_vm6, %v1279_v18, %v1281_v48  ;;  %v1393_v48 = vmul.f32 %v3457_v38, %v3101_v44 }
 0x198   : > { %v3394_v31 = vpop.permute.xlu1 %486  ;;  %v3396_v34 = vpop.permute.xlu0 %541  ;;  %v379_v25 = vadd.f32 %v3280_v21, %v366_v17  ;;  %v421_v39 = vadd.f32 %v3304_v46, %v406_v22  ;;  %v1260_v46 = vsel %vm1075_vm6, %v1257_v1, %v1259_v26  ;;  %v1301_v17 = vrot.slane %v1294_v43, 3 }
 0x199   : > { %v502_v22 = vrot.slane %v495_v54, 1  ;;  %v518_v42 = vrot.slane %v512_v47, 1  ;;  %v1411_v54 = vmul.f32 %v3482_v63, %v3045_v7 }
 0x19a   : > { %1219 = vrot.lane.b32.xlu0 %v1216_v41, %s2776_s12  ;;  %1201 = vrot.lane.b32.xlu1 %v1198_v36, %s2776_s12  ;;  %v394_v35 = vadd.f32 %v3291_v32, %v379_v25  ;;  %v1333_v41 = vstv %s3419_s29  ;;  %v1299_v36 = vrot.slane %v1293_v9, 3  ;;  %v434_v32 = vadd.f32 %v3319_v62, %v421_v39  ;;  %s3638_s29 = sld [smem:[#allocation4 + $0x53]] }
 0x19b   : > { %v1334_v49 = vmul.f32 %v1333_v41, %v3045_v7  ;;  %v3488_v1 = vmul.f32 %v1333_v41, %v3057_v14 }
 0x19c   : > { %v3421_v55 = vpop.permute.xlu1 %543  ;;  %v3423_v57 = vpop.permute.xlu0 %561  ;;  %v407_v52 = vadd.f32 %v3302_v45, %v394_v35  ;;  %v449_v62 = vadd.f32 %v3330_v15, %v434_v32  ;;  %v1392_v35 = vmul.f32 %v3457_v38, %v3048_v8 }
 0x19d   : > { %v1340_v18 = vrot.slane %v1334_v49, 3  ;;  %v1341_v25 = vrot.slane %v3488_v1, 3 }
 0x19e   : > { %1241 = vrot.lane.b32.xlu0 %v1238_v58, %s2777_s4  ;;  %1221 = vrot.lane.b32.xlu1 %v1218_v3, %s2776_s12  ;;  %v1314_v58 = vmul.f32 %v1313_v37, %v3038_v0  ;;  %v422_v45 = vadd.f32 %v3317_v61, %v407_v52  ;;  %v1300_v3 = vsel %vm1075_vm6, %v1298_v28, %v1299_v36 }
 0x19f   : > { %v462_v15 = vadd.f32 %v3347_v30, %v449_v62  ;;  %v1302_v37 = vsel %vm1075_vm6, %v1299_v36, %v1301_v17  ;;  %v514_v52 = vmul.f32 %v3433_v16, %v3115_v56  ;;  %v1342_v36 = vsel %vm1075_vm6, %v1340_v18, %v1341_v25 }
 0x1a0   : > { %v3442_v19 = vpop.permute.xlu1 %563  ;;  %v3444_v5 = vpop.permute.xlu0 %583  ;;  %v435_v61 = vadd.f32 %v3328_v13, %v422_v45  ;;  %v1320_v9 = vrot.slane %v1314_v58, 3  ;;  %v1413_v17 = vmul.f32 %v3482_v63, %v3115_v56 }
 0x1a1   : > { %v477_v30 = vadd.f32 %v3362_v51, %v462_v15  ;;  %v1323_v51 = vrot.slane %v1316_v10, 3  ;;  %v521_v47 = vrot.slane %v514_v52, 1  ;;  %v1417_v15 = vrot.slane %v1411_v54, 4 }
 0x1a2   : > { %1261 = vrot.lane.b32.xlu0 %v1258_v20, %s2777_s4  ;;  %1243 = vrot.lane.b32.xlu1 %v1240_v23, %s2777_s4  ;;  %v503_v20 = vrot.slane %v3476_v53, 1  ;;  %v3505_v23 = vmul.f32 %v3433_v16, %v3057_v14  ;;  %v450_v13 = vadd.f32 %v3345_v29, %v435_v61  ;;  %v1322_v6 = vsel %vm1075_vm6, %v1320_v9, %v1321_v4 }
 0x1a3   : > { %v490_v29 = vadd.f32 %v3379_v12, %v477_v30  ;;  %v505_v12 = vrot.slane %v497_v24, 1  ;;  %v1398_v16 = vrot.slane %v1392_v35, 4  ;;  %v1324_v45 = vsel %vm1075_vm6, %v1321_v4, %v1323_v51 }
 0x1a4   : > { %v3463_v21 = vpop.permute.xlu1 %585  ;;  %v3465_v33 = vpop.permute.xlu0 %603  ;;  %v463_v39 = vadd.f32 %v3360_v50, %v450_v13  ;;  %v504_v28 = vsel %vm501_vm4, %v502_v22, %v503_v20  ;;  %v519_v43 = vrot.slane %v3505_v23, 1  ;;  %v1400_v61 = vrot.slane %v1393_v48, 4 }
 0x1a5   : > { %v509_v53 = vadd.f32 %v504_v28, %v490_v29  ;;  %v506_v1 = vsel %vm501_vm4, %v503_v20, %v505_v12  ;;  %v1452_v13 = vstv %s3532_s22  ;;  %v1420_v18 = vrot.slane %v1413_v17, 4  ;;  %s3773_s22 = sld [smem:[#allocation4 + $0x25]] }
 0x1a6   : > { %1283 = vrot.lane.b32.xlu0 %v1280_v40, %s2778_s23  ;;  %1263 = vrot.lane.b32.xlu1 %v1260_v46, %s2777_s4  ;;  %v1336_v40 = vmul.f32 %v1333_v41, %v3115_v56  ;;  %v478_v50 = vadd.f32 %v3377_v11, %v463_v39  ;;  %v1391_v41 = vmul.f32 %v3457_v38, %v3038_v0  ;;  %v1432_v38 = vstv %s3510_s30  ;;  %s3741_s30 = sld [smem:[#allocation4 + $0x55]] }
 0x1a7   : > { %v1412_v11 = vmul.f32 %v3482_v63, %v3057_v14  ;;  %v520_v49 = vsel %vm501_vm4, %v518_v42, %v519_v43  ;;  %v1434_v10 = vmul.f32 %v1432_v38, %v3048_v8  ;;  %v1433_v9 = vmul.f32 %v1432_v38, %v3038_v0 }
 0x1a8   : > { %v3492_v2 = vpop.permute.xlu1 %605  ;;  %v3494_v60 = vpop.permute.xlu0 %625  ;;  %v491_v58 = vadd.f32 %v3394_v31, %v478_v50  ;;  %v1343_v62 = vrot.slane %v1336_v40, 3  ;;  %v525_v20 = vadd.f32 %v520_v49, %v509_v53  ;;  %v522_v30 = vsel %vm501_vm4, %v519_v43, %v521_v47 }
 0x1a9   : > { %v1440_v35 = vrot.slane %v1434_v10, 4  ;;  %v1435_v39 = vmul.f32 %v1432_v38, %v3101_v44  ;;  %v1453_v40 = vmul.f32 %v1452_v13, %v3045_v7  ;;  %v1454_v28 = vmul.f32 %v1452_v13, %v3057_v14 }
 0x1aa   : > { %1303 = vrot.lane.b32.xlu0 %v1300_v3, %s2778_s23  ;;  %1285 = vrot.lane.b32.xlu1 %v1282_v59, %s2778_s23  ;;  %v1397_v3 = vrot.slane %v1391_v41, 4  ;;  %v1418_v59 = vrot.slane %v1412_v11, 4  ;;  %v510_v23 = vadd.f32 %v506_v1, %v491_v58  ;;  %v1344_v63 = vsel %vm1075_vm6, %v1341_v25, %v1343_v62 }
 0x1ab   : > { %v1401_v25 = vsel %vm1362_vm7, %v1398_v16, %v1400_v61  ;;  %v547_v51 = vadd.f32 %v3396_v34, %v525_v20  ;;  %v1439_v42 = vrot.slane %v1433_v9, 4  ;;  %v1474_v52 = vstv %s3557_s17  ;;  %s3778_s17 = sld [smem:[#allocation4 + $0x56]] }
 0x1ac   : > { %v3515_v26 = vpop.permute.xlu1 %627  ;;  %v3517_v27 = vpop.permute.xlu0 %645  ;;  %v1399_v24 = vsel %vm1362_vm7, %v1397_v3, %v1398_v16  ;;  %v526_v29 = vadd.f32 %v522_v30, %v510_v23  ;;  %v1421_v43 = vsel %vm1362_vm7, %v1418_v59, %v1420_v18  ;;  %v1494_v50 = vstv %s3559_s3  ;;  %s3792_s3 = sld [smem:[#allocation4 + $0x15]] }
 0x1ad   : > { %v1442_v41 = vrot.slane %v1435_v39, 4  ;;  %v1455_v16 = vmul.f32 %v1452_v13, %v3115_v56  ;;  %v1476_v48 = vmul.f32 %v1474_v52, %v3048_v8  ;;  %v567_v11 = vadd.f32 %v3423_v57, %v547_v51 }
 0x1ae   : > { %1325 = vrot.lane.b32.xlu0 %v1322_v6, %s2779_s20  ;;  %1305 = vrot.lane.b32.xlu1 %v1302_v37, %s2778_s23  ;;  %v1419_v37 = vsel %vm1362_vm7, %v1417_v15, %v1418_v59  ;;  %v548_v54 = vadd.f32 %v3421_v55, %v526_v29  ;;  %v1459_v53 = vrot.slane %v1453_v40, 4  ;;  %v1460_v58 = vrot.slane %v1454_v28, 4 }
 0x1af   : > { %v589_v62 = vadd.f32 %v3444_v5, %v567_v11  ;;  %v3616_v49 = vstv %s3573_s7  ;;  %v1477_v55 = vmul.f32 %v1474_v52, %v3101_v44  ;;  %v1516_v57 = vstv %s3575_s8  ;;  %s3796_s7 = sld [smem:[#allocation4 + $0x26]] }
 0x1b0   : > { %v3538_v32 = vpop.permute.xlu1 %647  ;;  %v3540_v46 = vpop.permute.xlu0 %667  ;;  %v1443_v47 = vsel %vm1362_vm7, %v1440_v35, %v1442_v41  ;;  %v1462_v3 = vrot.slane %v1455_v16, 4  ;;  %v1482_v17 = vrot.slane %v1476_v48, 4  ;;  %v1495_v61 = vmul.f32 %v1494_v50, %v3045_v7  ;;  %s3803_s8 = sld [smem:[#allocation4 + $0x46]] }
 0x1b1   : > { %v568_v5 = vadd.f32 %v3442_v19, %v548_v54  ;;  %v609_v15 = vadd.f32 %v3465_v33, %v589_v62  ;;  %v1461_v59 = vsel %vm1362_vm7, %v1459_v53, %v1460_v58  ;;  %v1496_v10 = vmul.f32 %v1494_v50, %v3057_v14 }
 0x1b2   : > { %1345 = vrot.lane.b32.xlu0 %v1342_v36, %s2779_s20  ;;  %1327 = vrot.lane.b32.xlu1 %v1324_v45, %s2779_s20  ;;  %v1441_v36 = vsel %vm1362_vm7, %v1439_v42, %v1440_v35  ;;  %v1475_v45 = vmul.f32 %v1474_v52, %v3038_v0  ;;  %v3633_v20 = vstv %s3589_s21  ;;  %v1484_v33 = vrot.slane %v1477_v55, 4  ;;  %s3805_s21 = sld [smem:[#allocation4 + $0x27]] }
 0x1b3   : > { %v631_v19 = vadd.f32 %v3494_v60, %v609_v15  ;;  %v1536_v9 = vstv %s3596_s24  ;;  %v1463_v18 = vsel %vm1362_vm7, %v1460_v58, %v1462_v3  ;;  %v1497_v35 = vmul.f32 %v1494_v50, %v3115_v56  ;;  %s3829_s24 = sld [smem:[#allocation4 + $0x58]] }
 0x1b4   : > { %v3561_v31 = vpop.permute.xlu1 %669  ;;  %v3563_v4 = vpop.permute.xlu0 %687  ;;  %v1481_v23 = vrot.slane %v1475_v45, 4  ;;  %v1502_v29 = vrot.slane %v1496_v10, 4  ;;  %v1518_v60 = vmul.f32 %v1516_v57, %v3048_v8  ;;  %v3656_v51 = vstv %s3610_s28  ;;  %s3879_s28 = sld [smem:[#allocation4 + $0x28]] }
 0x1b5   : > { %v3659_v40 = vstv %s3612_s2  ;;  %v1504_v50 = vrot.slane %v1497_v35, 4  ;;  %v1537_v41 = vmul.f32 %v1536_v9, %v3045_v7  ;;  %v1538_v16 = vmul.f32 %v1536_v9, %v3057_v14  ;;  %s3891_s2 = sld [smem:[#allocation4 + $0x59]] }
 0x1b6   : > { %1402 = vrot.lane.b32.xlu0 %v1399_v24, %s2774_s0  ;;  %1347 = vrot.lane.b32.xlu1 %v1344_v63, %s2779_s20  ;;  %v3636_v24 = vstv %s3591_s25  ;;  %v590_v63 = vadd.f32 %v3463_v21, %v568_v5  ;;  %v651_v21 = vadd.f32 %v3517_v27, %v631_v19  ;;  %v1524_v54 = vrot.slane %v1518_v60, 4  ;;  %s3813_s25 = sld [smem:[#allocation4 + $0x57]] }
 0x1b7   : > { %v782_v11 = vmul.f32 %v3616_v49, %v3038_v0  ;;  %v3679_v53 = vmul.f32 %v3616_v49, %v3048_v8  ;;  %v3683_v58 = vmul.f32 %v3633_v20, %v3045_v7  ;;  %v1539_v55 = vmul.f32 %v1536_v9, %v3115_v56 }
 0x1b8   : > { %v3577_v22 = vpop.permute.xlu1 %689  ;;  %v3579_v6 = vpop.permute.xlu0 %709  ;;  %v610_v39 = vadd.f32 %v3492_v2, %v590_v63  ;;  %v673_v42 = vadd.f32 %v3540_v46, %v651_v21  ;;  %v1517_v2 = vmul.f32 %v1516_v57, %v3038_v0  ;;  %v1560_v5 = vmul.f32 %v3636_v24, %v3048_v8 }
 0x1b9   : > { %v789_v10 = vrot.slane %v782_v11, 2  ;;  %v3706_v63 = vmul.f32 %v3633_v20, %v3057_v14  ;;  %v1546_v9 = vrot.slane %v1539_v55, 4  ;;  %v1561_v21 = vmul.f32 %v3636_v24, %v3101_v44 }
 0x1ba   : > { %1404 = vrot.lane.b32.xlu1 %v1401_v25, %s2774_s0  ;;  %1422 = vrot.lane.b32.xlu0 %v1419_v37, %s2774_s0  ;;  %v1483_v25 = vsel %vm1362_vm7, %v1481_v23, %v1482_v17  ;;  %v1501_v37 = vrot.slane %v1495_v61, 4  ;;  %v632_v28 = vadd.f32 %v3515_v26, %v610_v39  ;;  %v693_v46 = vadd.f32 %v3563_v4, %v673_v42 }
 0x1bb   : > { %v1523_v62 = vrot.slane %v1517_v2, 4  ;;  %v1544_v61 = vrot.slane %v1538_v16, 4  ;;  %v790_v23 = vrot.slane %v3679_v53, 2  ;;  %v1566_v39 = vrot.slane %v1560_v5, 4 }
 0x1bc   : > { %v3598_v34 = vpop.permute.xlu1 %711  ;;  %v3600_v12 = vpop.permute.xlu0 %729  ;;  %v652_v26 = vadd.f32 %v3538_v32, %v632_v28  ;;  %v1503_v48 = vsel %vm1362_vm7, %v1501_v37, %v1502_v29  ;;  %v3688_v32 = vstv %s3638_s29  ;;  %v715_v45 = vadd.f32 %v3579_v6, %v693_v46  ;;  %s3908_s29 = sld [smem:[#allocation4 + $0x29]] }
 0x1bd   : > { %v1525_v6 = vsel %vm1362_vm7, %v1523_v62, %v1524_v54  ;;  %v791_v60 = vsel %vm788_vm5, %v789_v10, %v790_v23  ;;  %v805_v28 = vrot.slane %v3683_v58, 2  ;;  %v806_v42 = vrot.slane %v3706_v63, 2 }
 0x1be   : > { %1424 = vrot.lane.b32.xlu1 %v1421_v43, %s2774_s0  ;;  %1444 = vrot.lane.b32.xlu0 %v1441_v36, %s2775_s6  ;;  %v1485_v43 = vsel %vm1362_vm7, %v1482_v17, %v1484_v33  ;;  %v1519_v36 = vmul.f32 %v1516_v57, %v3101_v44  ;;  %v674_v4 = vadd.f32 %v3561_v31, %v652_v26  ;;  %v1543_v17 = vrot.slane %v1537_v41, 4 }
 0x1bf   : > { %v1505_v31 = vsel %vm1362_vm7, %v1502_v29, %v1504_v50  ;;  %v784_v33 = vmul.f32 %v3616_v49, %v3101_v44  ;;  %v1579_v49 = vmul.f32 %v3656_v51, %v3045_v7  ;;  %v1580_v29 = vmul.f32 %v3656_v51, %v3057_v14 }
 0x1c0   : > { %v3620_v38 = vpop.permute.xlu1 %731  ;;  %v3622_v1 = vpop.permute.xlu0 %751  ;;  %v1526_v3 = vrot.slane %v1519_v36, 4  ;;  %v694_v15 = vadd.f32 %v3577_v22, %v674_v4  ;;  %v1559_v22 = vmul.f32 %v3636_v24, %v3038_v0  ;;  %v1545_v35 = vsel %vm1362_vm7, %v1543_v17, %v1544_v61 }
 0x1c1   : > { %v1547_v2 = vsel %vm1362_vm7, %v1544_v61, %v1546_v9  ;;  %v1568_v16 = vrot.slane %v1561_v21, 4  ;;  %v1602_v26 = vmul.f32 %v3659_v40, %v3048_v8  ;;  %v1601_v11 = vmul.f32 %v3659_v40, %v3038_v0 }
 0x1c2   : > { %1446 = vrot.lane.b32.xlu1 %v1443_v47, %s2775_s6  ;;  %1464 = vrot.lane.b32.xlu0 %v1461_v59, %s2775_s6  ;;  %v735_v59 = vadd.f32 %v3600_v12, %v715_v45  ;;  %v716_v12 = vadd.f32 %v3598_v34, %v694_v15  ;;  %v1527_v37 = vsel %vm1362_vm7, %v1524_v54, %v1526_v3  ;;  %v1565_v24 = vrot.slane %v1559_v22, 4 }
 0x1c3   : > { %v1586_v54 = vrot.slane %v1580_v29, 4  ;;  %v807_v53 = vsel %vm788_vm5, %v805_v28, %v806_v42  ;;  %v1603_v4 = vmul.f32 %v3659_v40, %v3101_v44  ;;  %v1569_v62 = vsel %vm1362_vm7, %v1566_v39, %v1568_v16 }
 0x1c4   : > { %v3643_v13 = vpop.permute.xlu1 %753  ;;  %v3645_v30 = vpop.permute.xlu0 %771  ;;  %v757_v19 = vadd.f32 %v3622_v1, %v735_v59  ;;  %v736_v34 = vadd.f32 %v3620_v38, %v716_v12  ;;  %v1567_v41 = vsel %vm1362_vm7, %v1565_v24, %v1566_v39  ;;  %v1608_v3 = vrot.slane %v1602_v26, 4 }
 0x1c5   : > { %v1621_v17 = vmul.f32 %v3688_v32, %v3045_v7  ;;  %v1622_v40 = vmul.f32 %v3688_v32, %v3057_v14  ;;  %v1607_v59 = vrot.slane %v1601_v11, 4  ;;  %v1676_v10 = vstv %s3739_s15  ;;  %s3910_s15 = sld [smem:[#allocation4 + $0x5a]] }
 0x1c6   : > { %1466 = vrot.lane.b32.xlu1 %v1463_v18, %s2775_s6  ;;  %1486 = vrot.lane.b32.xlu0 %v1483_v25, %s2776_s12  ;;  %v777_v1 = vadd.f32 %v3645_v30, %v757_v19  ;;  %v758_v38 = vadd.f32 %v3643_v13, %v736_v34  ;;  %v792_v30 = vrot.slane %v784_v33, 2  ;;  %v1581_v13 = vmul.f32 %v3656_v51, %v3115_v56 }
 0x1c7   : > { %v1609_v19 = vsel %vm1362_vm7, %v1607_v59, %v1608_v3  ;;  %v1627_v33 = vrot.slane %v1621_v17, 4  ;;  %v1623_v9 = vmul.f32 %v3688_v32, %v3115_v56  ;;  %v1628_v39 = vrot.slane %v1622_v40, 4 }
 0x1c8   : > { %v3665_v27 = vpop.permute.xlu1 %773  ;;  %v3667_v52 = vpop.permute.xlu0 %828  ;;  %v793_v58 = vsel %vm788_vm5, %v790_v23, %v792_v30  ;;  %v1588_v55 = vrot.slane %v1581_v13, 4  ;;  %v1696_v23 = vstv %s3741_s30  ;;  %v1678_v21 = vmul.f32 %v1676_v10, %v3048_v8  ;;  %s3931_s30 = sld [smem:[#allocation4 + $0x2b]] }
 0x1c9   : > { %v778_v46 = vadd.f32 %v3665_v27, %v758_v38  ;;  %v1679_v29 = vmul.f32 %v1676_v10, %v3101_v44  ;;  %v1698_v28 = vmul.f32 %v1696_v23, %v3057_v14  ;;  %v1629_v38 = vsel %vm1362_vm7, %v1627_v33, %v1628_v39 }
 0x1ca   : > { %1488 = vrot.lane.b32.xlu1 %v1485_v43, %s2776_s12  ;;  %1506 = vrot.lane.b32.xlu0 %v1503_v48, %s2776_s12  ;;  %v801_v43 = vmul.f32 %v3633_v20, %v3115_v56  ;;  %v796_v20 = vadd.f32 %v791_v60, %v777_v1  ;;  %v1585_v48 = vrot.slane %v1579_v49, 4  ;;  %v1589_v12 = vsel %vm1362_vm7, %v1586_v54, %v1588_v55 }
 0x1cb   : > { %v797_v5 = vadd.f32 %v793_v58, %v778_v46  ;;  %v1677_v1 = vmul.f32 %v1676_v10, %v3038_v0  ;;  %v1697_v60 = vmul.f32 %v1696_v23, %v3045_v7  ;;  %v1684_v30 = vrot.slane %v1678_v21, 5 }
 0x1cc   : > { %v3693_v57 = vpop.permute.xlu1 %830  ;;  %v3695_v47 = vpop.permute.xlu0 %848  ;;  %v808_v51 = vrot.slane %v801_v43, 2  ;;  %v812_v61 = vadd.f32 %v807_v53, %v796_v20  ;;  %v1587_v15 = vsel %vm1362_vm7, %v1585_v48, %v1586_v54  ;;  %v1718_v43 = vstv %s3773_s22  ;;  %s3936_s22 = sld [smem:[#allocation4 + $0x5c]] }
 0x1cd   : > { %v1699_v16 = vmul.f32 %v1696_v23, %v3115_v56  ;;  %v1738_v13 = vstv %s3778_s17  ;;  %v1686_v20 = vrot.slane %v1679_v29, 5  ;;  %v1703_v46 = vrot.slane %v1697_v60, 5  ;;  %s3953_s17 = sld [smem:[#allocation4 + $0x2c]] }
 0x1ce   : > { %1508 = vrot.lane.b32.xlu1 %v1505_v31, %s2776_s12  ;;  %1528 = vrot.lane.b32.xlu0 %v1525_v6, %s2777_s4  ;;  %v809_v31 = vsel %vm788_vm5, %v806_v42, %v808_v51  ;;  %v1610_v6 = vrot.slane %v1603_v4, 4  ;;  %v1704_v48 = vrot.slane %v1698_v28, 5  ;;  %v1719_v58 = vmul.f32 %v1718_v43, %v3038_v0 }
 0x1cf   : > { %v1721_v51 = vmul.f32 %v1718_v43, %v3101_v44  ;;  %v1739_v4 = vmul.f32 %v1738_v13, %v3045_v7  ;;  %v3834_v55 = vmul.f32 %v1738_v13, %v3057_v14  ;;  %v1085_v40 = vstv %s3803_s8  ;;  %s3976_s8 = sld [smem:[#allocation4 + $0x5e]] }
 0x1d0   : > { %v3716_v18 = vpop.permute.xlu1 %850  ;;  %v3718_v25 = vpop.permute.xlu0 %870  ;;  %v1611_v34 = vsel %vm1362_vm7, %v1608_v3, %v1610_v6  ;;  %v1760_v3 = vstv %s3796_s7  ;;  %v3840_v59 = vstv %s3805_s21  ;;  %v1725_v10 = vrot.slane %v1719_v58, 5  ;;  %s2445_s7 = sld [smem:[#allocation4 + $0x2d]]  ;;  %s2447_s21 = sld [smem:[#allocation4 + $0x2e]] }
 0x1d1   : > { %v1728_v23 = vrot.slane %v1721_v51, 5  ;;  %v1086_v29 = vmul.f32 %v1085_v40, %v3045_v7  ;;  %v1087_v28 = vmul.f32 %v1085_v40, %v3057_v14 }
 0x1d2   : > { %1530 = vrot.lane.b32.xlu1 %v1527_v37, %s2777_s4  ;;  %1548 = vrot.lane.b32.xlu0 %v1545_v35, %s2777_s4  ;;  %v813_v37 = vadd.f32 %v809_v31, %v797_v5  ;;  %v834_v35 = vadd.f32 %v3667_v52, %v812_v61  ;;  %v1630_v52 = vrot.slane %v1623_v9, 4  ;;  %v1687_v5 = vsel %vm259_vm1, %v1684_v30, %v1686_v20 }
 0x1d4   : > { %v3743_v50 = vpop.permute.xlu1 %872  ;;  %v3745_v36 = vpop.permute.xlu0 %890  ;;  %v835_v42 = vadd.f32 %v3693_v57, %v813_v37  ;;  %v854_v24 = vadd.f32 %v3695_v47, %v834_v35  ;;  %v1631_v47 = vsel %vm1362_vm7, %v1628_v39, %v1630_v52  ;;  %v1746_v37 = vrot.slane %v3834_v55, 5 }
 0x1d6   : > { %1550 = vrot.lane.b32.xlu1 %v1547_v2, %s2777_s4  ;;  %1570 = vrot.lane.b32.xlu0 %v1567_v41, %s2778_s23  ;;  %v876_v2 = vadd.f32 %v3718_v25, %v854_v24  ;;  %v1683_v41 = vrot.slane %v1677_v1, 5  ;;  %v855_v54 = vadd.f32 %v3716_v18, %v835_v42  ;;  %v1720_v25 = vmul.f32 %v1718_v43, %v3048_v8 }
 0x1d7   : > { %v1762_v1 = vmul.f32 %v1760_v3, %v3048_v8  ;;  %v1761_v42 = vmul.f32 %v1760_v3, %v3038_v0  ;;  %v3866_v24 = vstv %s3829_s24  ;;  %s2450_s24 = sld [smem:[#allocation4 + $0x60]] }
 0x1d8   : > { %v3761_v45 = vpop.permute.xlu1 %892  ;;  %v3763_v27 = vpop.permute.xlu0 %912  ;;  %v896_v11 = vadd.f32 %v3745_v36, %v876_v2  ;;  %v1685_v53 = vsel %vm259_vm1, %v1683_v41, %v1684_v30  ;;  %v877_v18 = vadd.f32 %v3743_v50, %v855_v54  ;;  %v1705_v50 = vsel %vm259_vm1, %v1703_v46, %v1704_v48 }
 0x1d9   : > { %v1092_v54 = vrot.slane %v1086_v29, 3 }
 0x1da   : > { %1572 = vrot.lane.b32.xlu1 %v1569_v62, %s2778_s23  ;;  %1590 = vrot.lane.b32.xlu0 %v1587_v15, %s2778_s23  ;;  %v1068_v62 = vstv %s3792_s3  ;;  %v918_v36 = vadd.f32 %v3763_v27, %v896_v11  ;;  %v1706_v15 = vrot.slane %v1699_v16, 5  ;;  %v897_v31 = vadd.f32 %v3761_v45, %v877_v18  ;;  %s3956_s3 = sld [smem:[#allocation4 + $0x5d]] }
 0x1db   : > { %v1726_v27 = vrot.slane %v1720_v25, 5  ;;  %v1741_v45 = vmul.f32 %v1738_v13, %v3115_v56  ;;  %v1069_v21 = vmul.f32 %v1068_v62, %v3038_v0  ;;  %v1768_v16 = vrot.slane %v1762_v1, 5 }
 0x1dc   : > { %v3780_v63 = vpop.permute.xlu1 %914  ;;  %v3782_v22 = vpop.permute.xlu0 %932  ;;  %v1707_v39 = vsel %vm259_vm1, %v1704_v48, %v1706_v15  ;;  %v1763_v13 = vmul.f32 %v1760_v3, %v3101_v44  ;;  %v1767_v11 = vrot.slane %v1761_v42, 5  ;;  %v1088_v25 = vmul.f32 %v1085_v40, %v3115_v56 }
 0x1dd   : > { %v938_v6 = vadd.f32 %v3782_v22, %v918_v36  ;;  %v919_v33 = vadd.f32 %v3780_v63, %v897_v31  ;;  %v1729_v60 = vsel %vm259_vm1, %v1726_v27, %v1728_v23  ;;  %v1748_v43 = vrot.slane %v1741_v45, 5 }
 0x1de   : > { %1592 = vrot.lane.b32.xlu1 %v1589_v12, %s2778_s23  ;;  %1612 = vrot.lane.b32.xlu0 %v1609_v19, %s2779_s20  ;;  %v1745_v12 = vrot.slane %v1739_v4, 5  ;;  %v1780_v19 = vstv %s3813_s25  ;;  %v1076_v4 = vrot.slane %v1069_v21, 3  ;;  %v1769_v3 = vsel %vm259_vm1, %v1767_v11, %v1768_v16  ;;  %s2448_s25 = sld [smem:[#allocation4 + $0x5f]] }
 0x1df   : > { %v1749_v18 = vsel %vm259_vm1, %v1746_v37, %v1748_v43  ;;  %v1804_v40 = vmul.f32 %v3840_v59, %v3048_v8 }
 0x1e0   : > { %v3798_v32 = vpop.permute.xlu1 %934  ;;  %v955_v49 = vpop.permute.xlu0 %954 }
 0x1e1   : > { %v960_v9 = vadd.f32 %v955_v49, %v938_v6  ;;  %v939_v52 = vadd.f32 %v3798_v32, %v919_v33  ;;  %v1727_v49 = vsel %vm259_vm1, %v1725_v10, %v1726_v27  ;;  %v1747_v32 = vsel %vm259_vm1, %v1745_v12, %v1746_v37 }
 0x1e2   : > { %1614 = vrot.lane.b32.xlu1 %v1611_v34, %s2779_s20  ;;  %1632 = vrot.lane.b32.xlu0 %v1629_v38, %s2779_s20  ;;  %v3854_v34 = vmul.f32 %v1068_v62, %v3048_v8  ;;  %v1095_v10 = vrot.slane %v1088_v25, 3  ;;  %v1805_v33 = vmul.f32 %v3840_v59, %v3101_v44 }
 0x1e4   : > { %v957_v57 = vpop.permute.xlu1 %956  ;;  %v975_v26 = vpop.permute.xlu0 %974  ;;  %v1077_v48 = vrot.slane %v3854_v34, 3  ;;  %v1812_v42 = vrot.slane %v1805_v33, 5 }
 0x1e5   : > { %v980_v63 = vadd.f32 %v975_v26, %v960_v9  ;;  %v961_v38 = vadd.f32 %v957_v57, %v939_v52  ;;  %v1781_v26 = vmul.f32 %v1780_v19, %v3045_v7  ;;  %v1093_v57 = vrot.slane %v1087_v28, 3 }
 0x1e6   : > { %1634 = vrot.lane.b32.xlu1 %v1631_v47, %s2779_s20  ;;  %1688 = vrot.lane.b32.xlu0 %v1685_v53, %s2774_s0  ;;  %v3872_v47 = vmul.f32 %v1780_v19, %v3057_v14  ;;  %v1071_v53 = vmul.f32 %v1068_v62, %v3101_v44  ;;  %v1783_v62 = vmul.f32 %v1780_v19, %v3115_v56  ;;  %v1810_v52 = vrot.slane %v1804_v40, 5 }
 0x1e7   : > { %v1078_v6 = vsel %vm1075_vm6, %v1076_v4, %v1077_v48  ;;  %v1803_v19 = vmul.f32 %v3840_v59, %v3038_v0  ;;  %v1096_v59 = vsel %vm1075_vm6, %v1093_v57, %v1095_v10 }
 0x1e8   : > { %v977_v17 = vpop.permute.xlu1 %976  ;;  %v997_v61 = vpop.permute.xlu0 %996  ;;  %v1079_v27 = vrot.slane %v1071_v53, 3  ;;  %v1790_v1 = vrot.slane %v1783_v62, 5 }
 0x1e9   : > { %v1002_v30 = vadd.f32 %v997_v61, %v980_v63  ;;  %v981_v20 = vadd.f32 %v977_v17, %v961_v38  ;;  %v1770_v17 = vrot.slane %v1763_v13, 5  ;;  %v1787_v61 = vrot.slane %v1781_v26, 5 }
 0x1ea   : > { %1690 = vrot.lane.b32.xlu1 %v1687_v5, %s2774_s0  ;;  %1708 = vrot.lane.b32.xlu0 %v1705_v50, %s2774_s0  ;;  %v1788_v5 = vrot.slane %v3872_v47, 5  ;;  %v1094_v50 = vsel %vm1075_vm6, %v1092_v54, %v1093_v57  ;;  %v1080_v63 = vsel %vm1075_vm6, %v1077_v48, %v1079_v27  ;;  %v1809_v28 = vrot.slane %v1803_v19, 5 }
 0x1eb   : > { %v1771_v45 = vsel %vm259_vm1, %v1768_v16, %v1770_v17  ;;  %v1813_v54 = vsel %vm259_vm1, %v1810_v52, %v1812_v42  ;;  %v1886_v17 = vstv %s3908_s29  ;;  %s2412_s29 = sld [smem:[#allocation4 + $0x4d]] }
 0x1ec   : > { %v999_v22 = vpop.permute.xlu1 %998  ;;  %v1017_v35 = vpop.permute.xlu0 %1016  ;;  %v1791_v26 = vsel %vm259_vm1, %v1788_v5, %v1790_v1  ;;  %v1811_v47 = vsel %vm259_vm1, %v1809_v28, %v1810_v52 }
 0x1ed   : > { %v1022_v46 = vadd.f32 %v1017_v35, %v1002_v30  ;;  %v1003_v58 = vadd.f32 %v999_v22, %v981_v20  ;;  %v1789_v22 = vsel %vm259_vm1, %v1787_v61, %v1788_v5  ;;  %v1823_v35 = vmul.f32 %v3866_v24, %v3045_v7 }
 0x1ee   : > { %1710 = vrot.lane.b32.xlu1 %v1707_v39, %s2774_s0  ;;  %1730 = vrot.lane.b32.xlu0 %v1727_v49, %s2775_s6  ;;  %v1824_v39 = vmul.f32 %v3866_v24, %v3057_v14  ;;  %v1844_v49 = vstv %s3879_s28  ;;  %v1906_v61 = vstv %s3910_s15  ;;  %s2411_s28 = sld [smem:[#allocation4 + $0x1c]] }
 0x1ef   : > { %v1845_v20 = vmul.f32 %v1844_v49, %v3038_v0  ;;  %v1908_v1 = vmul.f32 %v1906_v61, %v3057_v14 }
 0x1f0   : > { %v1019_v2 = vpop.permute.xlu1 %1018  ;;  %v1039_v41 = vpop.permute.xlu0 %1038  ;;  %v1830_v43 = vrot.slane %v1824_v39, 5 }
 0x1f1   : > { %v1044_v51 = vadd.f32 %v1039_v41, %v1022_v46  ;;  %v1023_v15 = vadd.f32 %v1019_v2, %v1003_v58  ;;  %v1825_v2 = vmul.f32 %v3866_v24, %v3115_v56  ;;  %v1846_v41 = vmul.f32 %v1844_v49, %v3048_v8 }
 0x1f2   : > { %1732 = vrot.lane.b32.xlu1 %v1729_v60, %s2775_s6  ;;  %1750 = vrot.lane.b32.xlu0 %v1747_v32, %s2775_s6  ;;  %v1829_v32 = vrot.slane %v1823_v35, 5  ;;  %v1864_v46 = vstv %s3891_s2  ;;  %v1847_v58 = vmul.f32 %v1844_v49, %v3101_v44  ;;  %v1907_v35 = vmul.f32 %v1906_v61, %v3045_v7  ;;  %s2452_s2 = sld [smem:[#allocation4 + $0x61]] }
 0x1f3   : > { %v1832_v53 = vrot.slane %v1825_v2, 5  ;;  %v1852_v25 = vrot.slane %v1846_v41, 5  ;;  %v1963_v49 = vstv %s3931_s30  ;;  %v1914_v2 = vrot.slane %v1908_v1, 5 }
 0x1f4   : > { %v1041_v36 = vpop.permute.xlu1 %1040  ;;  %v1059_v55 = vpop.permute.xlu0 %1058  ;;  %v1831_v11 = vsel %vm259_vm1, %v1829_v32, %v1830_v43  ;;  %v1854_v40 = vrot.slane %v1847_v58, 5  ;;  %v1983_v41 = vstv %s3936_s22 }
 0x1f5   : > { %v1064_v31 = vadd.f32 %v1059_v55, %v1044_v51  ;;  %v1045_v23 = vadd.f32 %v1041_v36, %v1023_v15  ;;  %v1866_v36 = vmul.f32 %v1864_v46, %v3057_v14  ;;  %v1851_v55 = vrot.slane %v1845_v20, 5 }
 0x1f6   : > { %1752 = vrot.lane.b32.xlu1 %v1749_v18, %s2775_s6  ;;  %1772 = vrot.lane.b32.xlu0 %v1769_v3, %s2776_s12  ;;  %v1865_v18 = vmul.f32 %v1864_v46, %v3045_v7  ;;  %v1867_v3 = vmul.f32 %v1864_v46, %v3115_v56 }
 0x1f7   : > { %v1083_v12 = vadd.f32 %v1078_v6, %v1064_v31  ;;  %v1833_v31 = vsel %vm259_vm1, %v1830_v43, %v1832_v53  ;;  %v1853_v62 = vsel %vm259_vm1, %v1851_v55, %v1852_v25  ;;  %v1888_v6 = vmul.f32 %v1886_v17, %v3048_v8 }
 0x1f8   : > { %v1061_v9 = vpop.permute.xlu1 %1060  ;;  %v1116_v37 = vpop.permute.xlu0 %1115  ;;  %v1871_v10 = vrot.slane %v1865_v18, 5  ;;  %v1874_v19 = vrot.slane %v1867_v3, 5 }
 0x1f9   : > { %v1099_v21 = vadd.f32 %v1094_v50, %v1083_v12  ;;  %v1065_v34 = vadd.f32 %v1061_v9, %v1045_v23  ;;  %v1872_v23 = vrot.slane %v1866_v36, 5  ;;  %v1887_v12 = vmul.f32 %v1886_v17, %v3038_v0 }
 0x1fa   : > { %1774 = vrot.lane.b32.xlu1 %v1771_v45, %s2776_s12  ;;  %1792 = vrot.lane.b32.xlu0 %v1789_v22, %s2776_s12  ;;  %v1894_v45 = vrot.slane %v1888_v6, 5  ;;  %v1889_v22 = vmul.f32 %v1886_v17, %v3101_v44 }
 0x1fb   : > { %v1084_v29 = vadd.f32 %v1080_v63, %v1065_v34  ;;  %v1121_v60 = vadd.f32 %v1116_v37, %v1099_v21  ;;  %v1855_v37 = vsel %vm259_vm1, %v1852_v25, %v1854_v40  ;;  %v1873_v34 = vsel %vm259_vm1, %v1871_v10, %v1872_v23 }
 0x1fc   : > { %v1118_v38 = vpop.permute.xlu1 %1117  ;;  %v1136_v30 = vpop.permute.xlu0 %1135  ;;  %v1893_v52 = vrot.slane %v1887_v12, 5  ;;  %v1875_v63 = vsel %vm259_vm1, %v1872_v23, %v1874_v19  ;;  %v1896_v42 = vrot.slane %v1889_v22, 5 }
 0x1fd   : > { %v1100_v16 = vadd.f32 %v1096_v59, %v1084_v29  ;;  %v1141_v13 = vadd.f32 %v1136_v30, %v1121_v60  ;;  %v1909_v59 = vmul.f32 %v1906_v61, %v3115_v56  ;;  %v1965_v30 = vmul.f32 %v1963_v49, %v3048_v8 }
 0x1fe   : > { %1794 = vrot.lane.b32.xlu1 %v1791_v26, %s2776_s12  ;;  %1814 = vrot.lane.b32.xlu0 %v1811_v47, %s2777_s4  ;;  %v1895_v28 = vsel %vm259_vm1, %v1893_v52, %v1894_v45  ;;  %v1966_v26 = vmul.f32 %v1963_v49, %v3101_v44  ;;  %v2005_v61 = vstv %s3953_s17 }
 0x1ff   : > { %v1122_v48 = vadd.f32 %v1118_v38, %v1100_v16  ;;  %v1913_v38 = vrot.slane %v1907_v35, 5  ;;  %v1964_v16 = vmul.f32 %v1963_v49, %v3038_v0  ;;  %v1971_v46 = vrot.slane %v1965_v30, 6 }
 0x200   : > { %v1138_v24 = vpop.permute.xlu1 %1137  ;;  %v1158_v57 = vpop.permute.xlu0 %1157  ;;  %v2006_v6 = vmul.f32 %v2005_v61, %v3038_v0  ;;  %v2008_v12 = vmul.f32 %v2005_v61, %v3101_v44 }
 0x201   : > { %v1142_v51 = vadd.f32 %v1138_v24, %v1122_v48  ;;  %v1163_v4 = vadd.f32 %v1158_v57, %v1141_v13  ;;  %v1916_v13 = vrot.slane %v1909_v59, 5  ;;  %v1984_v48 = vmul.f32 %v1983_v41, %v3045_v7 }
 0x202   : > { %1816 = vrot.lane.b32.xlu1 %v1813_v54, %s2777_s4  ;;  %1834 = vrot.lane.b32.xlu0 %v1831_v11, %s2777_s4  ;;  %v1985_v54 = vmul.f32 %v1983_v41, %v3057_v14  ;;  %v1897_v11 = vsel %vm259_vm1, %v1894_v45, %v1896_v42  ;;  %v1915_v53 = vsel %vm259_vm1, %v1913_v38, %v1914_v2  ;;  %v1970_v25 = vrot.slane %v1964_v16, 6 }
 0x203   : > { %v1917_v58 = vsel %vm259_vm1, %v1914_v2, %v1916_v13  ;;  %v1990_v3 = vrot.slane %v1984_v48, 6  ;;  %v2012_v22 = vrot.slane %v2006_v6, 6  ;;  %v2015_v52 = vrot.slane %v2008_v12, 6 }
 0x204   : > { %v1160_v5 = vpop.permute.xlu1 %1159  ;;  %v1178_v15 = vpop.permute.xlu0 %1177  ;;  %v1972_v55 = vsel %vm1935_vm8, %v1970_v25, %v1971_v46  ;;  %v1991_v17 = vrot.slane %v1985_v54, 6  ;;  %v2067_v38 = vstv %s3976_s8  ;;  %v2089_v25 = vstv %s2447_s21 }
 0x205   : > { %v1164_v50 = vadd.f32 %v1160_v5, %v1142_v51  ;;  %v1183_v27 = vadd.f32 %v1178_v15, %v1163_v4  ;;  %v1973_v51 = vrot.slane %v1966_v26, 6  ;;  %v1986_v4 = vmul.f32 %v1983_v41, %v3115_v56 }
 0x206   : > { %1836 = vrot.lane.b32.xlu1 %v1833_v31, %s2777_s4  ;;  %1856 = vrot.lane.b32.xlu0 %v1853_v62, %s2778_s23  ;;  %v2007_v31 = vmul.f32 %v2005_v61, %v3048_v8  ;;  %v2025_v62 = vstv %s3956_s3  ;;  %v1992_v23 = vsel %vm1935_vm8, %v1990_v3, %v1991_v17 }
 0x207   : > { %v1993_v40 = vrot.slane %v1986_v4, 6  ;;  %v1974_v10 = vsel %vm1935_vm8, %v1971_v46, %v1973_v51  ;;  %v2026_v19 = vmul.f32 %v2025_v62, %v3045_v7  ;;  %v2027_v45 = vmul.f32 %v2025_v62, %v3057_v14 }
 0x208   : > { %v1180_v33 = vpop.permute.xlu1 %1179  ;;  %v1200_v9 = vpop.permute.xlu0 %1199  ;;  %v2028_v35 = vmul.f32 %v2025_v62, %v3115_v56  ;;  %v2091_v4 = vmul.f32 %v2089_v25, %v3048_v8 }
 0x209   : > { %v1184_v39 = vadd.f32 %v1180_v33, %v1164_v50  ;;  %v1205_v21 = vadd.f32 %v1200_v9, %v1183_v27  ;;  %v1994_v1 = vsel %vm1935_vm8, %v1991_v17, %v1993_v40 }
 0x20a   : > { %1858 = vrot.lane.b32.xlu1 %v1855_v37, %s2778_s23  ;;  %1876 = vrot.lane.b32.xlu0 %v1873_v34, %s2778_s23  ;;  %v2013_v37 = vrot.slane %v2007_v31, 6  ;;  %v2035_v30 = vrot.slane %v2028_v35, 6  ;;  %v2097_v40 = vrot.slane %v2091_v4, 6 }
 0x20c   : > { %v1202_v29 = vpop.permute.xlu1 %1201  ;;  %v1220_v60 = vpop.permute.xlu0 %1219  ;;  %v2016_v2 = vsel %vm1935_vm8, %v2013_v37, %v2015_v52 }
 0x20d   : > { %v1206_v32 = vadd.f32 %v1202_v29, %v1184_v39  ;;  %v1225_v43 = vadd.f32 %v1220_v60, %v1205_v21  ;;  %v2047_v39 = vstv %s2445_s7  ;;  %v2014_v60 = vsel %vm1935_vm8, %v2012_v22, %v2013_v37 }
 0x20e   : > { %1878 = vrot.lane.b32.xlu1 %v1875_v63, %s2778_s23  ;;  %1898 = vrot.lane.b32.xlu0 %v1895_v28, %s2779_s20  ;;  %v2032_v63 = vrot.slane %v2026_v19, 6  ;;  %v2049_v59 = vmul.f32 %v2047_v39, %v3048_v8  ;;  %v2033_v28 = vrot.slane %v2027_v45, 6  ;;  %v2048_v42 = vmul.f32 %v2047_v39, %v3038_v0 }
 0x20f   : > { %v2050_v16 = vmul.f32 %v2047_v39, %v3101_v44  ;;  %v2151_v22 = vstv %s2450_s24 }
 0x210   : > { %v1222_v47 = vpop.permute.xlu1 %1221  ;;  %v1242_v20 = vpop.permute.xlu0 %1241  ;;  %v2055_v41 = vrot.slane %v2049_v59, 6  ;;  %v2034_v26 = vsel %vm1935_vm8, %v2032_v63, %v2033_v28  ;;  %v2054_v46 = vrot.slane %v2048_v42, 6  ;;  %v2036_v48 = vsel %vm1935_vm8, %v2033_v28, %v2035_v30 }
 0x211   : > { %v1226_v24 = vadd.f32 %v1222_v47, %v1206_v32  ;;  %v1247_v57 = vadd.f32 %v1242_v20, %v1225_v43  ;;  %v2068_v47 = vmul.f32 %v2067_v38, %v3045_v7  ;;  %v2069_v20 = vmul.f32 %v2067_v38, %v3057_v14 }
 0x212   : > { %1900 = vrot.lane.b32.xlu1 %v1897_v11, %s2779_s20  ;;  %1918 = vrot.lane.b32.xlu0 %v1915_v53, %s2779_s20  ;;  %v2057_v11 = vrot.slane %v2050_v16, 6  ;;  %v2070_v53 = vmul.f32 %v2067_v38, %v3115_v56 }
 0x213   : > { %v2075_v51 = vrot.slane %v2069_v20, 6 }
 0x214   : > { %v1244_v18 = vpop.permute.xlu1 %1243  ;;  %v1262_v36 = vpop.permute.xlu0 %1261  ;;  %v2077_v62 = vrot.slane %v2070_v53, 6  ;;  %v1372_v53 = vstv %s2412_s29 }
 0x215   : > { %v1248_v5 = vadd.f32 %v1244_v18, %v1226_v24  ;;  %v1267_v15 = vadd.f32 %v1262_v36, %v1247_v57  ;;  %v2056_v57 = vsel %vm1935_vm8, %v2054_v46, %v2055_v41  ;;  %v2109_v18 = vstv %s2448_s25 }
 0x216   : > { %1920 = vrot.lane.b32.xlu1 %v1917_v58, %s2779_s20  ;;  %1975 = vrot.lane.b32.xlu0 %v1972_v55, %s2774_s0  ;;  %v2074_v58 = vrot.slane %v2068_v47, 6  ;;  %v2090_v36 = vmul.f32 %v2089_v25, %v3038_v0  ;;  %v2092_v55 = vmul.f32 %v2089_v25, %v3101_v44  ;;  %v2110_v61 = vmul.f32 %v2109_v18, %v3045_v7 }
 0x217   : > { %v2112_v19 = vmul.f32 %v2109_v18, %v3115_v56  ;;  %v1355_v46 = vstv %s2411_s28 }
 0x218   : > { %v1264_v50 = vpop.permute.xlu1 %1263  ;;  %v1284_v27 = vpop.permute.xlu0 %1283  ;;  %v2076_v31 = vsel %vm1935_vm8, %v2074_v58, %v2075_v51  ;;  %v2096_v6 = vrot.slane %v2090_v36, 6 }
 0x219   : > { %v1268_v33 = vadd.f32 %v1264_v50, %v1248_v5  ;;  %v1289_v9 = vadd.f32 %v1284_v27, %v1267_v15  ;;  %v2111_v5 = vmul.f32 %v2109_v18, %v3057_v14  ;;  %v2058_v15 = vsel %vm1935_vm8, %v2055_v41, %v2057_v11 }
 0x21a   : > { %1977 = vrot.lane.b32.xlu1 %v1974_v10, %s2774_s0  ;;  %1995 = vrot.lane.b32.xlu0 %v1992_v23, %s2774_s0  ;;  %v2099_v50 = vrot.slane %v2092_v55, 6  ;;  %v2116_v23 = vrot.slane %v2110_v61, 6  ;;  %v2098_v37 = vsel %vm1935_vm8, %v2096_v6, %v2097_v40  ;;  %v2119_v52 = vrot.slane %v2112_v19, 6 }
 0x21b   : > { %v2117_v12 = vrot.slane %v2111_v5, 6  ;;  %v1357_v11 = vmul.f32 %v1355_v46, %v3048_v8  ;;  %v1373_v6 = vmul.f32 %v1372_v53, %v3045_v7 }
 0x21c   : > { %v1286_v21 = vpop.permute.xlu1 %1285  ;;  %v1304_v34 = vpop.permute.xlu0 %1303 }
 0x21d   : > { %v1290_v49 = vadd.f32 %v1286_v21, %v1268_v33  ;;  %v3989_v29 = vadd.f32 %v1304_v34, %v1289_v9  ;;  %v2078_v9 = vsel %vm1935_vm8, %v2075_v51, %v2077_v62  ;;  %v2100_v34 = vsel %vm1935_vm8, %v2097_v40, %v2099_v50 }
 0x21e   : > { %1997 = vrot.lane.b32.xlu1 %v1994_v1, %s2774_s0  ;;  %2017 = vrot.lane.b32.xlu0 %v2014_v60, %s2775_s6  ;;  %s2449_s0 = sld [smem:[#allocation4 + $0x2f]]  ;;  %v2118_v1 = vsel %vm1935_vm8, %v2116_v23, %v2117_v12  ;;  %v2153_v60 = vmul.f32 %v2151_v22, %v3057_v14  ;;  %v1364_v40 = vrot.slane %v1357_v11, 4  ;;  %v1374_v50 = vmul.f32 %v1372_v53, %v3057_v14 }
 0x21f   : > { %v1358_v23 = vmul.f32 %v1355_v46, %v3101_v44 }
 0x220   : > { %v1306_v32 = vpop.permute.xlu1 %1305  ;;  %v3996_v43 = vpop.permute.xlu0 %1325  ;;  %v2159_v20 = vrot.slane %v2153_v60, 6 }
 0x221   : > { %v4000_v13 = vadd.f32 %v1306_v32, %v1290_v49  ;;  %v2152_v49 = vmul.f32 %v2151_v22, %v3045_v7  ;;  %v2120_v32 = vsel %vm1935_vm8, %v2117_v12, %v2119_v52  ;;  %v1331_v62 = vadd.f32 %v3996_v43, %v3989_v29 }
 0x222   : > { %2019 = vrot.lane.b32.xlu1 %v2016_v2, %s2775_s6  ;;  %2037 = vrot.lane.b32.xlu0 %v2034_v26, %s2775_s6  ;;  %v2154_v2 = vmul.f32 %v2151_v22, %v3115_v56  ;;  %v1375_v52 = vmul.f32 %v1372_v53, %v3115_v56 }
 0x223   : > { %v2158_v47 = vrot.slane %v2152_v49, 6  ;;  %v1366_v49 = vrot.slane %v1358_v23, 4 }
 0x224   : > { %v4008_v54 = vpop.permute.xlu1 %1327  ;;  %v4010_v24 = vpop.permute.xlu0 %1345  ;;  %v2131_v33 = vstv %s2449_s0  ;;  %v2161_v51 = vrot.slane %v2154_v2, 6 }
 0x225   : > { %v2133_v45 = vmul.f32 %v2131_v33, %v3048_v8  ;;  %v2132_v35 = vmul.f32 %v2131_v33, %v3038_v0  ;;  %v2134_v59 = vmul.f32 %v2131_v33, %v3101_v44  ;;  %v2160_v55 = vsel %vm1935_vm8, %v2158_v47, %v2159_v20 }
 0x226   : > { %2039 = vrot.lane.b32.xlu1 %v2036_v48, %s2775_s6  ;;  %2059 = vrot.lane.b32.xlu0 %v2056_v57, %s2776_s12  ;;  %s2451_s6 = sld [smem:[#allocation4 + $0x30]]  ;;  %v2193_v57 = vstv %s2452_s2  ;;  %v2162_v33 = vsel %vm1935_vm8, %v2159_v20, %v2161_v51 }
 0x227   : > { %v2139_v63 = vrot.slane %v2133_v45, 6  ;;  %v2138_v28 = vrot.slane %v2132_v35, 6  ;;  %v2141_v26 = vrot.slane %v2134_v59, 6  ;;  %v2194_v61 = vmul.f32 %v2193_v57, %v3045_v7 }
 0x228   : > { %v4019_v3 = vpop.permute.xlu1 %1347  ;;  %v4021_v17 = vpop.permute.xlu0 %1402  ;;  %v2195_v5 = vmul.f32 %v2193_v57, %v3057_v14  ;;  %v1351_v45 = vadd.f32 %v4010_v24, %v1331_v62  ;;  %v2196_v29 = vmul.f32 %v2193_v57, %v3115_v56  ;;  %v1380_v59 = vrot.slane %v1374_v50, 4 }
 0x229   : > { %v2140_v16 = vsel %vm1935_vm8, %v2138_v28, %v2139_v63  ;;  %v2142_v36 = vsel %vm1935_vm8, %v2139_v63, %v2141_v26  ;;  %v2200_v22 = vrot.slane %v2194_v61, 6 }
 0x22a   : > { %2061 = vrot.lane.b32.xlu1 %v2058_v15, %s2776_s12  ;;  %2079 = vrot.lane.b32.xlu0 %v2076_v31, %s2776_s12  ;;  %v1356_v15 = vmul.f32 %v1355_v46, %v3038_v0  ;;  %v2201_v35 = vrot.slane %v2195_v5, 6 }
 0x22c   : > { %v4029_v27 = vpop.permute.xlu1 %1404  ;;  %v4031_v10 = vpop.permute.xlu0 %1422  ;;  %v2173_v42 = vstv %s2451_s6  ;;  %v1363_v43 = vrot.slane %v1356_v15, 4  ;;  %v2202_v2 = vsel %vm1935_vm8, %v2200_v22, %v2201_v35 }
 0x22d   : > { %v2175_v41 = vmul.f32 %v2173_v42, %v3048_v8  ;;  %v2174_v48 = vmul.f32 %v2173_v42, %v3038_v0  ;;  %v2176_v18 = vmul.f32 %v2173_v42, %v3101_v44 }
 0x22e   : > { %2081 = vrot.lane.b32.xlu1 %v2078_v9, %s2776_s12  ;;  %2101 = vrot.lane.b32.xlu0 %v2098_v37, %s2777_s4  ;;  %v1365_v63 = vsel %vm1362_vm7, %v1363_v43, %v1364_v40  ;;  %s2425_s12 = sld [smem:[#allocation4 + $0x23]] }
 0x22f   : > { %v2181_v4 = vrot.slane %v2175_v41, 6  ;;  %v2180_v31 = vrot.slane %v2174_v48, 6  ;;  %v2183_v37 = vrot.slane %v2176_v18, 6  ;;  %v1370_v42 = vadd.f32 %v1365_v63, %v1351_v45 }
 0x230   : > { %v4040_v39 = vpop.permute.xlu1 %1424  ;;  %v4042_v21 = vpop.permute.xlu0 %1444  ;;  %v2203_v41 = vrot.slane %v2196_v29, 6 }
 0x231   : > { %v2182_v9 = vsel %vm1935_vm8, %v2180_v31, %v2181_v4  ;;  %v2184_v28 = vsel %vm1935_vm8, %v2181_v4, %v2183_v37 }
 0x232   : > { %2103 = vrot.lane.b32.xlu1 %v2100_v34, %s2777_s4  ;;  %2121 = vrot.lane.b32.xlu0 %v2118_v1, %s2777_s4  ;;  %v1332_v34 = vadd.f32 %v4008_v54, %v4000_v13  ;;  %v1379_v1 = vrot.slane %v1373_v6, 4  ;;  %v1367_v54 = vsel %vm1362_vm7, %v1364_v40, %v1366_v49  ;;  %v2204_v48 = vsel %vm1935_vm8, %v2201_v35, %v2203_v41 }
 0x234   : > { %v4051_v38 = vpop.permute.xlu1 %1446  ;;  %v4053_v30 = vpop.permute.xlu0 %1464  ;;  %v1381_v13 = vsel %vm1362_vm7, %v1379_v1, %v1380_v59 }
 0x235   : > { %v1386_v20 = vadd.f32 %v1381_v13, %v1370_v42 }
 0x236   : > { %2123 = vrot.lane.b32.xlu1 %v2120_v32, %s2777_s4  ;;  %2143 = vrot.lane.b32.xlu0 %v2140_v16, %s2778_s23  ;;  %v1352_v32 = vadd.f32 %v4019_v3, %v1332_v34  ;;  %v1382_v16 = vrot.slane %v1375_v52, 4  ;;  %s2426_s4 = sld [smem:[#allocation4 + $0x54]] }
 0x237   : > { %v1408_v51 = vadd.f32 %v4021_v17, %v1386_v20 }
 0x238   : > { %v4063_v25 = vpop.permute.xlu1 %1466  ;;  %v4065_v58 = vpop.permute.xlu0 %1486  ;;  %v1371_v46 = vadd.f32 %v1367_v54, %v1352_v32  ;;  %v1383_v3 = vsel %vm1362_vm7, %v1380_v59, %v1382_v16 }
 0x23a   : > { %2145 = vrot.lane.b32.xlu1 %v2142_v36, %s2778_s23  ;;  %2163 = vrot.lane.b32.xlu0 %v2160_v55, %s2778_s23  ;;  %v1387_v53 = vadd.f32 %v1383_v3, %v1371_v46  ;;  %v1428_v55 = vadd.f32 %v4031_v10, %v1408_v51 }
 0x23c   : > { %v1489_v12 = vpop.permute.xlu1 %1488  ;;  %v1507_v19 = vpop.permute.xlu0 %1506  ;;  %v1409_v36 = vadd.f32 %v4029_v27, %v1387_v53  ;;  %v1450_v61 = vadd.f32 %v4042_v21, %v1428_v55  ;;  %v1658_v34 = vstv %s2426_s4 }
 0x23d   : > { %v1659_v63 = vmul.f32 %v1658_v34, %v3045_v7  ;;  %v1660_v59 = vmul.f32 %v1658_v34, %v3057_v14  ;;  %v1661_v16 = vmul.f32 %v1658_v34, %v3115_v56 }
 0x23e   : > { %2165 = vrot.lane.b32.xlu1 %v2162_v33, %s2778_s23  ;;  %2185 = vrot.lane.b32.xlu0 %v2182_v9, %s2779_s20  ;;  %v1429_v31 = vadd.f32 %v4040_v39, %v1409_v36  ;;  %v1470_v62 = vadd.f32 %v4053_v30, %v1450_v61  ;;  %v1642_v30 = vstv %s2425_s12  ;;  %s2439_s23 = sld [smem:[#allocation4 + $0x2a]] }
 0x23f   : > { %v1665_v13 = vrot.slane %v1659_v63, 5  ;;  %v1666_v54 = vrot.slane %v1660_v59, 5 }
 0x240   : > { %v1509_v24 = vpop.permute.xlu1 %1508  ;;  %v1529_v60 = vpop.permute.xlu0 %1528  ;;  %v1451_v40 = vadd.f32 %v4051_v38, %v1429_v31  ;;  %v1492_v6 = vadd.f32 %v4065_v58, %v1470_v62  ;;  %v1644_v38 = vmul.f32 %v1642_v30, %v3048_v8 }
 0x241   : > { %v1667_v3 = vsel %vm259_vm1, %v1665_v13, %v1666_v54 }
 0x242   : > { %2187 = vrot.lane.b32.xlu1 %v2184_v28, %s2779_s20  ;;  %2205 = vrot.lane.b32.xlu0 %v2202_v2, %s2779_s20  ;;  %v1471_v23 = vadd.f32 %v4063_v25, %v1451_v40  ;;  %v1512_v27 = vadd.f32 %v1507_v19, %v1492_v6  ;;  %v1643_v25 = vmul.f32 %v1642_v30, %v3038_v0  ;;  %v1650_v52 = vrot.slane %v1644_v38, 5 }
 0x244   : > { %v1531_v26 = vpop.permute.xlu1 %1530  ;;  %v1549_v47 = vpop.permute.xlu0 %1548  ;;  %v1493_v10 = vadd.f32 %v1489_v12, %v1471_v23  ;;  %v1534_v33 = vadd.f32 %v1529_v60, %v1512_v27  ;;  %v1645_v12 = vmul.f32 %v1642_v30, %v3101_v44  ;;  %v1649_v42 = vrot.slane %v1643_v25, 5 }
 0x246   : > { %2207 = vrot.lane.b32.xlu1 %v2204_v48, %s2779_s20  ;;  %v1513_v37 = vadd.f32 %v1509_v24, %v1493_v10  ;;  %v1554_v45 = vadd.f32 %v1549_v47, %v1534_v33  ;;  %v1652_v2 = vrot.slane %v1645_v12, 5  ;;  %v1651_v41 = vsel %vm259_vm1, %v1649_v42, %v1650_v52  ;;  %s2440_s20 = sld [smem:[#allocation4 + $0x5b]] }
 0x248   : > { %v1551_v57 = vpop.permute.xlu1 %1550  ;;  %v1571_v11 = vpop.permute.xlu0 %1570  ;;  %v1535_v39 = vadd.f32 %v1531_v26, %v1513_v37  ;;  %v1653_v48 = vsel %vm259_vm1, %v1650_v52, %v1652_v2 }
 0x249   : > { %v1576_v22 = vadd.f32 %v1571_v11, %v1554_v45 }
 0x24a   : > { %v1555_v29 = vadd.f32 %v1551_v57, %v1535_v39  ;;  %v1668_v57 = vrot.slane %v1661_v16, 5 }
 0x24c   : > { %v1573_v4 = vpop.permute.xlu1 %1572  ;;  %v1591_v18 = vpop.permute.xlu0 %1590 }
 0x24d   : > { %v1596_v43 = vadd.f32 %v1591_v18, %v1576_v22  ;;  %v1577_v19 = vadd.f32 %v1573_v4, %v1555_v29  ;;  %v1669_v18 = vsel %vm259_vm1, %v1666_v54, %v1668_v57 }
 0x250   : > { %v1593_v5 = vpop.permute.xlu1 %1592  ;;  %v1613_v15 = vpop.permute.xlu0 %1612 }
 0x251   : > { %v1618_v1 = vadd.f32 %v1613_v15, %v1596_v43  ;;  %v1597_v60 = vadd.f32 %v1593_v5, %v1577_v19  ;;  %v1945_v43 = vstv %s2440_s20 }
 0x252   : > { %v1946_v63 = vmul.f32 %v1945_v43, %v3045_v7  ;;  %v1947_v59 = vmul.f32 %v1945_v43, %v3057_v14  ;;  %v1948_v16 = vmul.f32 %v1945_v43, %v3115_v56 }
 0x254   : > { %v1615_v17 = vpop.permute.xlu1 %1614  ;;  %v1633_v50 = vpop.permute.xlu0 %1632  ;;  %v1952_v13 = vrot.slane %v1946_v63, 6  ;;  %v1953_v54 = vrot.slane %v1947_v59, 6 }
 0x255   : > { %v1638_v28 = vadd.f32 %v1633_v50, %v1618_v1  ;;  %v1619_v32 = vadd.f32 %v1615_v17, %v1597_v60 }
 0x257   : > { %v1656_v20 = vadd.f32 %v1651_v41, %v1638_v28 }
 0x258   : > { %v1635_v21 = vpop.permute.xlu1 %1634  ;;  %v1689_v9 = vpop.permute.xlu0 %1688 }
 0x259   : > { %v1639_v46 = vadd.f32 %v1635_v21, %v1619_v32  ;;  %v1672_v4 = vadd.f32 %v1667_v3, %v1656_v20  ;;  %v1955_v3 = vrot.slane %v1948_v16, 6 }
 0x25b   : > { %v1657_v51 = vadd.f32 %v1653_v48, %v1639_v46  ;;  %v1694_v61 = vadd.f32 %v1689_v9, %v1672_v4  ;;  %v1954_v48 = vsel %vm1935_vm8, %v1952_v13, %v1953_v54  ;;  %v1956_v4 = vsel %vm1935_vm8, %v1953_v54, %v1955_v3 }
 0x25c   : > { %v1691_v35 = vpop.permute.xlu1 %1690  ;;  %v1709_v58 = vpop.permute.xlu0 %1708 }
 0x25d   : > { %v1673_v5 = vadd.f32 %v1669_v18, %v1657_v51  ;;  %v1714_v40 = vadd.f32 %v1709_v58, %v1694_v61  ;;  %v1928_v58 = vstv %s2439_s23 }
 0x25e   : > { %v1930_v34 = vmul.f32 %v1928_v58, %v3048_v8  ;;  %v1929_v52 = vmul.f32 %v1928_v58, %v3038_v0  ;;  %v1931_v28 = vmul.f32 %v1928_v58, %v3101_v44 }
 0x25f   : > { %v1695_v62 = vadd.f32 %v1691_v35, %v1673_v5 }
 0x260   : > { %v1711_v49 = vpop.permute.xlu1 %1710  ;;  %v1731_v24 = vpop.permute.xlu0 %1730  ;;  %v1937_v60 = vrot.slane %v1930_v34, 6  ;;  %v1936_v41 = vrot.slane %v1929_v52, 6 }
 0x261   : > { %v1736_v6 = vadd.f32 %v1731_v24, %v1714_v40  ;;  %v1715_v23 = vadd.f32 %v1711_v49, %v1695_v62 }
 0x262   : > { %v1938_v7 = vsel %vm1935_vm8, %v1936_v41, %v1937_v60 }
 0x264   : > { %v1733_v26 = vpop.permute.xlu1 %1732  ;;  %v1751_v47 = vpop.permute.xlu0 %1750 }
 0x265   : > { %v1756_v27 = vadd.f32 %v1751_v47, %v1736_v6  ;;  %v1737_v10 = vadd.f32 %v1733_v26, %v1715_v23  ;;  %v1939_v47 = vrot.slane %v1931_v28, 6 }
 0x268   : > { %v1753_v11 = vpop.permute.xlu1 %1752  ;;  %v1773_v53 = vpop.permute.xlu0 %1772 }
 0x269   : > { %v1778_v33 = vadd.f32 %v1773_v53, %v1756_v27  ;;  %v1757_v45 = vadd.f32 %v1753_v11, %v1737_v10  ;;  %v1940_v53 = vsel %vm1935_vm8, %v1937_v60, %v1939_v47 }
 0x26c   : > { %v1775_v36 = vpop.permute.xlu1 %1774  ;;  %v1793_v55 = vpop.permute.xlu0 %1792 }
 0x26d   : > { %v1798_v39 = vadd.f32 %v1793_v55, %v1778_v33  ;;  %v1779_v22 = vadd.f32 %v1775_v36, %v1757_v45 }
 0x270   : > { %v1795_v15 = vpop.permute.xlu1 %1794  ;;  %v1815_v31 = vpop.permute.xlu0 %1814 }
 0x271   : > { %v1820_v9 = vadd.f32 %v1815_v31, %v1798_v39  ;;  %v1799_v29 = vadd.f32 %v1795_v15, %v1779_v22 }
 0x274   : > { %v1817_v17 = vpop.permute.xlu1 %1816  ;;  %v1835_v50 = vpop.permute.xlu0 %1834 }
 0x275   : > { %v1840_v35 = vadd.f32 %v1835_v50, %v1820_v9  ;;  %v1821_v25 = vadd.f32 %v1817_v17, %v1799_v29 }
 0x278   : > { %v1837_v21 = vpop.permute.xlu1 %1836  ;;  %v1857_v37 = vpop.permute.xlu0 %1856 }
 0x279   : > { %v1862_v19 = vadd.f32 %v1857_v37, %v1840_v35  ;;  %v1841_v49 = vadd.f32 %v1837_v21, %v1821_v25 }
 0x27c   : > { %v1859_v30 = vpop.permute.xlu1 %1858  ;;  %v1877_v38 = vpop.permute.xlu0 %1876 }
 0x27d   : > { %v1882_v24 = vadd.f32 %v1877_v38, %v1862_v19  ;;  %v1863_v42 = vadd.f32 %v1859_v30, %v1841_v49 }
 0x280   : > { %v1879_v1 = vpop.permute.xlu1 %1878  ;;  %v1899_v12 = vpop.permute.xlu0 %1898 }
 0x281   : > { %v1904_v32 = vadd.f32 %v1899_v12, %v1882_v24  ;;  %v1883_v26 = vadd.f32 %v1879_v1, %v1863_v42 }
 0x284   : > { %v1901_v2 = vpop.permute.xlu1 %1900  ;;  %v1919_v8 = vpop.permute.xlu0 %1918 }
 0x285   : > { %v1924_v0 = vadd.f32 %v1919_v8, %v1904_v32  ;;  %v1905_v14 = vadd.f32 %v1901_v2, %v1883_v26 }
 0x287   : > { %v1943_v20 = vadd.f32 %v1938_v7, %v1924_v0 }
 0x288   : > { %v1921_v46 = vpop.permute.xlu1 %1920  ;;  %v1976_v44 = vpop.permute.xlu0 %1975 }
 0x289   : > { %v1925_v57 = vadd.f32 %v1921_v46, %v1905_v14  ;;  %v1959_v11 = vadd.f32 %v1954_v48, %v1943_v20 }
 0x28b   : > { %v1944_v51 = vadd.f32 %v1940_v53, %v1925_v57  ;;  %v1981_v17 = vadd.f32 %v1976_v44, %v1959_v11 }
 0x28c   : > { %v1978_v56 = vpop.permute.xlu1 %1977  ;;  %v1996_v18 = vpop.permute.xlu0 %1995 }
 0x28d   : > { %v1960_v36 = vadd.f32 %v1956_v4, %v1944_v51  ;;  %v2001_v10 = vadd.f32 %v1996_v18, %v1981_v17 }
 0x28f   : > { %v1982_v27 = vadd.f32 %v1978_v56, %v1960_v36 }
 0x290   : > { %v1998_v55 = vpop.permute.xlu1 %1997  ;;  %v2018_v61 = vpop.permute.xlu0 %2017 }
 0x291   : > { %v2023_v33 = vadd.f32 %v2018_v61, %v2001_v10  ;;  %v2002_v45 = vadd.f32 %v1998_v55, %v1982_v27 }
 0x294   : > { %v2020_v5 = vpop.permute.xlu1 %2019  ;;  %v2038_v15 = vpop.permute.xlu0 %2037 }
 0x295   : > { %v2043_v39 = vadd.f32 %v2038_v15, %v2023_v33  ;;  %v2024_v22 = vadd.f32 %v2020_v5, %v2002_v45 }
 0x298   : > { %v2040_v31 = vpop.permute.xlu1 %2039  ;;  %v2060_v62 = vpop.permute.xlu0 %2059 }
 0x299   : > { %v2065_v9 = vadd.f32 %v2060_v62, %v2043_v39  ;;  %v2044_v29 = vadd.f32 %v2040_v31, %v2024_v22 }
 0x29c   : > { %v2062_v40 = vpop.permute.xlu1 %2061  ;;  %v2080_v6 = vpop.permute.xlu0 %2079 }
 0x29d   : > { %v2085_v35 = vadd.f32 %v2080_v6, %v2065_v9  ;;  %v2066_v58 = vadd.f32 %v2062_v40, %v2044_v29 }
 0x2a0   : > { %v2082_v50 = vpop.permute.xlu1 %2081  ;;  %v2102_v23 = vpop.permute.xlu0 %2101 }
 0x2a1   : > { %v2107_v43 = vadd.f32 %v2102_v23, %v2085_v35  ;;  %v2086_v19 = vadd.f32 %v2082_v50, %v2066_v58 }
 0x2a4   : > { %v2104_v21 = vpop.permute.xlu1 %2103  ;;  %v2122_v37 = vpop.permute.xlu0 %2121 }
 0x2a5   : > { %v2127_v1 = vadd.f32 %v2122_v37, %v2107_v43  ;;  %v2108_v12 = vadd.f32 %v2104_v21, %v2086_v19 }
 0x2a8   : > { %v2124_v30 = vpop.permute.xlu1 %2123  ;;  %v2144_v38 = vpop.permute.xlu0 %2143 }
 0x2a9   : > { %v2149_v52 = vadd.f32 %v2144_v38, %v2127_v1  ;;  %v2128_v49 = vadd.f32 %v2124_v30, %v2108_v12 }
 0x2ac   : > { %v2146_v34 = vpop.permute.xlu1 %2145  ;;  %v2164_v25 = vpop.permute.xlu0 %2163 }
 0x2ad   : > { %v2169_v24 = vadd.f32 %v2164_v25, %v2149_v52  ;;  %v2150_v60 = vadd.f32 %v2146_v34, %v2128_v49 }
 0x2b0   : > { %v2166_v63 = vpop.permute.xlu1 %2165  ;;  %v2186_v59 = vpop.permute.xlu0 %2185 }
 0x2b1   : > { %v2191_v28 = vadd.f32 %v2186_v59, %v2169_v24  ;;  %v2170_v2 = vadd.f32 %v2166_v63, %v2150_v60 }
 0x2b4   : > { %v2188_v42 = vpop.permute.xlu1 %2187  ;;  %v2206_v32 = vpop.permute.xlu0 %2205 }
 0x2b5   : > { %v2211_v41 = vadd.f32 %v2206_v32, %v2191_v28  ;;  %v2192_v8 = vadd.f32 %v2188_v42, %v2170_v2 }
 0x2b7   : > { %v2453_v13 = vmul.f32 -1.442695, %v2211_v41 }
 0x2b8   : > { %v2208_v54 = vpop.permute.xlu1 %2207 }
 0x2b9   : > { %2588 = vpow2.f32 %v2453_v13  ;;  %v2212_v16 = vadd.f32 %v2208_v54, %v2192_v8 }
 0x2bb   : > { %v2454_v26 = vmul.f32 -1.442695, %v2212_v16 }
 0x2bd   : > { %2590 = vpow2.f32 %v2454_v26 }
 0x2c3   : > { %v2589_v0 = vpop.eup %2588 }
 0x2c4   : > { %v2219_v7 = vadd.f32 1.0, %v2589_v0 }
 0x2c6   : > { %2592 = vrcp.f32 %v2219_v7 }
 0x2c7   : > { %v2591_v47 = vpop.eup %2590 }
 0x2c8   : > { %v2220_v14 = vadd.f32 1.0, %v2591_v47 }
 0x2ca   : > { %2594 = vrcp.f32 %v2220_v14 }
 0x2d0   : > { %v2593_v20 = vpop.eup %2592 }
 0x2d1   : > { %2225 = vst.msk [vmem:[%s3014_s26] sm:$0xff] %vm200_vm0, %v2593_v20 }
 0x2d4   : > { %v2595_v46 = vpop.eup %2594 }
 0x2d5   : > { %2226 = vst.msk [vmem:[%s3014_s26 + $0x8] sm:$0xff] %vm200_vm0, %v2595_v46 }
 0x2d6 PF: > { %s4242_s15 = sld [smem:[#allocation16_spill]]  ;;  %s2461_s30 = sshll.u32 %s2753_s16, 8 }
 0x2d7   : > { %s4243_s3 = sld [smem:[#allocation20_spill]]  ;;  %s2241_s8 = sshll.u32 %s3014_s26, 4  ;;  %s4140_s8 = int_to_ptr.vmem [resolvable:$true] %s2241_s8 }
 0x2d8   : > { %s4144_s21 = scalar_lea.sflag [#allocation6], %s188_s27  ;;  %s2639_s25 = scalar_lea.vmem %s4140_s8, 256 }
 0x2d9   : > { %p2640_p0 = scmp.ne.s32.totalorder %s4140_s8, %s2639_s25  ;;  %s2780_s16 = smov [#allocation9]  }
 0x2da   : > { %s2643_s0 = sshll.u32 %s2780_s16, 4  ;;  %s2644_s0 = int_to_ptr.vmem [resolvable:$false] %s2643_s0 }
 0x2db   : > { %s2645_s24 = scalar_lea.vmem %s2644_s0, 512  ;;  %p2646_p8 = scmp.lt.s32.totalorder %s4140_s8, %s2644_s0 }
 0x2dc   : > { %p4244_p9 = scmp.ne.s32.totalorder %s4242_s15, 0  ;;  %p2647_p7 = scmp.lt.s32.totalorder %s2645_s24, %s2639_s25 }
 0x2dd   : > { %s4137_s7 = scalar_lea.hbm %s4243_s3, %s2461_s30 }
 0x2de   : > { %p2641_p11 = pnand %p2640_p0, %p4244_p9  ;;  %p2648_p4 = por %p2647_p7, %p2646_p8 }
 0x2e0   : > { %p2642_p5 = pneg %p2641_p11 }
 0x2e2   : > { %p2649_p13 = pnand %p2648_p4, %p2642_p5 }
 0x2e4   : > { %2652 = shalt.err (!%p2649_p13)
}
 0x2e5   : > { %s2653_s27 = scalar_lea.hbm %s4137_s7, 256  ;;  %s2657_s28 = scalar_lea.hbm %s4243_s3, 512 }
 0x2e6   : > { %p2654_p1 = scmp.ne.s32.totalorder %s4137_s7, %s2653_s27  ;;  %p2658_p3 = scmp.lt.u32.totalorder %s4137_s7, %s4243_s3 }
 0x2e7   : > { %p2659_p6 = scmp.lt.u32.totalorder %s2657_s28, %s2653_s27  ;;  %p2661_p0 = scmp.lt.u32.totalorder %s2653_s27, %s4137_s7 }
 0x2e8   : > { %p2655_p2 = pnand %p2654_p1, %p4244_p9 }
 0x2e9   : > { %p2660_p10 = por %p2659_p6, %p2658_p3 }
 0x2ea   : > { %p2656_p12 = pneg %p2655_p2 }
 0x2eb   : > { %p2662_p11 = por %p2661_p0, %p2660_p10 }
 0x2ed   : > { %p2663_p5 = pnand %p2662_p11, %p2656_p12 }
 0x2ef   : > { %2666 = shalt.err (!%p2663_p5)
}
 0x2f0   : > { %s2781_s12 = smov 128   ;;  %s2782_s4 = smov 8  }
 0x2f1   : > { %2468 = dma.vmem_to_hbm [thread:$0]  (%p4244_p9), %s4140_s8, 256, %s4137_s7, %s4144_s21, %s2781_s12, %s2781_s12, %s2782_s4  }
 0x2f2 PF: > { %s4245_s23 = sld [smem:[#allocation15_spill]]  ;;  %s4246_s20 = sld [smem:[#allocation13_spill]] }
 0x2f3   : > { %s4247_s30 = sld [smem:[#allocation17_spill]] }
 0x2f8   : > { %p2485_p8 = scmp.ge.s32.totalorder %s4245_s23, 2  ;;  %s2256_s22 = sand.u32 1, %s4246_s20  }
 0x2f9   : > { %p4248_p7 = scmp.ne.s32.totalorder %s4247_s30, 0  ;;  %s2257_s17 = scalar_lea.sflag [#allocation6], %s2256_s22 }
 0x2fb   : > { %p2479_p4 = pnand %p2485_p8, %p4248_p7 }
 0x2fd   : > { %2720 = dma.done.wait (!%p2479_p4), %s2257_s17, 256  }
 0x2fe   : > { %2722 = vsyncadd (!%p2479_p4), %s2257_s17, 4294967040  ;;  %s19_s25 = sadd.s32 1, %s4245_s23   ;;  %s4249_s16 = smov %s2939_s9 }
 0x2ff   : > { %p16_p13 = scmp.ge.s32.totalorder %s19_s25, 10   ;;  %s4250_s15 = sld [smem:[#allocation14_spill]] }
 0x300   : > { %s4251_s17 = sld [smem:[#allocation18_spill]]  ;;  %s4252_s9 = smov %s2729_s10 }
 0x301   : > { %s4253_s10 = smov %s2733_s11  ;;  %s4254_s11 = smov %s4249_s16 }
 0x302   : > { %s4255_s12 = smov %s2741_s13  ;;  %s4256_s13 = smov %s2745_s14 }
 0x303   : > { %s4257_s14 = smov %s2944_s19  ;;  %s4258_s16 = smov %s2761_s18 }
 0x304   : > { %s4259_s18 = smov %s4266_s5  ;;  %s4260_s19 = smov %s19_s25 }
 0x305   :  { %18 = sbr.rel (!%p16_p13) target bundleno = 13 (0xd), region = 86 }
 0x30c   :  { %2262 = vsyncpa [#allocation5], 1 }
 0x30d   :  { %2264 = vsyncpa [#allocation5 + $0x1], 1 }
 0x30e   :  { %2265 = vsyncpa [#allocation6], 1 }
 0x30f   :  { %2267 = vsyncpa [#allocation6 + $0x1], 1 }
 0x310   :  { %2268 = vsyncpa [#allocation7], 1 }
 0x311   :  { %2270 = vsyncpa [#allocation7 + $0x1], 1 }

</bundles_post_ra>
